<compile_context>
chip_gen: v7x
topology: tpu7x:2x2x1
jax: 0.10.0
libtpu: 0.0.40
codegen_flags: <defaults>
</compile_context>

<pallas_src>
import jax
import jax.numpy as jnp
from jax import lax
from jax.experimental import pallas as pl
from jax.experimental.pallas import tpu as pltpu


def bottleneck_kernel(x_ref, halo_ref, w1_ref, b1_ref, w2_ref, b2_ref,
                      w3_ref, b3_ref, o_ref, pad_ref):
    # x_ref:    (TH, W, Cin)        bf16   (batch + row-block dims squeezed)
    # halo_ref: (2, W, Cin)         bf16   row above / row below this block
    # w1_ref:   (Cin, width)        bf16
    # w2_ref:   (9*width, width)    bf16   rows ordered (dy, dx, ci)
    # w3_ref:   (width, Cout)       bf16
    # b*_ref:   (1, c)              f32    folded BN biases
    # o_ref:    (TH, W, Cout)       bf16
    # pad_ref:  (TH+2, W+2, width)  bf16   zero-padded conv1 activation
    TH, W, Cin = x_ref.shape
    width = w1_ref.shape[1]
    Cout = w3_ref.shape[1]

    r = pl.program_id(1)
    R = pl.num_programs(1)

    # ---- conv1 (1x1) + folded BN1 + ReLU -----------------------------------
    # Halo rows folded into the same matmul: rows = [top, block rows, bottom].
    rows = jnp.concatenate([halo_ref[0:1], x_ref[...], halo_ref[1:2]], axis=0)
    h1 = jnp.dot(rows.reshape((TH + 2) * W, Cin), w1_ref[...],
                 preferred_element_type=jnp.float32)
    h1 = jnp.maximum(h1 + b1_ref[...], 0.0).reshape(TH + 2, W, width)

    # Mask the halo rows to exact zero at the image border (the 3x3 conv's
    # zero padding must be 0, not relu(bias)).
    top_valid = (r > 0).astype(jnp.float32)
    bot_valid = (r < R - 1).astype(jnp.float32)
    h1_top = (h1[0:1] * top_valid).astype(jnp.bfloat16)
    h1_mid = h1[1:TH + 1].astype(jnp.bfloat16)
    h1_bot = (h1[TH + 1:TH + 2] * bot_valid).astype(jnp.bfloat16)

    # ---- zero-padded conv1 activation (bf16), ONE full-tile store ----------
    zcol = jnp.zeros((TH + 2, 1, width), jnp.bfloat16)
    h1_rows = jnp.concatenate([h1_top, h1_mid, h1_bot], axis=0)    # (TH+2, W, width)
    pad_ref[...] = jnp.concatenate([zcol, h1_rows, zcol], axis=1)  # (TH+2, W+2, width)

    # ---- conv2 (3x3, stride=1, pad=1) + BN2 + ReLU --------------------------
    # Three per-dy im2col matmuls (K = 3*width each), f32 accumulation.
    acc = jnp.zeros((TH * W, width), jnp.float32)
    for dy in range(3):
        chunk = jnp.concatenate(
            [pad_ref[dy:dy + TH, dx:dx + W, :] for dx in range(3)],
            axis=-1)                                               # (TH, W, 3*width) bf16
        acc = acc + jnp.dot(chunk.reshape(TH * W, 3 * width),
                            w2_ref[dy * 3 * width:(dy + 1) * 3 * width, :],
                            preferred_element_type=jnp.float32)
    h2 = jnp.maximum(acc + b2_ref[...], 0.0)                       # (TH*W, width) f32

    # ---- conv3 (1x1) + folded BN3 + residual add + ReLU ---------------------
    h3 = jnp.dot(h2.astype(jnp.bfloat16), w3_ref[...],
                 preferred_element_type=jnp.float32) + b3_ref[...]
    ident = x_ref[...].reshape(TH * W, Cin).astype(jnp.float32)    # Cin == Cout
    out = jnp.maximum(h3 + ident, 0.0)
    o_ref[...] = out.reshape(TH, W, Cout).astype(o_ref.dtype)


def _pick_row_tile(H, W, Cin, width, Cout, vmem_budget_bytes):
    """Largest divisor of H whose working set fits the budget, stopping once
    the MXU row dimension (M = TH*W) reaches 256 (v6e/v7x MXU height)."""
    def est_bytes(th):
        xin = 2 * th * W * Cin * 2                 # double-buffered input tile (bf16)
        out = 2 * th * W * Cout * 2                # double-buffered output tile (bf16)
        halo = 2 * 2 * W * Cin * 2                 # double-buffered halo (bf16)
        wts = (Cin * width + 9 * width * width + width * Cout) * 2  # single-buffered
        bias = 4 * (2 * width + Cout)
        pad = (th + 2) * (W + 2) * width * 2       # bf16 pad scratch
        live = 4 * th * W * max(width, Cout) * 4   # f32 live temporaries (rough)
        return xin + out + halo + wts + bias + pad + live

    best = 1
    for th in range(1, H + 1):
        if H % th:
            continue
        if est_bytes(th) > vmem_budget_bytes:
            break
        best = th
        if th * W >= 256:
            break
    return best


def bottleneck_forward(x_nchw, params, row_tile=None):
    w1, b1, w2, b2, w3, b3 = params
    N, Cin, H, W = x_nchw.shape
    width = w1.shape[1]
    Cout = w3.shape[1]
    assert Cin == Cout, "downsample=None requires inplanes == planes*expansion"

    # VMEM budget derived from the chip (v5e/v6e: 128 MiB physical, v7x: 64 MiB).
    try:
        vmem_cap = pltpu.get_tpu_info().vmem_capacity_bytes
    except Exception:
        vmem_cap = 128 * 1024 * 1024
    vmem_limit = min(int(0.75 * vmem_cap), 100 * 1024 * 1024)

    if row_tile is None:
        row_tile = _pick_row_tile(H, W, Cin, width, Cout, int(0.8 * vmem_limit))
    TH = min(row_tile, H)
    assert H % TH == 0, "row tile must divide H"
    R = H // TH

    # One-time layout conversion to NHWC + bf16 (MXU-native operand dtype).
    x = jnp.transpose(x_nchw, (0, 2, 3, 1)).astype(jnp.bfloat16)   # (N,H,W,Cin)

    # Halo rows for the 3x3 conv: row block r needs input rows r*TH-1 and
    # (r+1)*TH (zeros outside the image; masked again in-kernel).
    zrow = jnp.zeros((N, 1, W, Cin), jnp.bfloat16)
    top = jnp.concatenate([zrow, x[:, TH - 1:H - 1:TH]], axis=1)   # (N, R, W, Cin)
    bot = jnp.concatenate([x[:, TH:H:TH], zrow], axis=1)           # (N, R, W, Cin)
    halo = jnp.stack([top, bot], axis=2)                           # (N, R, 2, W, Cin)

    # Weights/biases have constant index maps -> single buffer (saves VMEM,
    # matters most under v7x's 64 MiB budget).
    def w_spec(shape):
        return pl.BlockSpec(shape, lambda n, r: (0,) * len(shape),
                            pipeline_mode=pl.Buffered(1))

    out = pl.pallas_call(
        bottleneck_kernel,
        out_shape=jax.ShapeDtypeStruct((N, H, W, Cout), jnp.bfloat16),
        grid_spec=pltpu.PrefetchScalarGridSpec(
            num_scalar_prefetch=0,
            grid=(N, R),
            in_specs=[
                pl.BlockSpec((pl.Squeezed(), TH, W, Cin),
                             lambda n, r: (n, r, 0, 0)),
                pl.BlockSpec((pl.Squeezed(), pl.Squeezed(), 2, W, Cin),
                             lambda n, r: (n, r, 0, 0, 0)),
                w_spec((Cin, width)),
                w_spec((1, width)),
                w_spec((9 * width, width)),
                w_spec((1, width)),
                w_spec((width, Cout)),
                w_spec((1, Cout)),
            ],
            out_specs=pl.BlockSpec((pl.Squeezed(), TH, W, Cout),
                                   lambda n, r: (n, r, 0, 0)),
            scratch_shapes=[pltpu.VMEM((TH + 2, W + 2, width), jnp.bfloat16)],
        ),
        compiler_params=pltpu.CompilerParams(
            dimension_semantics=("parallel", "parallel"),
            vmem_limit_bytes=vmem_limit),
    )(x, halo, w1, b1, w2, b2, w3, b3)

    # bf16 inference output (next block would re-quantize to bf16 anyway).
    return jnp.transpose(out, (0, 3, 1, 2))                        # NCHW, bf16


def make_params(key, inplanes, planes, base_width=64, groups=1):
    """Synthetic weights (PyTorch shapes) with eval-BN folding; bf16 weights,
    f32 biases."""
    width = int(planes * (base_width / 64.0)) * groups
    out_ch = planes * 4
    eps = 1e-5
    ks = jax.random.split(key, 6)

    # PyTorch conv weight layout: (out_ch, in_ch, kh, kw)
    w1_t = 0.1 * jax.random.normal(ks[0], (width, inplanes, 1, 1), jnp.float32)
    w2_t = 0.1 * jax.random.normal(ks[1], (width, width, 3, 3), jnp.float32)
    w3_t = 0.1 * jax.random.normal(ks[2], (out_ch, width, 1, 1), jnp.float32)

    def bn_params(k, c):
        k1, k2, k3, k4 = jax.random.split(k, 4)
        gamma = 1.0 + 0.1 * jax.random.normal(k1, (c,), jnp.float32)
        beta = 0.1 * jax.random.normal(k2, (c,), jnp.float32)
        mean = 0.1 * jax.random.normal(k3, (c,), jnp.float32)
        var = jnp.abs(jax.random.normal(k4, (c,), jnp.float32)) + 0.5
        return gamma, beta, mean, var

    bn1 = bn_params(ks[3], width)
    bn2 = bn_params(ks[4], width)
    bn3 = bn_params(ks[5], out_ch)

    def fold(w_t, bn_p):
        gamma, beta, mean, var = bn_p
        scale = gamma / jnp.sqrt(var + eps)
        return w_t * scale[:, None, None, None], beta - mean * scale

    w1f, b1 = fold(w1_t, bn1)
    w2f, b2 = fold(w2_t, bn2)
    w3f, b3 = fold(w3_t, bn3)

    # Kernel layouts (bf16 matmul operands):
    w1 = jnp.transpose(w1f[:, :, 0, 0], (1, 0)).astype(jnp.bfloat16)    # (Cin, width)
    w2 = jnp.transpose(w2f, (2, 3, 1, 0)).reshape(9 * width, width)     # (dy,dx,ci)-major
    w2 = w2.astype(jnp.bfloat16)
    w3 = jnp.transpose(w3f[:, :, 0, 0], (1, 0)).astype(jnp.bfloat16)    # (width, out_ch)
    return (w1, b1.reshape(1, width), w2, b2.reshape(1, width),
            w3, b3.reshape(1, out_ch))


def reference(x_nchw, params):
    """Pure-JAX reference with the same bf16 quantization points as the kernel
    (but f32 output)."""
    w1, b1, w2, b2, w3, b3 = params
    f32 = jnp.float32
    width = w1.shape[1]

    x = jnp.transpose(x_nchw, (0, 2, 3, 1)).astype(jnp.bfloat16).astype(f32)
    w1f, w2f, w3f = w1.astype(f32), w2.astype(f32), w3.astype(f32)

    h = jnp.einsum('nhwc,cd->nhwd', x, w1f,
                   precision=lax.Precision.HIGHEST) + b1.reshape(1, 1, 1, -1)
    h = jax.nn.relu(h)
    h = h.astype(jnp.bfloat16).astype(f32)                 # conv2 operand quant

    w2_hwio = w2f.reshape(3, 3, width, width)              # HWIO
    h = lax.conv_general_dilated(h, w2_hwio, window_strides=(1, 1),
                                 padding=((1, 1), (1, 1)),
                                 dimension_numbers=('NHWC', 'HWIO', 'NHWC'),
                                 precision=lax.Precision.HIGHEST)
    h = jax.nn.relu(h + b2.reshape(1, 1, 1, -1))
    h = h.astype(jnp.bfloat16).astype(f32)                 # conv3 operand quant

    h = jnp.einsum('nhwc,cd->nhwd', h, w3f,
                   precision=lax.Precision.HIGHEST) + b3.reshape(1, 1, 1, -1)
    out = jax.nn.relu(h + x)
    return jnp.transpose(out, (0, 3, 1, 2))


if __name__ == "__main__":
    key = jax.random.PRNGKey(0)
    kx, kp = jax.random.split(key)

    # Lane-dense bottleneck with identity residual: width = 128 (full lane
    # width), inplanes = planes*4 = 256, spatial 32x32 so the auto row tile
    # reaches M = TH*W = 256 with a grid deep enough for 2 TensorCores.
    N, planes, base_width, H, W = 2, 64, 128, 32, 32
    inplanes = planes * 4
    x = jax.random.normal(kx, (N, inplanes, H, W), jnp.float32)
    params = make_params(kp, inplanes, planes, base_width=base_width)

    out = bottleneck_forward(x, params)        # bf16 NCHW
    jax.block_until_ready(out)

    ref = reference(x, params)                 # f32 NCHW
    out_f32 = out.astype(jnp.float32)
    max_err = float(jnp.max(jnp.abs(out_f32 - ref)))
    assert out.shape == (N, inplanes, H, W)
    assert jnp.allclose(out_f32, ref, atol=5e-2, rtol=2e-2), max_err

    print("KERNEL_OK")
</pallas_src>

<mosaic_0001>
module attributes {stable_mosaic.version = 11 : i64} {
  func.func @bottleneck_kernel(%arg0: i32, %arg1: i32, %arg2: memref<1x8x32x256xbf16, #tpu.memory_space<vmem>>, %arg3: memref<1x1x2x32x256xbf16, #tpu.memory_space<vmem>>, %arg4: memref<256x128xbf16, #tpu.memory_space<vmem>>, %arg5: memref<1x128xf32, #tpu.memory_space<vmem>>, %arg6: memref<1152x128xbf16, #tpu.memory_space<vmem>>, %arg7: memref<1x128xf32, #tpu.memory_space<vmem>>, %arg8: memref<128x256xbf16, #tpu.memory_space<vmem>>, %arg9: memref<1x256xf32, #tpu.memory_space<vmem>>, %arg10: memref<1x8x32x256xbf16, #tpu.memory_space<vmem>>, %arg11: memref<10x34x128xbf16, #tpu.memory_space<vmem>>) attributes {dimension_semantics = [#tpu.dimension_semantics<parallel>, #tpu.dimension_semantics<parallel>], iteration_bounds = array<i64: 2, 4>, scalar_prefetch = 0 : i64, scratch_operands = 1 : i64, tpu.core_type = #tpu.core_type<tc>, window_params = [{transform_indices = @transform_0, window_bounds = array<i64: 1, 8, 32, 256>}, {transform_indices = @transform_1, window_bounds = array<i64: 1, 1, 2, 32, 256>}, {pipeline_mode = #tpu.pipeline_mode<synchronous>, transform_indices = @transform_2, window_bounds = array<i64: 256, 128>}, {pipeline_mode = #tpu.pipeline_mode<synchronous>, transform_indices = @transform_3, window_bounds = array<i64: 1, 128>}, {pipeline_mode = #tpu.pipeline_mode<synchronous>, transform_indices = @transform_4, window_bounds = array<i64: 1152, 128>}, {pipeline_mode = #tpu.pipeline_mode<synchronous>, transform_indices = @transform_5, window_bounds = array<i64: 1, 128>}, {pipeline_mode = #tpu.pipeline_mode<synchronous>, transform_indices = @transform_6, window_bounds = array<i64: 128, 256>}, {pipeline_mode = #tpu.pipeline_mode<synchronous>, transform_indices = @transform_7, window_bounds = array<i64: 1, 256>}, {transform_indices = @transform_8, window_bounds = array<i64: 1, 8, 32, 256>}]} {
    %c0 = arith.constant 0 : index
    %c0_0 = arith.constant 0 : index
    %c0_1 = arith.constant 0 : index
    %c0_2 = arith.constant 0 : index
    %c0_3 = arith.constant 0 : index
    %0 = vector.load %arg3[%c0, %c0_0, %c0_1, %c0_2, %c0_3] : memref<1x1x2x32x256xbf16, #tpu.memory_space<vmem>>, vector<1x1x1x32x256xbf16>
    %1 = vector.shape_cast %0 : vector<1x1x1x32x256xbf16> to vector<1x32x256xbf16>
    %c0_4 = arith.constant 0 : index
    %c0_5 = arith.constant 0 : index
    %c0_6 = arith.constant 0 : index
    %c0_7 = arith.constant 0 : index
    %2 = vector.load %arg2[%c0_4, %c0_5, %c0_6, %c0_7] : memref<1x8x32x256xbf16, #tpu.memory_space<vmem>>, vector<1x8x32x256xbf16>
    %3 = vector.shape_cast %2 : vector<1x8x32x256xbf16> to vector<8x32x256xbf16>
    %c0_8 = arith.constant 0 : index
    %c0_9 = arith.constant 0 : index
    %c1 = arith.constant 1 : index
    %c0_10 = arith.constant 0 : index
    %c0_11 = arith.constant 0 : index
    %4 = vector.load %arg3[%c0_8, %c0_9, %c1, %c0_10, %c0_11] : memref<1x1x2x32x256xbf16, #tpu.memory_space<vmem>>, vector<1x1x1x32x256xbf16>
    %5 = vector.shape_cast %4 : vector<1x1x1x32x256xbf16> to vector<1x32x256xbf16>
    %6 = tpu.concatenate %1, %3, %5 in 0 : vector<1x32x256xbf16>, vector<8x32x256xbf16>, vector<1x32x256xbf16> -> vector<10x32x256xbf16>
    %7 = vector.shape_cast %6 : vector<10x32x256xbf16> to vector<320x256xbf16>
    %c0_12 = arith.constant 0 : index
    %c0_13 = arith.constant 0 : index
    %8 = vector.load %arg4[%c0_12, %c0_13] : memref<256x128xbf16, #tpu.memory_space<vmem>>, vector<256x128xbf16>
    %cst = arith.constant dense<0.000000e+00> : vector<320x128xf32>
    %9 = tpu.matmul %7, %8, %cst {dimension_numbers = #tpu.dot_dimension_numbers<[1], [0], [0], [1], [0, 0, 1, 1], [], []>} : vector<320x256xbf16>, vector<256x128xbf16>, vector<320x128xf32> -> vector<320x128xf32>
    %c0_14 = arith.constant 0 : index
    %c0_15 = arith.constant 0 : index
    %10 = vector.load %arg5[%c0_14, %c0_15] : memref<1x128xf32, #tpu.memory_space<vmem>>, vector<1x128xf32>
    %11 = vector.broadcast %10 : vector<1x128xf32> to vector<320x128xf32>
    %12 = arith.addf %9, %11 : vector<320x128xf32>
    %cst_16 = arith.constant 0.000000e+00 : f32
    %13 = vector.broadcast %cst_16 : f32 to vector<320x128xf32>
    %14 = arith.maximumf %12, %13 : vector<320x128xf32>
    %15 = vector.shape_cast %14 : vector<320x128xf32> to vector<10x32x128xf32>
    %c0_i32 = arith.constant 0 : i32
    %16 = arith.cmpi sgt, %arg1, %c0_i32 : i32
    %17 = arith.extui %16 : i1 to i32
    %18 = arith.sitofp %17 : i32 to f32
    %c3_i32 = arith.constant 3 : i32
    %19 = arith.cmpi slt, %arg1, %c3_i32 : i32
    %20 = arith.extui %19 : i1 to i32
    %21 = arith.sitofp %20 : i32 to f32
    %22 = vector.extract_strided_slice %15 {offsets = [0, 0, 0], sizes = [1, 32, 128], strides = [1, 1, 1]} : vector<10x32x128xf32> to vector<1x32x128xf32>
    %23 = vector.broadcast %18 : f32 to vector<1x32x128xf32>
    %24 = arith.mulf %22, %23 : vector<1x32x128xf32>
    %25 = arith.truncf %24 : vector<1x32x128xf32> to vector<1x32x128xbf16>
    %26 = vector.extract_strided_slice %15 {offsets = [1, 0, 0], sizes = [8, 32, 128], strides = [1, 1, 1]} : vector<10x32x128xf32> to vector<8x32x128xf32>
    %27 = arith.truncf %26 : vector<8x32x128xf32> to vector<8x32x128xbf16>
    %28 = vector.extract_strided_slice %15 {offsets = [9, 0, 0], sizes = [1, 32, 128], strides = [1, 1, 1]} : vector<10x32x128xf32> to vector<1x32x128xf32>
    %29 = vector.broadcast %21 : f32 to vector<1x32x128xf32>
    %30 = arith.mulf %28, %29 : vector<1x32x128xf32>
    %31 = arith.truncf %30 : vector<1x32x128xf32> to vector<1x32x128xbf16>
    %cst_17 = arith.constant 0.000000e+00 : bf16
    %32 = vector.broadcast %cst_17 : bf16 to vector<10x1x128xbf16>
    %33 = tpu.concatenate %25, %27, %31 in 0 : vector<1x32x128xbf16>, vector<8x32x128xbf16>, vector<1x32x128xbf16> -> vector<10x32x128xbf16>
    %34 = tpu.concatenate %32, %33, %32 in 1 : vector<10x1x128xbf16>, vector<10x32x128xbf16>, vector<10x1x128xbf16> -> vector<10x34x128xbf16>
    %c0_18 = arith.constant 0 : index
    %c0_19 = arith.constant 0 : index
    %c0_20 = arith.constant 0 : index
    %35 = vector.load %arg11[%c0_18, %c0_19, %c0_20] : memref<10x34x128xbf16, #tpu.memory_space<vmem>>, vector<10x34x128xbf16>
    tpu.vector_store %arg11[%c0_18, %c0_19, %c0_20], %34 {strides = array<i32>} : memref<10x34x128xbf16, #tpu.memory_space<vmem>>, vector<10x34x128xbf16>,
    %cst_21 = arith.constant 0.000000e+00 : f32
    %36 = vector.broadcast %cst_21 : f32 to vector<256x128xf32>
    %c0_22 = arith.constant 0 : index
    %c0_23 = arith.constant 0 : index
    %c0_24 = arith.constant 0 : index
    %37 = vector.load %arg11[%c0_22, %c0_23, %c0_24] : memref<10x34x128xbf16, #tpu.memory_space<vmem>>, vector<8x32x128xbf16>
    %c0_25 = arith.constant 0 : index
    %c1_26 = arith.constant 1 : index
    %c0_27 = arith.constant 0 : index
    %38 = vector.load %arg11[%c0_25, %c1_26, %c0_27] : memref<10x34x128xbf16, #tpu.memory_space<vmem>>, vector<8x32x128xbf16>
    %c0_28 = arith.constant 0 : index
    %c2 = arith.constant 2 : index
    %c0_29 = arith.constant 0 : index
    %39 = vector.load %arg11[%c0_28, %c2, %c0_29] : memref<10x34x128xbf16, #tpu.memory_space<vmem>>, vector<8x32x128xbf16>
    %40 = tpu.concatenate %37, %38, %39 in 2 : vector<8x32x128xbf16>, vector<8x32x128xbf16>, vector<8x32x128xbf16> -> vector<8x32x384xbf16>
    %41 = vector.shape_cast %40 : vector<8x32x384xbf16> to vector<256x384xbf16>
    %c0_30 = arith.constant 0 : index
    %c0_31 = arith.constant 0 : index
    %42 = vector.load %arg6[%c0_30, %c0_31] : memref<1152x128xbf16, #tpu.memory_space<vmem>>, vector<384x128xbf16>
    %cst_32 = arith.constant dense<0.000000e+00> : vector<256x128xf32>
    %43 = tpu.matmul %41, %42, %cst_32 {dimension_numbers = #tpu.dot_dimension_numbers<[1], [0], [0], [1], [0, 0, 1, 1], [], []>} : vector<256x384xbf16>, vector<384x128xbf16>, vector<256x128xf32> -> vector<256x128xf32>
    %44 = arith.addf %36, %43 : vector<256x128xf32>
    %c1_33 = arith.constant 1 : index
    %c0_34 = arith.constant 0 : index
    %c0_35 = arith.constant 0 : index
    %45 = vector.load %arg11[%c1_33, %c0_34, %c0_35] : memref<10x34x128xbf16, #tpu.memory_space<vmem>>, vector<8x32x128xbf16>
    %c1_36 = arith.constant 1 : index
    %c1_37 = arith.constant 1 : index
    %c0_38 = arith.constant 0 : index
    %46 = vector.load %arg11[%c1_36, %c1_37, %c0_38] : memref<10x34x128xbf16, #tpu.memory_space<vmem>>, vector<8x32x128xbf16>
    %c1_39 = arith.constant 1 : index
    %c2_40 = arith.constant 2 : index
    %c0_41 = arith.constant 0 : index
    %47 = vector.load %arg11[%c1_39, %c2_40, %c0_41] : memref<10x34x128xbf16, #tpu.memory_space<vmem>>, vector<8x32x128xbf16>
    %48 = tpu.concatenate %45, %46, %47 in 2 : vector<8x32x128xbf16>, vector<8x32x128xbf16>, vector<8x32x128xbf16> -> vector<8x32x384xbf16>
    %49 = vector.shape_cast %48 : vector<8x32x384xbf16> to vector<256x384xbf16>
    %c384 = arith.constant 384 : index
    %c0_42 = arith.constant 0 : index
    %50 = vector.load %arg6[%c384, %c0_42] : memref<1152x128xbf16, #tpu.memory_space<vmem>>, vector<384x128xbf16>
    %cst_43 = arith.constant dense<0.000000e+00> : vector<256x128xf32>
    %51 = tpu.matmul %49, %50, %cst_43 {dimension_numbers = #tpu.dot_dimension_numbers<[1], [0], [0], [1], [0, 0, 1, 1], [], []>} : vector<256x384xbf16>, vector<384x128xbf16>, vector<256x128xf32> -> vector<256x128xf32>
    %52 = arith.addf %44, %51 : vector<256x128xf32>
    %c2_44 = arith.constant 2 : index
    %c0_45 = arith.constant 0 : index
    %c0_46 = arith.constant 0 : index
    %53 = vector.load %arg11[%c2_44, %c0_45, %c0_46] : memref<10x34x128xbf16, #tpu.memory_space<vmem>>, vector<8x32x128xbf16>
    %c2_47 = arith.constant 2 : index
    %c1_48 = arith.constant 1 : index
    %c0_49 = arith.constant 0 : index
    %54 = vector.load %arg11[%c2_47, %c1_48, %c0_49] : memref<10x34x128xbf16, #tpu.memory_space<vmem>>, vector<8x32x128xbf16>
    %c2_50 = arith.constant 2 : index
    %c2_51 = arith.constant 2 : index
    %c0_52 = arith.constant 0 : index
    %55 = vector.load %arg11[%c2_50, %c2_51, %c0_52] : memref<10x34x128xbf16, #tpu.memory_space<vmem>>, vector<8x32x128xbf16>
    %56 = tpu.concatenate %53, %54, %55 in 2 : vector<8x32x128xbf16>, vector<8x32x128xbf16>, vector<8x32x128xbf16> -> vector<8x32x384xbf16>
    %57 = vector.shape_cast %56 : vector<8x32x384xbf16> to vector<256x384xbf16>
    %c768 = arith.constant 768 : index
    %c0_53 = arith.constant 0 : index
    %58 = vector.load %arg6[%c768, %c0_53] : memref<1152x128xbf16, #tpu.memory_space<vmem>>, vector<384x128xbf16>
    %cst_54 = arith.constant dense<0.000000e+00> : vector<256x128xf32>
    %59 = tpu.matmul %57, %58, %cst_54 {dimension_numbers = #tpu.dot_dimension_numbers<[1], [0], [0], [1], [0, 0, 1, 1], [], []>} : vector<256x384xbf16>, vector<384x128xbf16>, vector<256x128xf32> -> vector<256x128xf32>
    %60 = arith.addf %52, %59 : vector<256x128xf32>
    %c0_55 = arith.constant 0 : index
    %c0_56 = arith.constant 0 : index
    %61 = vector.load %arg7[%c0_55, %c0_56] : memref<1x128xf32, #tpu.memory_space<vmem>>, vector<1x128xf32>
    %62 = vector.broadcast %61 : vector<1x128xf32> to vector<256x128xf32>
    %63 = arith.addf %60, %62 : vector<256x128xf32>
    %cst_57 = arith.constant 0.000000e+00 : f32
    %64 = vector.broadcast %cst_57 : f32 to vector<256x128xf32>
    %65 = arith.maximumf %63, %64 : vector<256x128xf32>
    %66 = arith.truncf %65 : vector<256x128xf32> to vector<256x128xbf16>
    %c0_58 = arith.constant 0 : index
    %c0_59 = arith.constant 0 : index
    %67 = vector.load %arg8[%c0_58, %c0_59] : memref<128x256xbf16, #tpu.memory_space<vmem>>, vector<128x256xbf16>
    %cst_60 = arith.constant dense<0.000000e+00> : vector<256x256xf32>
    %68 = tpu.matmul %66, %67, %cst_60 {dimension_numbers = #tpu.dot_dimension_numbers<[1], [0], [0], [1], [0, 0, 1, 1], [], []>} : vector<256x128xbf16>, vector<128x256xbf16>, vector<256x256xf32> -> vector<256x256xf32>
    %c0_61 = arith.constant 0 : index
    %c0_62 = arith.constant 0 : index
    %69 = vector.load %arg9[%c0_61, %c0_62] : memref<1x256xf32, #tpu.memory_space<vmem>>, vector<1x256xf32>
    %70 = vector.broadcast %69 : vector<1x256xf32> to vector<256x256xf32>
    %71 = arith.addf %68, %70 : vector<256x256xf32>
    %c0_63 = arith.constant 0 : index
    %c0_64 = arith.constant 0 : index
    %c0_65 = arith.constant 0 : index
    %c0_66 = arith.constant 0 : index
    %72 = vector.load %arg2[%c0_63, %c0_64, %c0_65, %c0_66] : memref<1x8x32x256xbf16, #tpu.memory_space<vmem>>, vector<1x8x32x256xbf16>
    %73 = vector.shape_cast %72 : vector<1x8x32x256xbf16> to vector<8x32x256xbf16>
    %74 = vector.shape_cast %73 : vector<8x32x256xbf16> to vector<256x256xbf16>
    %75 = arith.extf %74 : vector<256x256xbf16> to vector<256x256xf32>
    %76 = arith.addf %71, %75 : vector<256x256xf32>
    %cst_67 = arith.constant 0.000000e+00 : f32
    %77 = vector.broadcast %cst_67 : f32 to vector<256x256xf32>
    %78 = arith.maximumf %76, %77 : vector<256x256xf32>
    %79 = vector.shape_cast %78 : vector<256x256xf32> to vector<8x32x256xf32>
    %80 = arith.truncf %79 : vector<8x32x256xf32> to vector<8x32x256xbf16>
    %c0_68 = arith.constant 0 : index
    %c0_69 = arith.constant 0 : index
    %c0_70 = arith.constant 0 : index
    %c0_71 = arith.constant 0 : index
    %81 = vector.load %arg10[%c0_68, %c0_69, %c0_70, %c0_71] : memref<1x8x32x256xbf16, #tpu.memory_space<vmem>>, vector<1x8x32x256xbf16>
    %82 = vector.shape_cast %81 : vector<1x8x32x256xbf16> to vector<8x32x256xbf16>
    %83 = vector.shape_cast %80 : vector<8x32x256xbf16> to vector<1x8x32x256xbf16>
    tpu.vector_store %arg10[%c0_68, %c0_69, %c0_70, %c0_71], %83 {strides = array<i32>} : memref<1x8x32x256xbf16, #tpu.memory_space<vmem>>, vector<1x8x32x256xbf16>,
    return
  }
  func.func @transform_0(%arg0: i32, %arg1: i32) -> (i32, i32, i32, i32) {
    %c0_i32 = arith.constant 0 : i32
    %c0_i32_0 = arith.constant 0 : i32
    %c0_i32_1 = arith.constant 0 : i32
    return %arg0, %arg1, %c0_i32, %c0_i32_0 : i32, i32, i32, i32
  }
  func.func @transform_1(%arg0: i32, %arg1: i32) -> (i32, i32, i32, i32, i32) {
    %c0_i32 = arith.constant 0 : i32
    %c0_i32_0 = arith.constant 0 : i32
    %c0_i32_1 = arith.constant 0 : i32
    %c0_i32_2 = arith.constant 0 : i32
    return %arg0, %arg1, %c0_i32, %c0_i32_0, %c0_i32_1 : i32, i32, i32, i32, i32
  }
  func.func @transform_2(%arg0: i32, %arg1: i32) -> (i32, i32) {
    %c0_i32 = arith.constant 0 : i32
    %c0_i32_0 = arith.constant 0 : i32
    %c0_i32_1 = arith.constant 0 : i32
    return %c0_i32, %c0_i32_0 : i32, i32
  }
  func.func @transform_3(%arg0: i32, %arg1: i32) -> (i32, i32) {
    %c0_i32 = arith.constant 0 : i32
    %c0_i32_0 = arith.constant 0 : i32
    %c0_i32_1 = arith.constant 0 : i32
    return %c0_i32, %c0_i32_0 : i32, i32
  }
  func.func @transform_4(%arg0: i32, %arg1: i32) -> (i32, i32) {
    %c0_i32 = arith.constant 0 : i32
    %c0_i32_0 = arith.constant 0 : i32
    %c0_i32_1 = arith.constant 0 : i32
    return %c0_i32, %c0_i32_0 : i32, i32
  }
  func.func @transform_5(%arg0: i32, %arg1: i32) -> (i32, i32) {
    %c0_i32 = arith.constant 0 : i32
    %c0_i32_0 = arith.constant 0 : i32
    %c0_i32_1 = arith.constant 0 : i32
    return %c0_i32, %c0_i32_0 : i32, i32
  }
  func.func @transform_6(%arg0: i32, %arg1: i32) -> (i32, i32) {
    %c0_i32 = arith.constant 0 : i32
    %c0_i32_0 = arith.constant 0 : i32
    %c0_i32_1 = arith.constant 0 : i32
    return %c0_i32, %c0_i32_0 : i32, i32
  }
  func.func @transform_7(%arg0: i32, %arg1: i32) -> (i32, i32) {
    %c0_i32 = arith.constant 0 : i32
    %c0_i32_0 = arith.constant 0 : i32
    %c0_i32_1 = arith.constant 0 : i32
    return %c0_i32, %c0_i32_0 : i32, i32
  }
  func.func @transform_8(%arg0: i32, %arg1: i32) -> (i32, i32, i32, i32) {
    %c0_i32 = arith.constant 0 : i32
    %c0_i32_0 = arith.constant 0 : i32
    %c0_i32_1 = arith.constant 0 : i32
    return %arg0, %arg1, %c0_i32, %c0_i32_0 : i32, i32, i32, i32
  }
}

</mosaic_0001>

<bundles_post_ra>
// kernel: tpu_custom_call.1
= control target key start
LH: loop header
LB: loop body
LE: loop exit
PB: predicated region body
PF: predicated region fallthrough
CT: control target
= control target key end

     0   :  { %s8920_s0 = inlined_call_operand.hbm [shape: bf16[2,32,32,256], index: 0, kind: input, shape index: {}]   ;;  %s8921_s1 = inlined_call_operand.hbm [shape: bf16[2,4,2,32,256], index: 1, kind: input, shape index: {}]   ;;  %s8922_s2 = inlined_call_operand.hbm [shape: bf16[256,128], index: 2, kind: input, shape index: {}]   ;;  %s8923_s3 = inlined_call_operand.hbm [shape: f32[1,128], index: 3, kind: input, shape index: {}]   ;;  %s8924_s4 = inlined_call_operand.hbm [shape: bf16[1152,128], index: 4, kind: input, shape index: {}]   ;;  %s8925_s5 = inlined_call_operand.hbm [shape: f32[1,128], index: 5, kind: input, shape index: {}]   ;;  %s8926_s6 = inlined_call_operand.hbm [shape: bf16[128,256], index: 6, kind: input, shape index: {}]   ;;  %s8927_s7 = inlined_call_operand.hbm [shape: f32[1,256], index: 7, kind: input, shape index: {}]   ;;  %s8928_s8 = inlined_call_operand.hbm [shape: bf16[2,32,32,256], index: 8, kind: output, shape index: {}]  }
   0x1   :  { %8943 = sst [smem:[#allocation37_spill]] %s8920_s0 }
   0x2   :  { %8944 = sst [smem:[#allocation38_spill]] %s8922_s2 }
   0x3   :  { %8945 = sst [smem:[#allocation39_spill]] %s8923_s3 }
   0x4   :  { %8946 = sst [smem:[#allocation40_spill]] %s8924_s4 }
   0x5   :  { %8947 = sst [smem:[#allocation41_spill]] %s8925_s5 }
   0x6   :  { %8948 = sst [smem:[#allocation42_spill]] %s8926_s6 }
   0x7   :  { %8949 = sst [smem:[#allocation43_spill]] %s8927_s7 }
   0x8   :  { %8950 = sst [smem:[#allocation44_spill]] %s8928_s8 }
   0x9   :  { %13 = vsyncpa [#allocation4], 0 }
   0xa   :  { %15 = vsyncpa [#allocation4 + $0x1], 0 }
   0xb   :  { %16 = vsyncpa [#allocation7], 0 }
   0xc   :  { %18 = vsyncpa [#allocation7 + $0x1], 0 }
   0xd   :  { %19 = vsyncpa [#allocation10], 0 }
   0xe   :  { %20 = vsyncpa [#allocation13], 0 }
   0xf   :  { %21 = vsyncpa [#allocation16], 0 }
  0x10   :  { %22 = vsyncpa [#allocation5], 0 }
  0x11   :  { %24 = vsyncpa [#allocation5 + $0x1], 0  ;;  %s7357_s27 = smov 0   ;;  %s7359_s28 = smov 0  }
  0x12   :  { %s7361_s29 = smov 0   ;;  %s7363_s30 = smov 0  }
  0x13   :  { %s7365_s9 = smov 0   ;;  %s7367_s10 = smov 0  }
  0x14   :  { %s7369_s11 = smov 0   ;;  %s7371_s12 = smov 0  }
  0x15 LB: > { %8951 = sst [smem:[#allocation25_spill]] %s7278_s30  ;;  %s7398_s13 = sadd.s32 4294967295, %s7294_s12   ;;  %s7294_s12 = sphi %s7371_s12, %s30_s12   ;;  %s7290_s11 = sphi %s7369_s11, %s9016_s11   ;;  %s7286_s10 = sphi %s7367_s10, %s9015_s10   ;;  %s7282_s9 = sphi %s7365_s9, %s9014_s9   ;;  %s7278_s30 = sphi %s7363_s30, %s9013_s30   ;;  %s7274_s29 = sphi %s7361_s29, %s9012_s29   ;;  %s7270_s28 = sphi %s7359_s28, %s9011_s28   ;;  %s7266_s27 = sphi %s7357_s27, %s9010_s27  }
  0x16   : > { %8952 = sst [smem:[#allocation26_spill]] %s7282_s9  ;;  %p5407_p0 = scmp.ge.s32.totalorder %s7294_s12, 1 }
  0x17   : > { %p8932_p1 = scmp.eq.s32.totalorder %s7398_s13, 0  ;;  %p257_p2 = scmp.lt.s32.totalorder %s7294_s12, 9 }
  0x18   : > { %s7296_s15 = smov [#allocation8]   ;;  %s7297_s18 = smov [#allocation9]  }
  0x19   : > { %p7403_p3 = pnand %p5407_p0, %p257_p2  ;;  %s269_s16 = sshll.u32 %s7296_s15, 4  ;;  %s7407_s16 = int_to_ptr.vmem [resolvable:$true] %s269_s16 }
  0x1a   : > { %s283_s19 = sshll.u32 %s7297_s18, 4  ;;  %s7298_s20 = smov [#allocation12]   ;;  %s7417_s19 = int_to_ptr.vmem [resolvable:$true] %s283_s19 }
  0x1b   : > { %s8953_s14 = scalar_select %p7403_p3, 1, 0 }
  0x1c   : > { %p6545_p4 = pneg %p7403_p3  ;;  %s7419_s21 = sshll.u32 %s7298_s20, 4  ;;  %s308_s21 = int_to_ptr.vmem [resolvable:$true] %s7419_s21 }
  0x1d   : > { %8954 = sst [smem:[#allocation27_spill]] %s8953_s14  ;;  %s8956_s2 = sld [smem:[#allocation38_spill]] }
  0x1e   : > { %p7413_p5 = pnand %p6545_p4, %p8932_p1 }
  0x20   : > { %p7429_p7 = pneg %p7413_p5 }
  0x23   : > { %s6948_s24 = scalar_lea.hbm %s8956_s2, 2048 }
  0x24   : > { %p6949_p6 = scmp.ne.s32.totalorder %s8956_s2, %s6948_s24  ;;  %p6955_p10 = scmp.lt.u32.totalorder %s6948_s24, %s8956_s2 }
  0x26   : > { %p6951_p8 = pnand %p7429_p7, %p6949_p6 }
  0x28   : > { %p6952_p9 = pneg %p6951_p8 }
  0x2a   : > { %p6957_p11 = pnand %p6955_p10, %p6952_p9 }
  0x2c   : > { %6960 = shalt.err (!%p6957_p11)
}
  0x2d   : > { %s6961_s22 = scalar_lea.vmem %s7407_s16, 2048  ;;  %p6969_p2 = scmp.lt.s32.totalorder %s7407_s16, %s7407_s16 }
  0x2e   : > { %p6962_p12 = scmp.ne.s32.totalorder %s7407_s16, %s6961_s22  ;;  %p6970_p4 = scmp.lt.s32.totalorder %s6961_s22, %s6961_s22 }
  0x30   : > { %p6964_p13 = pnand %p6962_p12, %p7429_p7  ;;  %p6971_p6 = por %p6970_p4, %p6969_p2 }
  0x32   : > { %p6965_p0 = pneg %p6964_p13 }
  0x34   : > { %p6972_p8 = pnand %p6971_p6, %p6965_p0 }
  0x36   : > { %6975 = shalt.err (!%p6972_p8)
}
  0x37   : > { %s8934_s23 = smov 64   ;;  %s7300_s24 = smov 4  }
  0x38   : > { %6548 = dma.hbm_to_vmem [thread:$0]  (!%p7413_p5), %s8956_s2, 2048, %s7407_s16, [#allocation7], %s8934_s23, %s8934_s23, %s7300_s24  }
  0x39   : > { %s8958_s3 = sld [smem:[#allocation39_spill]] }
  0x3f   : > { %s6976_s22 = scalar_lea.hbm %s8958_s3, 16 }
  0x40   : > { %p6977_p9 = scmp.ne.s32.totalorder %s8958_s3, %s6976_s22  ;;  %p6983_p12 = scmp.lt.u32.totalorder %s6976_s22, %s8958_s3 }
  0x42   : > { %p6979_p10 = pnand %p6977_p9, %p7429_p7 }
  0x44   : > { %p6980_p11 = pneg %p6979_p10 }
  0x46   : > { %p6985_p13 = pnand %p6983_p12, %p6980_p11 }
  0x48   : > { %6988 = shalt.err (!%p6985_p13)
}
  0x49   : > { %s6989_s16 = scalar_lea.vmem %s7417_s19, 16  ;;  %s6996_s8 = scalar_lea.vmem %s7417_s19, 32 }
  0x4a   : > { %p6990_p0 = scmp.ne.s32.totalorder %s7417_s19, %s6989_s16  ;;  %p6997_p6 = scmp.lt.s32.totalorder %s7417_s19, %s7417_s19 }
  0x4b   : > { %p6998_p8 = scmp.lt.s32.totalorder %s6996_s8, %s6989_s16 }
  0x4c   : > { %p6992_p2 = pnand %p6990_p0, %p7429_p7 }
  0x4d   : > { %p6999_p9 = por %p6998_p8, %p6997_p6 }
  0x4e   : > { %p6993_p4 = pneg %p6992_p2 }
  0x50   : > { %p7000_p10 = pnand %p6999_p9, %p6993_p4 }
  0x52   : > { %7003 = shalt.err (!%p7000_p10)
}
  0x53   : > { %6551 = dma.hbm_to_vmem [thread:$0]  (!%p7413_p5), %s8958_s3, 16, %s7417_s19, [#allocation10]  }
  0x54   : > { %s8959_s5 = sld [smem:[#allocation41_spill]] }
  0x5a   : > { %s7004_s26 = scalar_lea.hbm %s8959_s5, 16 }
  0x5b   : > { %p7005_p11 = scmp.ne.s32.totalorder %s8959_s5, %s7004_s26  ;;  %p7011_p0 = scmp.lt.u32.totalorder %s7004_s26, %s8959_s5 }
  0x5d   : > { %p7007_p12 = pnand %p7005_p11, %p7429_p7 }
  0x5f   : > { %p7008_p13 = pneg %p7007_p12 }
  0x61   : > { %p7013_p2 = pnand %p7011_p0, %p7008_p13 }
  0x63   : > { %7016 = shalt.err (!%p7013_p2)
}
  0x64   : > { %s7017_s8 = scalar_lea.vmem %s308_s21, 16  ;;  %s7024_s19 = scalar_lea.vmem %s308_s21, 32 }
  0x65   : > { %p7018_p4 = scmp.ne.s32.totalorder %s308_s21, %s7017_s8  ;;  %p7025_p9 = scmp.lt.s32.totalorder %s308_s21, %s308_s21 }
  0x66   : > { %p7026_p10 = scmp.lt.s32.totalorder %s7024_s19, %s7017_s8 }
  0x67   : > { %p7020_p6 = pnand %p7018_p4, %p7429_p7 }
  0x68   : > { %p7027_p1 = por %p7026_p10, %p7025_p9 }
  0x69   : > { %p7021_p8 = pneg %p7020_p6 }
  0x6b   : > { %p7028_p3 = pnand %p7027_p1, %p7021_p8 }
  0x6d   : > { %7031 = shalt.err (!%p7028_p3)
}
  0x6e   : > { %6557 = dma.hbm_to_vmem [thread:$0]  (!%p7413_p5), %s8959_s5, 16, %s308_s21, [#allocation13]  }
  0x6f   : > { %s7301_s14 = smov [#allocation11]   ;;  %s7302_s26 = smov [#allocation14]  }
  0x70   : > { %s293_s25 = sshll.u32 %s7301_s14, 4  ;;  %s317_s18 = sshll.u32 %s7302_s26, 4  ;;  %s294_s25 = int_to_ptr.vmem [resolvable:$true] %s293_s25  ;;  %s318_s18 = int_to_ptr.vmem [resolvable:$true] %s317_s18 }
  0x71   : > { %s8960_s4 = sld [smem:[#allocation40_spill]] }
  0x77   : > { %s7032_s16 = scalar_lea.hbm %s8960_s4, 9216 }
  0x78   : > { %p7033_p1 = scmp.ne.s32.totalorder %s8960_s4, %s7032_s16  ;;  %p7039_p12 = scmp.lt.u32.totalorder %s7032_s16, %s8960_s4 }
  0x7a   : > { %p7035_p3 = pnand %p7033_p1, %p7429_p7 }
  0x7c   : > { %p7036_p11 = pneg %p7035_p3 }
  0x7e   : > { %p7041_p13 = pnand %p7039_p12, %p7036_p11 }
  0x80   : > { %7044 = shalt.err (!%p7041_p13)
}
  0x81   : > { %s7045_s21 = scalar_lea.vmem %s294_s25, 9216  ;;  %p7053_p6 = scmp.lt.s32.totalorder %s294_s25, %s294_s25 }
  0x82   : > { %p7046_p0 = scmp.ne.s32.totalorder %s294_s25, %s7045_s21  ;;  %p7054_p8 = scmp.lt.s32.totalorder %s7045_s21, %s7045_s21 }
  0x84   : > { %p7048_p2 = pnand %p7046_p0, %p7429_p7  ;;  %p7055_p9 = por %p7054_p8, %p7053_p6 }
  0x86   : > { %p7049_p4 = pneg %p7048_p2 }
  0x88   : > { %p7056_p10 = pnand %p7055_p9, %p7049_p4 }
  0x8a   : > { %7059 = shalt.err (!%p7056_p10)
}
  0x8b   : > { %s8961_s9 = smov 64   ;;  %s8962_s6 = sld [smem:[#allocation42_spill]] }
  0x8c   : > { %6554 = dma.hbm_to_vmem [thread:$0]  (!%p7413_p5), %s8960_s4, 9216, %s294_s25, [#allocation10], %s8961_s9, %s8961_s9, %s7300_s24  }
  0x91   : > { %s7060_s22 = scalar_lea.hbm %s8962_s6, 2048 }
  0x92   : > { %p7061_p1 = scmp.ne.s32.totalorder %s8962_s6, %s7060_s22  ;;  %p7067_p12 = scmp.lt.u32.totalorder %s7060_s22, %s8962_s6 }
  0x94   : > { %p7063_p3 = pnand %p7061_p1, %p7429_p7 }
  0x96   : > { %p7064_p11 = pneg %p7063_p3 }
  0x98   : > { %p7069_p13 = pnand %p7067_p12, %p7064_p11 }
  0x9a   : > { %7072 = shalt.err (!%p7069_p13)
}
  0x9b   : > { %s7073_s21 = scalar_lea.vmem %s318_s18, 2048  ;;  %p7081_p6 = scmp.lt.s32.totalorder %s318_s18, %s318_s18 }
  0x9c   : > { %p7074_p0 = scmp.ne.s32.totalorder %s318_s18, %s7073_s21  ;;  %p7082_p8 = scmp.lt.s32.totalorder %s7073_s21, %s7073_s21 }
  0x9e   : > { %p7076_p2 = pnand %p7074_p0, %p7429_p7  ;;  %p7083_p9 = por %p7082_p8, %p7081_p6 }
  0xa0   : > { %p7077_p4 = pneg %p7076_p2 }
  0xa2   : > { %p7084_p10 = pnand %p7083_p9, %p7077_p4 }
  0xa4   : > { %7087 = shalt.err (!%p7084_p10)
}
  0xa5   : > { %s8935_s24 = smov 128   ;;  %s8937_s25 = smov 8  }
  0xa6   : > { %6560 = dma.hbm_to_vmem [thread:$0]  (!%p7413_p5), %s8962_s6, 2048, %s318_s18, [#allocation13], %s8935_s24, %s8935_s24, %s8937_s25  }
  0xa7   : > { %s7305_s14 = smov [#allocation15]   ;;  %s8963_s7 = sld [smem:[#allocation43_spill]] }
  0xa8   : > { %s331_s26 = sshll.u32 %s7305_s14, 4  ;;  %s332_s26 = int_to_ptr.vmem [resolvable:$true] %s331_s26 }
  0xad   : > { %s7088_s16 = scalar_lea.hbm %s8963_s7, 32 }
  0xae   : > { %p7089_p1 = scmp.ne.s32.totalorder %s8963_s7, %s7088_s16  ;;  %p7095_p12 = scmp.lt.u32.totalorder %s7088_s16, %s8963_s7 }
  0xb0   : > { %p7091_p3 = pnand %p7089_p1, %p7429_p7 }
  0xb2   : > { %p7092_p11 = pneg %p7091_p3 }
  0xb4   : > { %p7097_p13 = pnand %p7095_p12, %p7092_p11 }
  0xb6   : > { %7100 = shalt.err (!%p7097_p13)
}
  0xb7   : > { %s7101_s18 = scalar_lea.vmem %s332_s26, 32  ;;  %p7109_p6 = scmp.lt.s32.totalorder %s332_s26, %s332_s26 }
  0xb8   : > { %p7102_p0 = scmp.ne.s32.totalorder %s332_s26, %s7101_s18  ;;  %p7110_p8 = scmp.lt.s32.totalorder %s7101_s18, %s7101_s18 }
  0xba   : > { %p7104_p2 = pnand %p7102_p0, %p7429_p7  ;;  %p7111_p9 = por %p7110_p8, %p7109_p6 }
  0xbc   : > { %p7105_p4 = pneg %p7104_p2 }
  0xbe   : > { %p7112_p10 = pnand %p7111_p9, %p7105_p4 }
  0xc0   : > { %7115 = shalt.err (!%p7112_p10)
}
  0xc1   : > { %6563 = dma.hbm_to_vmem [thread:$0]  (!%p7413_p5), %s8963_s7, 32, %s332_s26, [#allocation16]  }
  0xc2   : > { %s5406_s15 = sadd.s32 4294967294, %s7294_s12   ;;  %s39_s14 = sadd.s32 1, %s7286_s10 }
  0xc3   : > { %p40_p7 = scmp.ge.s32.totalorder %s39_s14, 4  ;;  %s42_s17 = sadd.s32 1, %s7290_s11 }
  0xc4   : > { %s51_s20 = sadd.s32 1, %s7274_s29  ;;  %p58_p1 = scmp.ne.s32.totalorder %s7274_s29, %s7270_s28 }
  0xc5   : > { %s9018_s14 = smov (%p40_p7, %s39_s14), 0  ;;  %s9020_s17 = smov (!%p40_p7, %s42_s17), %s7290_s11 }
  0xc6   : > { %s47_s22 = ssub.s32 %s7286_s10, %s9018_s14  ;;  %p59_p3 = scmp.eq.s32.totalorder %s7294_s12, 0 }
  0xc7   : > { %p44_p11 = scmp.ge.s32.totalorder %s9020_s17, 2  ;;  %p64_p5 = scmp.ne.s32.totalorder %s7270_s28, %s7266_s27 }
  0xc8   : > { %p7570_p12 = por %p59_p3, %p58_p1  ;;  %p244_p13 = scmp.eq.s32.totalorder %s7398_s13, 7 }
  0xc9   : > { %s9022_s17 = smov (%p44_p11, %s9020_s17), 0  ;;  %p8966_p0 = scmp.eq.s32.totalorder %s7398_s13, 0 }
  0xca   : > { %8965 = sst [smem:[#allocation28_spill]] %s9022_s17  ;;  %p7583_p4 = por %p244_p13, %p58_p1 }
  0xcb   : > { %p7579_p2 = por %p8966_p0, %p64_p5  ;;  %s46_s19 = ssub.s32 %s7290_s11, %s9022_s17 }
  0xcc   : > { %s8968_s8 = scalar_select %p7583_p4, 1, 0 }
  0xcd   : > { %p250_p6 = scmp.eq.s32.totalorder %s5406_s15, 7  ;;  %s48_s30 = sor.u32 %s47_s22, %s46_s19 }
  0xce   : > { %p6581_p8 = scmp.lt.s32.totalorder %s7294_s12, 8  ;;  %p49_p9 = scmp.eq.s32.totalorder %s48_s30, 0 }
  0xcf   : > { %p7590_p10 = por %p250_p6, %p64_p5  ;;  %s7595_s18 = sand.u32 1, %s7274_s29  }
  0xd0   : > { %s5769_s9 = sshll.u32 %s7286_s10, 6  ;;  %s5415_s24 = sshll.u32 %s7595_s18, 8 }
  0xd1   : > { %s8969_s21 = scalar_select %p7590_p10, 1, 0 }
  0xd2   : > { %s7599_s23 = scalar_select %p49_p9, %s7274_s29, %s51_s20  }
  0xd3   : > { %s5418_s15 = sshll.u32 %s7290_s11, 8  ;;  %s346_s2 = scalar_lea.vmem [#allocation3], %s5415_s24 }
  0xd4   : > { %s353_s25 = sadd.s32 %s5769_s9, %s5418_s15  ;;  %s356_s22 = sshll.u32 %s346_s2, 4  ;;  %s7603_s22 = int_to_ptr.vmem [resolvable:$true] %s356_s22 }
  0xd5   : > { %s5419_s19 = sshll.u32 %s353_s25, 6  ;;  %s8970_s0 = sld [smem:[#allocation37_spill]] }
  0xd6   : > { %p7614_p7 = pnand %p6581_p8, %p7570_p12  ;;  %s5420_s24 = sshll.u32 %s7595_s18, 6 }
  0xd7   : > { %s343_s25 = scalar_lea.sflag [#allocation4], %s7595_s18 }
  0xd8   : > { %p7118_p3 = pneg %p7614_p7 }
  0xdb   : > { %s7608_s4 = scalar_lea.hbm %s8970_s0, %s5419_s19  ;;  %s7121_s15 = scalar_lea.hbm %s8970_s0, 32768 }
  0xdc   : > { %s7116_s9 = scalar_lea.hbm %s7608_s4, 4096  ;;  %p7122_p12 = scmp.lt.u32.totalorder %s7608_s4, %s8970_s0 }
  0xdd   : > { %p7117_p1 = scmp.ne.s32.totalorder %s7608_s4, %s7116_s9  ;;  %p7123_p13 = scmp.lt.u32.totalorder %s7121_s15, %s7116_s9 }
  0xde   : > { %p7125_p6 = scmp.lt.u32.totalorder %s7116_s9, %s7608_s4 }
  0xdf   : > { %p7119_p11 = pnand %p7118_p3, %p7117_p1  ;;  %p7124_p0 = por %p7123_p13, %p7122_p12 }
  0xe1   : > { %p7120_p5 = pneg %p7119_p11  ;;  %p7126_p8 = por %p7125_p6, %p7124_p0 }
  0xe3   : > { %p7127_p9 = pnand %p7126_p8, %p7120_p5 }
  0xe5   : > { %7130 = shalt.err (!%p7127_p9)
}
  0xe6   : > { %s7131_s2 = scalar_lea.vmem %s7603_s22, 4096  ;;  %s7306_s3 = smov [#allocation3]  }
  0xe7   : > { %p7132_p1 = scmp.ne.s32.totalorder %s7603_s22, %s7131_s2  ;;  %s7136_s26 = sshll.u32 %s7306_s3, 4  ;;  %s7137_s26 = int_to_ptr.vmem [resolvable:$false] %s7136_s26 }
  0xe8   : > { %s7138_s19 = scalar_lea.vmem %s7137_s26, 8192  ;;  %p7139_p4 = scmp.lt.s32.totalorder %s7603_s22, %s7137_s26 }
  0xe9   : > { %p7134_p11 = pnand %p7132_p1, %p7118_p3  ;;  %p7140_p12 = scmp.lt.s32.totalorder %s7138_s19, %s7131_s2 }
  0xeb   : > { %p7135_p10 = pneg %p7134_p11  ;;  %p7141_p13 = por %p7140_p12, %p7139_p4 }
  0xed   : > { %p7142_p0 = pnand %p7141_p13, %p7135_p10 }
  0xef   : > { %7145 = shalt.err (!%p7142_p0)
}
  0xf0   : > { %s8972_s9 = smov 8   ;;  %s8973_s15 = smov 128  }
  0xf1   : > { %6567 = dma.hbm_to_vmem [thread:$0]  (!%p7614_p7), %s7608_s4, 4096, %s7603_s22, %s343_s25, %s8973_s15, %s8973_s15, %s8972_s9  }
  0xf2   : > { %s5421_s30 = sshll.u32 %s7286_s10, 4  ;;  %s5422_s2 = sshll.u32 %s7290_s11, 6 }
  0xf3   : > { %s370_s3 = scalar_lea.vmem [#allocation6], %s5420_s24  ;;  %s376_s19 = sadd.s32 %s5422_s2, %s5421_s30 }
  0xf4   : > { %s379_s26 = sshll.u32 %s370_s3, 4  ;;  %s5423_s0 = sshll.u32 %s376_s19, 6  ;;  %s7655_s26 = int_to_ptr.vmem [resolvable:$true] %s379_s26 }
  0xf5   : > { %s7660_s7 = scalar_lea.hbm %s8921_s1, %s5423_s0  ;;  %s8974_s17 = sand.u32 1, %s7294_s12  }
  0xf6   : > { %s7664_s4 = scalar_lea.sflag [#allocation7], %s8974_s17  ;;  %s7146_s22 = scalar_lea.hbm %s7660_s7, 1024 }
  0xf7   : > { %p7147_p4 = scmp.ne.s32.totalorder %s7660_s7, %s7146_s22  ;;  %s7151_s25 = scalar_lea.hbm %s8921_s1, 8192 }
  0xf8   : > { %p7152_p6 = scmp.lt.u32.totalorder %s7660_s7, %s8921_s1  ;;  %p7153_p8 = scmp.lt.u32.totalorder %s7151_s25, %s7146_s22 }
  0xf9   : > { %p7149_p10 = pnand %p7147_p4, %p7118_p3  ;;  %p7155_p1 = scmp.lt.u32.totalorder %s7146_s22, %s7660_s7 }
  0xfa   : > { %p7154_p9 = por %p7153_p8, %p7152_p6 }
  0xfb   : > { %p7150_p5 = pneg %p7149_p10 }
  0xfc   : > { %p7156_p11 = por %p7155_p1, %p7154_p9 }
  0xfe   : > { %p7157_p12 = pnand %p7156_p11, %p7150_p5 }
 0x100   : > { %7160 = shalt.err (!%p7157_p12)
}
 0x101   : > { %s7161_s6 = scalar_lea.vmem %s7655_s26, 1024  ;;  %s7307_s17 = smov [#allocation6]  }
 0x102   : > { %p7162_p13 = scmp.ne.s32.totalorder %s7655_s26, %s7161_s6  ;;  %s7166_s30 = sshll.u32 %s7307_s17, 4  ;;  %s7167_s30 = int_to_ptr.vmem [resolvable:$false] %s7166_s30 }
 0x103   : > { %s7168_s2 = scalar_lea.vmem %s7167_s30, 2048  ;;  %p7169_p10 = scmp.lt.s32.totalorder %s7655_s26, %s7167_s30 }
 0x104   : > { %p7164_p0 = pnand %p7162_p13, %p7118_p3  ;;  %p7170_p6 = scmp.lt.s32.totalorder %s7168_s2, %s7161_s6 }
 0x106   : > { %p7165_p4 = pneg %p7164_p0  ;;  %p7171_p8 = por %p7170_p6, %p7169_p10 }
 0x108   : > { %p7172_p9 = pnand %p7171_p8, %p7165_p4 }
 0x10a   : > { %7175 = shalt.err (!%p7172_p9)
}
 0x10b   : > { %6570 = dma.hbm_to_vmem [thread:$0]  (!%p7614_p7), %s7660_s7, 1024, %s7655_s26, %s7664_s4, %s8973_s15, %s8973_s15, %s8972_s9  }
 0x10c   : > { %s8975_s3 = sld [smem:[#allocation27_spill]] }
 0x112   : > { %p8976_p3 = scmp.ne.s32.totalorder %s8975_s3, 0 }
 0x114   : > { %391 = sbr.rel (%p8976_p3) target bundleno = 1601 (0x641), region = 52 }
 0x11b   : > { %s7696_s19 = sand.u32 1, %s7270_s28  }
 0x11c   : > { %s5425_s22 = sshll.u32 %s7696_s19, 8  ;;  %s394_s18 = scalar_lea.sflag [#allocation4], %s7696_s19 }
 0x11d   : > { %s7702_s20 = scalar_lea.vmem [#allocation3], %s5425_s22 }
 0x11e   : > { %7237 = dma.done.wait (%p7579_p2), %s394_s18, 4096  }
 0x11f   : > { %7239 = vsyncadd (%p7579_p2), %s394_s18, 4294963200  ;;  %s402_s7 = sand.u32 1, %s7398_s13   ;;  %s5426_s9 = sshll.u32 %s7696_s19, 6 }
 0x120   : > { %s403_s15 = scalar_lea.sflag [#allocation7], %s402_s7  ;;  %s7710_s26 = scalar_lea.vmem [#allocation6], %s5426_s9 }
 0x121   : > { %7241 = dma.done.wait (%p7579_p2), %s403_s15, 1024  }
 0x122   : > { %7243 = vsyncadd (%p7579_p2), %s403_s15, 4294966272  ;;  %p8977_p7 = scmp.eq.s32.totalorder %s7398_s13, 0 }
 0x124   : > { %7245 = dma.done.wait (%p8977_p7), [#allocation7], 2048   ;;  %p8978_p5 = pmov %p8977_p7 }
 0x126   : > { %7247 = vsyncadd (%p8978_p5), [#allocation7], 4294965248  ;;  %p8979_p1 = pmov %p8978_p5 }
 0x128   : > { %7249 = dma.done.wait (%p8979_p1), [#allocation10], 9232   ;;  %p8980_p11 = pmov %p8979_p1 }
 0x129   : > { %p8981_p12 = pmov %p8979_p1 }
 0x12a   : > { %7251 = vsyncadd (%p8980_p11), [#allocation10], 4294958064 }
 0x12b   : > { %7253 = dma.done.wait (%p8981_p12), [#allocation13], 2064   ;;  %p8982_p13 = pmov %p8979_p1 }
 0x12c   : > { %p8983_p2 = pmov %p8979_p1 }
 0x12d   : > { %7255 = vsyncadd (%p8982_p13), [#allocation13], 4294965232 }
 0x12e   : > { %7257 = dma.done.wait (%p8983_p2), [#allocation16], 32   ;;  %p8984_p0 = pmov %p8979_p1 }
 0x12f   : > { %v8941_v0 = vmov 0   ;;  %v6666_v1 = vld [vmem:[#allocation8] sm:$0xff]   ;;  %v6667_v2 = vld [vmem:[#allocation8 + $0x8] sm:$0xff]   ;;  %v6668_v3 = vld [vmem:[#allocation8 + $0x10] sm:$0xff]   ;;  %s8985_s13 = sld [smem:[#allocation25_spill]]  ;;  %vm1287_vm1 = vcmask 1040384  }
 0x130   : > { %7259 = vsyncadd (%p8984_p0), [#allocation16], 4294967264  ;;  %847 = vmatprep.subr.bf16.mxu0 %v8941_v0  ;;  %v6669_v4 = vld [vmem:[#allocation8 + $0x18] sm:$0xff]   ;;  %v6670_v5 = vld [vmem:[#allocation8 + $0x20] sm:$0xff]   ;;  %vm1116_vm0 = vsmask.f32 256 }
 0x131   : > { %848 = vmatpush1.bf16.msra.mxu0 %v6666_v1  ;;  %v6684_v6 = vld [vmem:[%s7710_s26 + $0x4] ss:$8 sps:$4 sm:$0xff]   ;;  %v6672_v8 = vld [vmem:[#allocation8 + $0x30] sm:$0xff]   ;;  %v6673_v9 = vld [vmem:[#allocation8 + $0x38] sm:$0xff]   ;;  %vm1697_vm3 = vsmask.f32 7424 }
 0x132   : > { %849 = vmatprep.subr.bf16.mxu0 %v8941_v0  ;;  %v6671_v7 = vld [vmem:[#allocation8 + $0x28] sm:$0xff]   ;;  %879 = vmatprep.mubr.bf16.mxu0 %v6684_v6  ;;  %v6674_v10 = vld [vmem:[#allocation8 + $0x40] sm:$0xff]   ;;  %v6676_v12 = vld [vmem:[#allocation8 + $0x50] sm:$0xff]   ;;  %vm1898_vm4 = vcmask 1046528   ;;  %s8737_s5 = scalar_lea.vmem [#allocation17], %s5425_s22  ;;  %s9005_s0 = sld [smem:[#allocation26_spill]] }
 0x133   : > { %v6675_v11 = vld [vmem:[#allocation8 + $0x48] sm:$0xff]   ;;  %v6677_v13 = vld [vmem:[#allocation8 + $0x58] sm:$0xff]   ;;  %v6678_v14 = vld [vmem:[#allocation8 + $0x60] sm:$0xff]   ;;  %s5232_s2 = sshll.u32 %s8737_s5, 4  ;;  %s5216_s9 = scalar_lea.sflag [#allocation5], %s7696_s19  ;;  %s8859_s2 = int_to_ptr.vmem [resolvable:$true] %s5232_s2 }
 0x134   : > { %v6679_v15 = vld [vmem:[#allocation8 + $0x68] sm:$0xff]   ;;  %v6680_v16 = vld [vmem:[#allocation8 + $0x70] sm:$0xff]   ;;  %v6681_v17 = vld [vmem:[#allocation8 + $0x78] sm:$0xff]   ;;  %s7176_s15 = scalar_lea.vmem %s8859_s2, 4096  ;;  %p9007_p8 = scmp.ne.s32.totalorder %s8968_s8, 0 }
 0x135   : > { %850 = vmatpush1.bf16.msra.mxu0 %v6667_v2  ;;  %v6682_v18 = vld [vmem:[%s7710_s26] ss:$8 sps:$4 sm:$0xff]   ;;  %v6685_v19 = vld [vmem:[%s7710_s26 + $0x14] ss:$8 sps:$4 sm:$0xff]   ;;  %v6687_v20 = vld [vmem:[%s7710_s26 + $0x10] ss:$8 sps:$4 sm:$0xff]   ;;  %p7177_p6 = scmp.ne.s32.totalorder %s8859_s2, %s7176_s15 }
 0x136   : > { %851 = vmatprep.subr.bf16.mxu0 %v8941_v0  ;;  %v6688_v21 = vld [vmem:[%s7702_s20 + $0x4] ss:$8 sps:$4 sm:$0xff]   ;;  %v6690_v22 = vld [vmem:[%s7702_s20] ss:$8 sps:$4 sm:$0xff]   ;;  %v6691_v23 = vld [vmem:[%s7702_s20 + $0x14] ss:$8 sps:$4 sm:$0xff]  }
 0x137   : > { %v6693_v24 = vld [vmem:[%s7702_s20 + $0x10] ss:$8 sps:$4 sm:$0xff]   ;;  %v6694_v25 = vld [vmem:[%s7702_s20 + $0x24] ss:$8 sps:$4 sm:$0xff]   ;;  %v6696_v26 = vld [vmem:[%s7702_s20 + $0x20] ss:$8 sps:$4 sm:$0xff]   ;;  %p7178_p9 = pnand %p7177_p6, %p9007_p8 }
 0x138   : > { %v6697_v27 = vld [vmem:[%s7702_s20 + $0x34] ss:$8 sps:$4 sm:$0xff]   ;;  %v6699_v28 = vld [vmem:[%s7702_s20 + $0x30] ss:$8 sps:$4 sm:$0xff]   ;;  %v6700_v29 = vld [vmem:[%s7702_s20 + $0x44] ss:$8 sps:$4 sm:$0xff]  }
 0x139   : > { %852 = vmatpush1.bf16.msra.mxu0 %v6668_v3  ;;  %v6702_v30 = vld [vmem:[%s7702_s20 + $0x40] ss:$8 sps:$4 sm:$0xff]   ;;  %v6703_v31 = vld [vmem:[%s7702_s20 + $0x54] ss:$8 sps:$4 sm:$0xff]   ;;  %v6705_v32 = vld [vmem:[%s7702_s20 + $0x50] ss:$8 sps:$4 sm:$0xff]   ;;  %p7179_p3 = pneg %p7178_p9 }
 0x13a   : > { %853 = vmatprep.subr.bf16.mxu0 %v8941_v0  ;;  %v6706_v33 = vld [vmem:[%s7702_s20 + $0x64] ss:$8 sps:$4 sm:$0xff]   ;;  %v6708_v34 = vld [vmem:[%s7702_s20 + $0x60] ss:$8 sps:$4 sm:$0xff]   ;;  %v6709_v35 = vld [vmem:[%s7702_s20 + $0x74] ss:$8 sps:$4 sm:$0xff]  }
 0x13b   : > { %v6711_v36 = vld [vmem:[%s7702_s20 + $0x70] ss:$8 sps:$4 sm:$0xff]   ;;  %v6712_v37 = vld [vmem:[%s7702_s20 + $0x84] ss:$8 sps:$4 sm:$0xff]   ;;  %v6714_v38 = vld [vmem:[%s7702_s20 + $0x80] ss:$8 sps:$4 sm:$0xff]  }
 0x13c   : > { %v6715_v39 = vld [vmem:[%s7702_s20 + $0x94] ss:$8 sps:$4 sm:$0xff]   ;;  %v6717_v40 = vld [vmem:[%s7702_s20 + $0x90] ss:$8 sps:$4 sm:$0xff]   ;;  %v6718_v41 = vld [vmem:[%s7702_s20 + $0xa4] ss:$8 sps:$4 sm:$0xff]  }
 0x13d   : > { %854 = vmatpush1.bf16.msra.mxu0 %v6669_v4  ;;  %v6720_v42 = vld [vmem:[%s7702_s20 + $0xa0] ss:$8 sps:$4 sm:$0xff]   ;;  %v6721_v44 = vld [vmem:[%s7702_s20 + $0xb4] ss:$8 sps:$4 sm:$0xff]   ;;  %v6723_v48 = vld [vmem:[%s7702_s20 + $0xb0] ss:$8 sps:$4 sm:$0xff]  }
 0x13e   : > { %855 = vmatprep.subr.bf16.mxu0 %v8941_v0  ;;  %v6736_v43 = vld [vmem:[#allocation11 + $0x40] sm:$0xff]   ;;  %v6738_v46 = vld [vmem:[#allocation11 + $0x48] sm:$0xff]   ;;  %v6740_v49 = vld [vmem:[#allocation11 + $0x50] sm:$0xff]   ;;  %p1080_p4 = scmp.gt.s32.totalorder %s8985_s13, 0  ;;  %p1083_p10 = scmp.lt.s32.totalorder %s8985_s13, 3 }
 0x13f   : > { %v6737_v45 = vld [vmem:[#allocation11] sm:$0xff]   ;;  %v6739_v47 = vld [vmem:[#allocation11 + $0x8] sm:$0xff]   ;;  %v6741_v51 = vld [vmem:[#allocation11 + $0x10] sm:$0xff]   ;;  %s5802_s6 = sshll.u32 %s8985_s13, 6  ;;  %s5765_s17 = sshll.u32 %s9005_s0, 8 }
 0x140   : > { %v6724_v50 = vld [vmem:[%s7702_s20 + $0xc4] ss:$8 sps:$4 sm:$0xff]   ;;  %v6742_v52 = vld [vmem:[#allocation11 + $0x58] sm:$0xff]   ;;  %v6754_v1 = vld [vmem:[#allocation11 + $0x110] sm:$0xff]   ;;  %s1081_s16 = scalar_select %p1080_p4, 1, 0 }
 0x141   : > { %856 = vmatpush1.bf16.msra.mxu0 %v6670_v5  ;;  %v6744_v53 = vld [vmem:[#allocation11 + $0x18] sm:$0xff]   ;;  %v6743_v54 = vld [vmem:[#allocation11 + $0x100] sm:$0xff]   ;;  %v6750_v60 = vld [vmem:[#allocation11 + $0x108] sm:$0xff]   ;;  %s8175_s24 = scalar_select %p1083_p10, 1, 0 }
 0x142   : > { %857 = vmatprep.subr.bf16.mxu0 %v8941_v0  ;;  %v6745_v55 = vld [vmem:[#allocation11 + $0xc0] sm:$0xff]   ;;  %5803 = vmatprep.subr.bf16.mxu1 %v6743_v54  ;;  %v6727_v58 = vld [vmem:[%s7702_s20 + $0xd4] ss:$8 sps:$4 sm:$0xff]   ;;  %v6752_v61 = vld [vmem:[#allocation11 + $0xc8] sm:$0xff]   ;;  %s1082_s4 = scvt.s32.f32 %s1081_s16  ;;  %s5229_s30 = sadd.s32 %s5802_s6, %s5765_s17 }
 0x143   : > { %v6726_v56 = vld [vmem:[%s7702_s20 + $0xc0] ss:$8 sps:$4 sm:$0xff]   ;;  %5804 = vmatpush3.bf16.msra.mxu1 %v6745_v55  ;;  %v6756_v2 = vld [vmem:[#allocation11 + $0xd0] sm:$0xff]   ;;  %v6730_v5 = vld [vmem:[%s7702_s20 + $0xe4] ss:$8 sps:$4 sm:$0xff]   ;;  %s1085_s25 = scvt.s32.f32 %s8175_s24  ;;  %s5766_s3 = sshll.u32 %s5229_s30, 6 }
 0x144   : > { %v6749_v57 = vld [vmem:[#allocation11 + $0x60] sm:$0xff]   ;;  %5805 = vmatprep.subr.bf16.mxu1 %v6750_v60  ;;  %v6753_v62 = vld [vmem:[#allocation11 + $0x68] sm:$0xff]   ;;  %v6760_v4 = vld [vmem:[#allocation11 + $0x70] sm:$0xff]  }
 0x145   : > { %858 = vmatpush1.bf16.msra.mxu0 %v6671_v7  ;;  %v6751_v59 = vld [vmem:[#allocation11 + $0x20] sm:$0xff]   ;;  %v6755_v63 = vld [vmem:[#allocation11 + $0x28] sm:$0xff]   ;;  %v6762_v6 = vld [vmem:[#allocation11 + $0x30] sm:$0xff]  }
 0x146   : > { %859 = vmatprep.subr.bf16.mxu0 %v8941_v0  ;;  %v6729_v3 = vld [vmem:[%s7702_s20 + $0xd0] ss:$8 sps:$4 sm:$0xff]   ;;  %vm7799_vm2 = vmand %vm1287_vm1, %vm1116_vm0 }
 0x147   : > { %5806 = vmatpush3.bf16.msra.mxu1 %v6752_v61  ;;  %v6761_v7 = vld [vmem:[#allocation11 + $0x118] sm:$0xff]  }
 0x148   : > { %5807 = vmatprep.subr.bf16.mxu1 %v6754_v1 }
 0x149   : > { %860 = vmatpush1.bf16.msra.mxu0 %v6672_v8  ;;  %v6763_v8 = vld [vmem:[#allocation11 + $0xd8] sm:$0xff]  }
 0x14a   : > { %861 = vmatprep.subr.bf16.mxu0 %v8941_v0 }
 0x14b   : > { %5808 = vmatpush3.bf16.msra.mxu1 %v6756_v2 }
 0x14c   : > { %5809 = vmatprep.subr.bf16.mxu1 %v6761_v7 }
 0x14d   : > { %862 = vmatpush1.bf16.msra.mxu0 %v6673_v9  ;;  %v6764_v9 = vld [vmem:[#allocation11 + $0x78] sm:$0xff]  }
 0x14e   : > { %863 = vmatprep.subr.bf16.mxu0 %v8941_v0 }
 0x14f   : > { %5810 = vmatpush3.bf16.msra.mxu1 %v6763_v8 }
 0x151   : > { %864 = vmatpush1.bf16.msra.mxu0 %v6674_v10  ;;  %v6766_v10 = vld [vmem:[#allocation11 + $0x38] sm:$0xff]  }
 0x152   : > { %865 = vmatprep.subr.bf16.mxu0 %v8941_v0 }
 0x155   : > { %866 = vmatpush1.bf16.msra.mxu0 %v6675_v11  ;;  %v6765_v11 = vld [vmem:[#allocation11 + $0x120] sm:$0xff]  }
 0x156   : > { %867 = vmatprep.subr.bf16.mxu0 %v8941_v0  ;;  %5811 = vmatprep.subr.bf16.mxu1 %v6765_v11 }
 0x159   : > { %868 = vmatpush1.bf16.msra.mxu0 %v6676_v12  ;;  %v6767_v12 = vld [vmem:[#allocation11 + $0xe0] sm:$0xff]  }
 0x15a   : > { %869 = vmatprep.subr.bf16.mxu0 %v8941_v0  ;;  %5812 = vmatpush3.bf16.msra.mxu1 %v6767_v12 }
 0x15d   : > { %870 = vmatpush1.bf16.msra.mxu0 %v6677_v13  ;;  %v6732_v13 = vld [vmem:[%s7702_s20 + $0xe0] ss:$8 sps:$4 sm:$0xff]  }
 0x15e   : > { %871 = vmatprep.subr.bf16.mxu0 %v8941_v0 }
 0x161   : > { %872 = vmatpush1.bf16.msra.mxu0 %v6678_v14  ;;  %v6733_v14 = vld [vmem:[%s7702_s20 + $0xf4] ss:$8 sps:$4 sm:$0xff]  }
 0x162   : > { %873 = vmatprep.subr.bf16.mxu0 %v8941_v0 }
 0x165   : > { %874 = vmatpush1.bf16.msra.mxu0 %v6679_v15  ;;  %v6770_v15 = vld [vmem:[#allocation11 + $0x128] sm:$0xff]  }
 0x166   : > { %875 = vmatprep.subr.bf16.mxu0 %v8941_v0  ;;  %5813 = vmatprep.subr.bf16.mxu1 %v6770_v15 }
 0x169   : > { %876 = vmatpush1.bf16.msra.mxu0 %v6680_v16  ;;  %v6772_v16 = vld [vmem:[#allocation11 + $0xe8] sm:$0xff]  }
 0x16a   : > { %877 = vmatprep.subr.bf16.mxu0 %v8941_v0  ;;  %5814 = vmatpush3.bf16.msra.mxu1 %v6772_v16 }
 0x16d   : > { %878 = vmatpush1.bf16.msra.mxu0 %v6681_v17  ;;  %v6773_v17 = vld [vmem:[#allocation11 + $0x130] sm:$0xff]  }
 0x16e   : > { %5939 = vmatprep.subr.bf16.mxu0 %v6736_v43  ;;  %5815 = vmatprep.subr.bf16.mxu1 %v6773_v17 }
 0x170   : > { %880 = vmatmul.mubr.bf16.vlgmr.msra.gmra.mrb[0].mxu0 %v6682_v18  ;;  %v6735_v18 = vld [vmem:[%s7702_s20 + $0xf0] ss:$8 sps:$4 sm:$0xff]  }
 0x171   : > { %887 = vmatprep.mubr.bf16.mxu0 %v6685_v19  ;;  %5940 = vmatpush3.bf16.msra.mxu0 %v6737_v45  ;;  %v6774_v19 = vld [vmem:[#allocation11 + $0xf0] sm:$0xff]  }
 0x172   : > { %5941 = vmatprep.subr.bf16.mxu0 %v6738_v46  ;;  %5816 = vmatpush3.bf16.msra.mxu1 %v6774_v19 }
 0x175   : > { %5942 = vmatpush3.bf16.msra.mxu0 %v6739_v47 }
 0x176   : > { %5943 = vmatprep.subr.bf16.mxu0 %v6740_v49 }
 0x178   : > { %888 = vmatmul.mubr.bf16.gmra.mrb[4].mxu0 %v6687_v20  ;;  %v6746_v20 = vld [vmem:[%s7710_s26 + $0x24] ss:$8 sps:$4 sm:$0xff]  }
 0x179   : > { %895 = vmatprep.mubr.bf16.mxu0 %v6688_v21  ;;  %5944 = vmatpush3.bf16.msra.mxu0 %v6741_v51  ;;  %v6775_v21 = vld [vmem:[#allocation11 + $0x138] sm:$0xff]  }
 0x17a   : > { %5945 = vmatprep.subr.bf16.mxu0 %v6742_v52  ;;  %5817 = vmatprep.subr.bf16.mxu1 %v6775_v21 }
 0x17d   : > { %5946 = vmatpush3.bf16.msra.mxu0 %v6744_v53 }
 0x17e   : > { %5947 = vmatprep.subr.bf16.mxu0 %v6749_v57 }
 0x180   : > { %896 = vmatmul.mubr.bf16.gmra.mrb[8].mxu0 %v6690_v22  ;;  %v6776_v22 = vld [vmem:[#allocation11 + $0xf8] sm:$0xff]  }
 0x181   : > { %903 = vmatprep.mubr.bf16.mxu0 %v6691_v23  ;;  %5948 = vmatpush3.bf16.msra.mxu0 %v6751_v59  ;;  %v6748_v23 = vld [vmem:[%s7710_s26 + $0x20] ss:$8 sps:$4 sm:$0xff]  }
 0x182   : > { %5949 = vmatprep.subr.bf16.mxu0 %v6753_v62  ;;  %5818 = vmatpush3.bf16.msra.mxu1 %v6776_v22 }
 0x185   : > { %5950 = vmatpush3.bf16.msra.mxu0 %v6755_v63 }
 0x186   : > { %5951 = vmatprep.subr.bf16.mxu0 %v6760_v4 }
 0x188   : > { %904 = vmatmul.mubr.bf16.gmra.mrb[12].mxu0 %v6693_v24  ;;  %v6757_v24 = vld [vmem:[%s7710_s26 + $0x34] ss:$8 sps:$4 sm:$0xff]  }
 0x189   : > { %911 = vmatprep.mubr.bf16.mxu0 %v6694_v25  ;;  %5952 = vmatpush3.bf16.msra.mxu0 %v6762_v6  ;;  %v6759_v25 = vld [vmem:[%s7710_s26 + $0x30] ss:$8 sps:$4 sm:$0xff]   ;;  %s7309_s26 = smov [#allocation17]  }
 0x18a   : > { %5953 = vmatprep.subr.bf16.mxu0 %v6764_v9  ;;  %s7180_s13 = sshll.u32 %s7309_s26, 4  ;;  %s7181_s13 = int_to_ptr.vmem [resolvable:$false] %s7180_s13 }
 0x18b   : > { %s7182_s16 = scalar_lea.vmem %s7181_s13, 8192  ;;  %p7183_p7 = scmp.lt.s32.totalorder %s8859_s2, %s7181_s13 }
 0x18c   : > { %p7184_p5 = scmp.lt.s32.totalorder %s7182_s16, %s7176_s15 }
 0x18d   : > { %5954 = vmatpush3.bf16.msra.mxu0 %v6766_v10 }
 0x18e   : > { %p7185_p1 = por %p7184_p5, %p7183_p7 }
 0x190   : > { %912 = vmatmul.mubr.bf16.gmra.mrb[16].mxu0 %v6696_v26  ;;  %v7788_v26 = vld [vmem:[#allocation11 + $0x140] sm:$0xff]   ;;  %p7186_p11 = pnand %p7185_p1, %p7179_p3 }
 0x191   : > { %919 = vmatprep.mubr.bf16.mxu0 %v6697_v27  ;;  %6211 = vmatprep.subr.bf16.mxu1 %v7788_v26  ;;  %v7792_v27 = vld [vmem:[#allocation9] ss:$0 sm:$0xff] }
 0x198   : > { %920 = vmatmul.mubr.bf16.gmra.mrb[20].mxu0 %v6699_v28 }
 0x199   : > { %927 = vmatprep.mubr.bf16.mxu0 %v6700_v29 }
 0x1a0   : > { %928 = vmatmul.mubr.bf16.gmra.mrb[24].mxu0 %v6702_v30 }
 0x1a1   : > { %935 = vmatprep.mubr.bf16.mxu0 %v6703_v31 }
 0x1a8   : > { %936 = vmatmul.mubr.bf16.gmra.mrb[28].mxu0 %v6705_v32 }
 0x1a9   : > { %943 = vmatprep.mubr.bf16.mxu0 %v6706_v33 }
 0x1b0   : > { %944 = vmatmul.mubr.bf16.gmra.mrb[32].mxu0 %v6708_v34 }
 0x1b1   : > { %951 = vmatprep.mubr.bf16.mxu0 %v6709_v35  ;;  %v1086_v35 = vstv %s1082_s4 }
 0x1b8   : > { %952 = vmatmul.mubr.bf16.gmra.mrb[36].mxu0 %v6711_v36 }
 0x1b9   : > { %959 = vmatprep.mubr.bf16.mxu0 %v6712_v37 }
 0x1c0   : > { %960 = vmatmul.mubr.bf16.gmra.mrb[40].mxu0 %v6714_v38 }
 0x1c1   : > { %967 = vmatprep.mubr.bf16.mxu0 %v6715_v39 }
 0x1c8   : > { %968 = vmatmul.mubr.bf16.gmra.mrb[44].mxu0 %v6717_v40 }
 0x1c9   : > { %975 = vmatprep.mubr.bf16.mxu0 %v6718_v41 }
 0x1d0   : > { %976 = vmatmul.mubr.bf16.gmra.mrb[48].mxu0 %v6720_v42 }
 0x1d1   : > { %983 = vmatprep.mubr.bf16.mxu0 %v6721_v44 }
 0x1d8   : > { %984 = vmatmul.mubr.bf16.gmra.mrb[52].mxu0 %v6723_v48 }
 0x1d9   : > { %991 = vmatprep.mubr.bf16.mxu0 %v6724_v50 }
 0x1e0   : > { %992 = vmatmul.mubr.bf16.gmra.mrb[56].mxu0 %v6726_v56 }
 0x1e1   : > { %999 = vmatprep.mubr.bf16.mxu0 %v6727_v58 }
 0x1e8   : > { %1000 = vmatmul.mubr.bf16.gmra.mrb[60].mxu0 %v6729_v3 }
 0x1e9   : > { %1007 = vmatprep.mubr.bf16.mxu0 %v6730_v5 }
 0x1f0   : > { %1008 = vmatmul.mubr.bf16.gmra.mrb[64].mxu0 %v6732_v13 }
 0x1f1   : > { %1015 = vmatprep.mubr.bf16.mxu0 %v6733_v14 }
 0x1f8   : > { %1016 = vmatmul.mubr.bf16.gmra.mrb[68].mxu0 %v6735_v18 }
 0x1f9   : > { %1023 = vmatprep.mubr.bf16.mxu0 %v6746_v20 }
 0x200   : > { %1024 = vmatmul.mubr.bf16.gmra.mrb[72].mxu0 %v6748_v23 }
 0x201   : > { %1031 = vmatprep.mubr.bf16.mxu0 %v6757_v24 }
 0x208   : > { %1032 = vmatmul.mubr.bf16.gmra.mrb[76].mxu0 %v6759_v25 }
 0x243   : > { %v881_v28 = vpop.f32.mrb[0].mxu0 }
 0x244   : > { %v882_v29 = vadd.f32 %v7792_v27, %v881_v28  ;;  %v883_v30 = vpop.f32.mrb[1].mxu0 }
 0x245   : > { %v884_v31 = vpop.f32.mrb[2].mxu0 }
 0x246   : > { %v1040_v32 = vmax.f32 %v882_v29, 0.0  ;;  %v885_v33 = vadd.f32 %v7792_v27, %v884_v31  ;;  %v886_v34 = vpop.f32.mrb[3].mxu0 }
 0x248   : > { %v1041_v36 = vmax.f32 %v885_v33, 0.0  ;;  %v1087_v37 = vmul.f32 %v1086_v35, %v1040_v32 }
 0x24a   : > { %v1088_v38 = vmul.f32 %v1086_v35, %v1041_v36 }
 0x24b   : > { %v889_v39 = vpop.f32.mrb[4].mxu0 }
 0x24c   : > { %v1091_v40 = vpack.c.bf16 %v1088_v38, %v1087_v37  ;;  %v890_v41 = vadd.f32 %v7792_v27, %v889_v39  ;;  %v891_v42 = vpop.f32.mrb[5].mxu0 }
 0x24d   : > { %v892_v43 = vpop.f32.mrb[6].mxu0 }
 0x24e   : > { %v1118_v44 = vshrl.u32 %v1091_v40, 16  ;;  %v1042_v45 = vmax.f32 %v890_v41, 0.0  ;;  %v893_v46 = vadd.f32 %v7792_v27, %v892_v43  ;;  %v894_v47 = vpop.f32.mrb[7].mxu0  ;;  %v1121_v49 = vshll.u32 %v1091_v40, 16 }
 0x250   : > { %v1120_v48 = vrot.slane %v1118_v44, 7  ;;  %v1043_v50 = vmax.f32 %v893_v46, 0.0  ;;  %v1089_v53 = vmul.f32 %v1086_v35, %v1042_v45 }
 0x252   : > { %v1123_v52 = vor.u32 %v1121_v49, %v1120_v48  ;;  %v1090_v54 = vmul.f32 %v1086_v35, %v1043_v50 }
 0x253   : > { %v897_v55 = vpop.f32.mrb[8].mxu0 }
 0x254   : > { %v1289_v56 = vsel %vm7799_vm2, 0, %v1123_v52  ;;  %v1092_v57 = vpack.c.bf16 %v1090_v54, %v1089_v53  ;;  %v898_v58 = vadd.f32 %v7792_v27, %v897_v55  ;;  %v899_v59 = vpop.f32.mrb[9].mxu0 }
 0x255   : > { %v5495_v60 = vcombine.low %v1289_v56, %v1289_v56  ;;  %v5496_v61 = vcombine.high %v1289_v56, %v1289_v56  ;;  %v900_v62 = vpop.f32.mrb[10].mxu0 }
 0x256   : > { %v1125_v63 = vshrl.u32 %v1092_v57, 16  ;;  %v901_v1 = vadd.f32 %v7792_v27, %v900_v62  ;;  %v902_v2 = vpop.f32.mrb[11].mxu0  ;;  %v1128_v4 = vshll.u32 %v1092_v57, 16  ;;  %v1044_v5 = vmax.f32 %v898_v58, 0.0 }
 0x257   : > { %1479 = vst [vmem:[#allocation2] sm:$0xf] %v5495_v60  ;;  %1480 = vst [vmem:[#allocation2 + $0x4] sm:$0xf] %v5496_v61 }
 0x258   : > { %v1127_v3 = vrot.slane %v1125_v63, 7  ;;  %v1045_v6 = vmax.f32 %v901_v1, 0.0 }
 0x25a   : > { %v1130_v7 = vor.u32 %v1128_v4, %v1127_v3  ;;  %v1299_v8 = vsel %vm7799_vm2, %v1127_v3, 0  ;;  %v1093_v9 = vpack.c.bf16 %v1045_v6, %v1044_v5 }
 0x25b   : > { %v5499_v10 = vcombine.low %v1299_v8, %v1299_v8  ;;  %v905_v11 = vpop.f32.mrb[12].mxu0 }
 0x25c   : > { %v1131_v12 = vsel %vm1116_vm0, %v1120_v48, %v1130_v7  ;;  %v1133_v13 = vshrl.u32 %v1093_v9, 16  ;;  %v906_v14 = vadd.f32 %v7792_v27, %v905_v11  ;;  %v907_v15 = vpop.f32.mrb[13].mxu0  ;;  %v1136_v20 = vshll.u32 %v1093_v9, 16 }
 0x25d   : > { %v5497_v16 = vcombine.low %v1131_v12, %v1131_v12  ;;  %v5498_v17 = vcombine.high %v1131_v12, %v1131_v12  ;;  %1483 = vst [vmem:[#allocation2 + $0x10] sm:$0x1] %v5499_v10  ;;  %v908_v18 = vpop.f32.mrb[14].mxu0 }
 0x25e   : > { %v1135_v19 = vrot.slane %v1133_v13, 7  ;;  %v909_v21 = vadd.f32 %v7792_v27, %v908_v18  ;;  %v910_v22 = vpop.f32.mrb[15].mxu0  ;;  %v1529_v23 = vld [vmem:[#allocation2] sm:$0xf]  ;;  %v1530_v24 = vld [vmem:[#allocation2 + $0x4] sm:$0xf] }
 0x25f   : > { %1481 = vst [vmem:[#allocation2 + $0x8] sm:$0xf] %v5497_v16  ;;  %1482 = vst [vmem:[#allocation2 + $0xc] sm:$0xf] %v5498_v17  ;;  %v1046_v28 = vmax.f32 %v906_v14, 0.0  ;;  %v5545_v30 = vcombine.low %v1529_v23, %v1530_v24 }
 0x260   : > { %v1138_v25 = vor.u32 %v1136_v20, %v1135_v19  ;;  %v1047_v29 = vmax.f32 %v909_v21, 0.0  ;;  %v1569_v31 = vld [vmem:[#allocation2] sm:$0xe] }
 0x261   : > { %v1701_v34 = vshll.u32 %v5545_v30, 16  ;;  %v5569_v38 = vcombine.low %v1569_v31, %v1530_v24  ;;  %v1699_v44 = vshrl.u32 %v5545_v30, 16 }
 0x262   : > { %v1290_v32 = vsel %vm7799_vm2, 0, %v1138_v25  ;;  %v1094_v33 = vpack.c.bf16 %v1047_v29, %v1046_v28 }
 0x263   : > { %v5500_v35 = vcombine.low %v1290_v32, %v1290_v32  ;;  %v5501_v36 = vcombine.high %v1290_v32, %v1290_v32  ;;  %v913_v37 = vpop.f32.mrb[16].mxu0  ;;  %v1703_v42 = vrot.slane %v1701_v34, 1  ;;  %v1899_v54 = vrot.slane %v5569_v38, 1 }
 0x264   : > { %v1140_v39 = vshrl.u32 %v1094_v33, 16  ;;  %v914_v40 = vadd.f32 %v7792_v27, %v913_v37  ;;  %v915_v41 = vpop.f32.mrb[17].mxu0  ;;  %v6771_v45 = vld [vmem:[#allocation2 + $0x10] ss:$0 sps:$4 sm:$0x11]   ;;  %v1143_v47 = vshll.u32 %v1094_v33, 16 }
 0x265   : > { %1484 = vst [vmem:[#allocation2 + $0x14] sm:$0xf] %v5500_v35  ;;  %1485 = vst [vmem:[#allocation2 + $0x18] sm:$0xf] %v5501_v36  ;;  %v916_v43 = vpop.f32.mrb[18].mxu0  ;;  %v1704_v53 = vor.u32 %v1703_v42, %v1699_v44  ;;  %v1714_v60 = vshll.u32 %v6771_v45, 16 }
 0x266   : > { %v1142_v46 = vrot.slane %v1140_v39, 7  ;;  %v917_v48 = vadd.f32 %v7792_v27, %v916_v43  ;;  %v918_v49 = vpop.f32.mrb[19].mxu0  ;;  %v7816_v50 = vld [vmem:[#allocation2 + $0x8] sm:$0xff]   ;;  %v1048_v52 = vmax.f32 %v914_v40, 0.0  ;;  %v1902_v62 = vrot.slane %v6771_v45, 1 }
 0x267   : > { %v1706_v58 = vshll.u32 %v7816_v50, 16  ;;  %v1900_v61 = vrot.slane %v7816_v50, 1  ;;  %v1710_v3 = vshrl.u32 %v7816_v50, 16  ;;  %v1716_v16 = vrot.slane %v1714_v60, 1 }
 0x268   : > { %v1145_v55 = vor.u32 %v1143_v47, %v1142_v46  ;;  %v1300_v56 = vsel %vm7799_vm2, %v1142_v46, 0  ;;  %v1049_v57 = vmax.f32 %v917_v48, 0.0 }
 0x269   : > { %v5504_v59 = vcombine.low %v1300_v56, %v1300_v56  ;;  %v1708_v2 = vrot.slane %v1706_v58, 1  ;;  %v7825_v7 = vsel %vm1898_vm4, %v1899_v54, %v1900_v61  ;;  %v7828_v8 = vsel %vm1898_vm4, %v1900_v61, %v1902_v62 }
 0x26a   : > { %v1146_v63 = vsel %vm1116_vm0, %v1135_v19, %v1145_v55  ;;  %v1095_v1 = vpack.c.bf16 %v1049_v57, %v1048_v52 }
 0x26b   : > { %v5502_v4 = vcombine.low %v1146_v63, %v1146_v63  ;;  %v5503_v5 = vcombine.high %v1146_v63, %v1146_v63  ;;  %1488 = vst [vmem:[#allocation2 + $0x24] sm:$0x1] %v5504_v59  ;;  %v921_v6 = vpop.f32.mrb[20].mxu0  ;;  %v1709_v12 = vsel %vm1697_vm3, %v1704_v53, %v1708_v2  ;;  %v1712_v15 = vor.u32 %v1710_v3, %v1708_v2 }
 0x26c   : > { %v1148_v9 = vshrl.u32 %v1095_v1, 16  ;;  %v922_v10 = vadd.f32 %v7792_v27, %v921_v6  ;;  %v923_v11 = vpop.f32.mrb[21].mxu0  ;;  %v2004_v13 = vld [vmem:[#allocation2 + $0x14] sm:$0xf]  ;;  %3118 = vmatprep.mubr.bf16.mxu0 %v1709_v12  ;;  %v7832_v17 = vld [vmem:[#allocation2 + $0x18] sm:$0xf] }
 0x26d   : > { %1486 = vst [vmem:[#allocation2 + $0x1c] sm:$0xf] %v5502_v4  ;;  %1487 = vst [vmem:[#allocation2 + $0x20] sm:$0xf] %v5503_v5  ;;  %v924_v14 = vpop.f32.mrb[22].mxu0  ;;  %v1151_v20 = vshll.u32 %v1095_v1, 16  ;;  %3119 = vmatmul.mubr.bf16.vlgmr.msra.gmra.mrb[80].mxu0 %v5545_v30  ;;  %v7836_v23 = vcombine.low %v2004_v13, %v7832_v17  ;;  %v1717_v25 = vsel %vm1697_vm3, %v1712_v15, %v1716_v16 }
 0x26e   : > { %v1533_v18 = vld [vmem:[#allocation2 + $0x14] sm:$0xf]  ;;  %v1150_v19 = vrot.slane %v1148_v9, 7  ;;  %v925_v21 = vadd.f32 %v7792_v27, %v924_v14  ;;  %v926_v22 = vpop.f32.mrb[23].mxu0  ;;  %v1534_v24 = vld [vmem:[#allocation2 + $0x18] sm:$0xf]  ;;  %3126 = vmatprep.mubr.bf16.mxu0 %v1717_v25 }
 0x26f   : > { %v7839_v28 = vcombine.low %v1533_v18, %v1534_v24  ;;  %v1050_v31 = vmax.f32 %v922_v10, 0.0  ;;  %v2175_v33 = vshll.u32 %v7836_v23, 16  ;;  %v2173_v34 = vshrl.u32 %v7836_v23, 16  ;;  %v2044_v36 = vld [vmem:[#allocation2 + $0x14] sm:$0xe] }
 0x270   : > { %v1153_v29 = vor.u32 %v1151_v20, %v1150_v19  ;;  %v1051_v32 = vmax.f32 %v925_v21, 0.0  ;;  %v5601_v54 = vcombine.low %v2044_v36, %v7832_v17  ;;  %v6786_v15 = vld [vmem:[#allocation11 + $0x148] sm:$0xff]  }
 0x271   : > { %v1721_v35 = vshll.u32 %v7839_v28, 16  ;;  %v2177_v38 = vrot.slane %v2175_v33, 1  ;;  %v1719_v42 = vshrl.u32 %v7839_v28, 16 }
 0x272   : > { %v1291_v30 = vsel %vm7799_vm2, 0, %v1153_v29  ;;  %v1096_v37 = vpack.c.bf16 %v1051_v32, %v1050_v31  ;;  %v7847_v44 = vld [vmem:[#allocation2 + $0x24] ss:$0 sps:$4 sm:$0x11]   ;;  %v2372_v31 = vrot.slane %v5601_v54, 1 }
 0x273   : > { %v5505_v39 = vcombine.low %v1291_v30, %v1291_v30  ;;  %v5506_v40 = vcombine.high %v1291_v30, %v1291_v30  ;;  %v929_v41 = vpop.f32.mrb[24].mxu0  ;;  %v1723_v43 = vrot.slane %v1721_v35, 1  ;;  %v2178_v58 = vor.u32 %v2177_v38, %v2173_v34  ;;  %v6783_v10 = vld [vmem:[#allocation2 + $0x24] ss:$0 sps:$4 sm:$0x11]  }
 0x274   : > { %v1155_v45 = vshrl.u32 %v1096_v37, 16  ;;  %v1158_v46 = vshll.u32 %v1096_v37, 16  ;;  %v930_v47 = vadd.f32 %v7792_v27, %v929_v41  ;;  %v931_v48 = vpop.f32.mrb[25].mxu0  ;;  %v7850_v49 = vld [vmem:[#allocation2 + $0x1c] sm:$0xff]   ;;  %v2188_v63 = vshll.u32 %v7847_v44, 16 }
 0x275   : > { %1489 = vst [vmem:[#allocation2 + $0x28] sm:$0xf] %v5505_v39  ;;  %1490 = vst [vmem:[#allocation2 + $0x2c] sm:$0xf] %v5506_v40  ;;  %v932_v52 = vpop.f32.mrb[26].mxu0  ;;  %v7852_v53 = vld [vmem:[#allocation2 + $0x1c] sm:$0xff]   ;;  %3127 = vmatmul.mubr.bf16.gmra.mrb[84].mxu0 %v7816_v50  ;;  %v1724_v6 = vor.u32 %v1723_v43, %v1719_v42 }
 0x276   : > { %v1157_v55 = vrot.slane %v1155_v45, 7  ;;  %v933_v56 = vadd.f32 %v7792_v27, %v932_v52  ;;  %v934_v57 = vpop.f32.mrb[27].mxu0  ;;  %v2180_v59 = vshll.u32 %v7850_v49, 16  ;;  %v1052_v60 = vmax.f32 %v930_v47, 0.0 }
 0x277   : > { %v1726_v61 = vshll.u32 %v7852_v53, 16  ;;  %v2184_v62 = vshrl.u32 %v7850_v49, 16  ;;  %v2190_v50 = vrot.slane %v2188_v63, 1  ;;  %v1730_v21 = vshrl.u32 %v7852_v53, 16 }
 0x278   : > { %v1160_v1 = vor.u32 %v1158_v46, %v1157_v55  ;;  %v1301_v2 = vsel %vm7799_vm2, %v1157_v55, 0  ;;  %v1053_v3 = vmax.f32 %v933_v56, 0.0  ;;  %v2182_v4 = vrot.slane %v2180_v59, 1  ;;  %v6800_v56 = vld [vmem:[#allocation11 + $0x158] sm:$0xff]  }
 0x279   : > { %v5509_v5 = vcombine.low %v1301_v2, %v1301_v2  ;;  %v1728_v9 = vrot.slane %v1726_v61, 1  ;;  %v1734_v34 = vshll.u32 %v6783_v10, 16  ;;  %v2373_v45 = vrot.slane %v7850_v49, 1 }
 0x27a   : > { %v1161_v11 = vsel %vm1116_vm0, %v1150_v19, %v1160_v1  ;;  %v1097_v12 = vpack.c.bf16 %v1053_v3, %v1052_v60  ;;  %v2183_v13 = vsel %vm1697_vm3, %v2178_v58, %v2182_v4  ;;  %v2186_v14 = vor.u32 %v2184_v62, %v2182_v4 }
 0x27b   : > { %v5507_v16 = vcombine.low %v1161_v11, %v1161_v11  ;;  %v5508_v17 = vcombine.high %v1161_v11, %v1161_v11  ;;  %1493 = vst [vmem:[#allocation2 + $0x38] sm:$0x1] %v5509_v5  ;;  %v937_v18 = vpop.f32.mrb[28].mxu0  ;;  %2652 = vmatprep.mubr.bf16.mxu1 %v2183_v13  ;;  %v1729_v20 = vsel %vm1697_vm3, %v1724_v6, %v1728_v9  ;;  %v1736_v42 = vrot.slane %v1734_v34, 1  ;;  %v6807_v11 = vld [vmem:[#allocation11 + $0x160] sm:$0xff]  }
 0x27c   : > { %v1163_v22 = vshrl.u32 %v1097_v12, 16  ;;  %v938_v24 = vadd.f32 %v7792_v27, %v937_v18  ;;  %v939_v25 = vpop.f32.mrb[29].mxu0  ;;  %3134 = vmatprep.mubr.bf16.mxu0 %v1729_v20  ;;  %2653 = vmatmul.mubr.bf16.vlgmr.msra.gmra.mrb[0].mxu1 %v7836_v23  ;;  %v2191_v19 = vsel %vm1697_vm3, %v2186_v14, %v2190_v50  ;;  %v2008_v29 = vld [vmem:[#allocation2 + $0x28] sm:$0xf]  ;;  %v1732_v33 = vor.u32 %v1730_v21, %v1728_v9  ;;  %v7871_v35 = vld [vmem:[#allocation2 + $0x2c] sm:$0xf] }
 0x27d   : > { %1491 = vst [vmem:[#allocation2 + $0x30] sm:$0xf] %v5507_v16  ;;  %1492 = vst [vmem:[#allocation2 + $0x34] sm:$0xf] %v5508_v17  ;;  %v940_v32 = vpop.f32.mrb[30].mxu0  ;;  %6212 = vmatpush3.bf16.msra.mxu1 %v7788_v26  ;;  %2660 = vmatprep.mubr.bf16.mxu1 %v2191_v19  ;;  %v1166_v37 = vshll.u32 %v1097_v12, 16  ;;  %v7878_v39 = vcombine.low %v2008_v29, %v7871_v35  ;;  %v7890_v57 = vsel %vm1898_vm4, %v2372_v31, %v2373_v45 }
 0x27e   : > { %v1537_v36 = vld [vmem:[#allocation2 + $0x28] sm:$0xf]  ;;  %v7873_v30 = vrot.slane %v1163_v22, 7  ;;  %v941_v23 = vadd.f32 %v7792_v27, %v940_v32  ;;  %v942_v38 = vpop.f32.mrb[31].mxu0  ;;  %3135 = vmatmul.mubr.bf16.gmra.mrb[88].mxu0 %v7839_v28  ;;  %6213 = vmatprep.subr.bf16.mxu1 %v6786_v15  ;;  %v1538_v40 = vld [vmem:[#allocation2 + $0x2c] sm:$0xf]  ;;  %v1737_v28 = vsel %vm1697_vm3, %v1732_v33, %v1736_v42 }
 0x27f   : > { %v6793_v26 = vld [vmem:[#allocation11 + $0x150] sm:$0xff]   ;;  %v1054_v41 = vmax.f32 %v938_v24, 0.0  ;;  %v7880_v43 = vcombine.low %v1537_v36, %v1538_v40  ;;  %v2195_v48 = vshll.u32 %v7878_v39, 16  ;;  %v2375_v52 = vrot.slane %v7847_v44, 1  ;;  %v7892_v58 = vld [vmem:[#allocation2 + $0x28] sm:$0xe]  ;;  %3142 = vmatprep.mubr.bf16.mxu0 %v1737_v28 }
 0x280   : > { %v1168_v46 = vor.u32 %v1166_v37, %v7873_v30  ;;  %v1055_v47 = vmax.f32 %v941_v23, 0.0  ;;  %v2193_v54 = vshrl.u32 %v7878_v39, 16  ;;  %v5602_v14 = vcombine.low %v7892_v58, %v7871_v35 }
 0x281   : > { %v1741_v55 = vshll.u32 %v7880_v43, 16  ;;  %6214 = vmatpush3.bf16.msra.mxu1 %v6786_v15  ;;  %v1739_v44 = vshrl.u32 %v7880_v43, 16  ;;  %v7898_v61 = vsel %vm1898_vm4, %v2373_v45, %v2375_v52  ;;  %v2197_v2 = vrot.slane %v2195_v48, 1 }
 0x282   : > { %v1292_v59 = vsel %vm7799_vm2, 0, %v1168_v46  ;;  %v1098_v60 = vpack.c.bf16 %v1055_v47, %v1054_v41  ;;  %6215 = vmatprep.subr.bf16.mxu1 %v6793_v26  ;;  %v7900_v4 = vld [vmem:[#allocation2 + $0x38] ss:$0 sps:$4 sm:$0x11]  }
 0x283   : > { %v5510_v62 = vcombine.low %v1292_v59, %v1292_v59  ;;  %v5511_v63 = vcombine.high %v1292_v59, %v1292_v59  ;;  %v945_v1 = vpop.f32.mrb[32].mxu0  ;;  %v1743_v3 = vrot.slane %v1741_v55, 1  ;;  %v2198_v20 = vor.u32 %v2197_v2, %v2193_v54  ;;  %v6790_v25 = vld [vmem:[#allocation2 + $0x38] ss:$0 sps:$4 sm:$0x11]  }
 0x284   : > { %v1170_v5 = vshrl.u32 %v1098_v60, 16  ;;  %v1173_v6 = vshll.u32 %v1098_v60, 16  ;;  %v946_v9 = vadd.f32 %v7792_v27, %v945_v1  ;;  %v947_v50 = vpop.f32.mrb[33].mxu0  ;;  %2661 = vmatmul.mubr.bf16.gmra.mrb[4].mxu1 %v7850_v49  ;;  %v7904_v10 = vld [vmem:[#allocation2 + $0x30] sm:$0xff]   ;;  %v2208_v24 = vshll.u32 %v7900_v4, 16 }
 0x285   : > { %1494 = vst [vmem:[#allocation2 + $0x3c] sm:$0xf] %v5510_v62  ;;  %1495 = vst [vmem:[#allocation2 + $0x40] sm:$0xf] %v5511_v63  ;;  %v948_v12 = vpop.f32.mrb[34].mxu0  ;;  %v7906_v13 = vld [vmem:[#allocation2 + $0x30] sm:$0xff]   ;;  %6216 = vmatpush3.bf16.msra.mxu1 %v6793_v26  ;;  %v1744_v34 = vor.u32 %v1743_v3, %v1739_v44 }
 0x286   : > { %v1172_v15 = vrot.slane %v1170_v5, 7  ;;  %v1056_v16 = vmax.f32 %v946_v9, 0.0  ;;  %v949_v17 = vadd.f32 %v7792_v27, %v948_v12  ;;  %v950_v18 = vpop.f32.mrb[35].mxu0  ;;  %3143 = vmatmul.mubr.bf16.gmra.mrb[92].mxu0 %v7852_v53  ;;  %v2200_v49 = vshll.u32 %v7904_v10, 16  ;;  %6217 = vmatprep.subr.bf16.mxu1 %v6800_v56  ;;  %v6814_v26 = vld [vmem:[#allocation11 + $0x168] sm:$0xff]  }
 0x287   : > { %v1746_v21 = vshll.u32 %v7906_v13, 16  ;;  %v2204_v22 = vshrl.u32 %v7904_v10, 16  ;;  %v2210_v36 = vrot.slane %v2208_v24, 1  ;;  %v1750_v47 = vshrl.u32 %v7906_v13, 16 }
 0x288   : > { %v1175_v19 = vor.u32 %v1173_v6, %v1172_v15  ;;  %v1302_v29 = vsel %vm7799_vm2, %v1172_v15, 0  ;;  %v1057_v31 = vmax.f32 %v949_v17, 0.0  ;;  %v2202_v32 = vrot.slane %v2200_v49, 1  ;;  %v6821_v6 = vld [vmem:[#allocation11 + $0x170] sm:$0xff]  }
 0x289   : > { %v5514_v33 = vcombine.low %v1302_v29, %v1302_v29  ;;  %v1748_v53 = vrot.slane %v1746_v21, 1  ;;  %6218 = vmatpush3.bf16.msra.mxu1 %v6800_v56  ;;  %v1754_v60 = vshll.u32 %v6790_v25, 16  ;;  %v2378_v12 = vrot.slane %v7904_v10, 1  ;;  %v6828_v21 = vld [vmem:[#allocation11 + $0x178] sm:$0xff]  }
 0x28a   : > { %v1176_v37 = vsel %vm1116_vm0, %v7873_v30, %v1175_v19  ;;  %v1099_v23 = vpack.c.bf16 %v1057_v31, %v1056_v16  ;;  %v2203_v38 = vsel %vm1697_vm3, %v2198_v20, %v2202_v32  ;;  %v2206_v40 = vor.u32 %v2204_v22, %v2202_v32  ;;  %6219 = vmatprep.subr.bf16.mxu1 %v6807_v11 }
 0x28b   : > { %v5512_v41 = vcombine.low %v1176_v37, %v1176_v37  ;;  %v5513_v42 = vcombine.high %v1176_v37, %v1176_v37  ;;  %1498 = vst [vmem:[#allocation2 + $0x4c] sm:$0x1] %v5514_v33  ;;  %v953_v45 = vpop.f32.mrb[36].mxu0  ;;  %2668 = vmatprep.mubr.bf16.mxu1 %v2203_v38  ;;  %v1749_v46 = vsel %vm1697_vm3, %v1744_v34, %v1748_v53  ;;  %v1756_v9 = vrot.slane %v1754_v60, 1  ;;  %v6831_v38 = vld [vmem:[#allocation11 + $0x80] sm:$0xff]  }
 0x28c   : > { %v1178_v48 = vshrl.u32 %v1099_v23, 16  ;;  %v1181_v52 = vshll.u32 %v1099_v23, 16  ;;  %v954_v28 = vadd.f32 %v7792_v27, %v953_v45  ;;  %v955_v30 = vpop.f32.mrb[37].mxu0  ;;  %3150 = vmatprep.mubr.bf16.mxu0 %v1749_v46  ;;  %2669 = vmatmul.mubr.bf16.gmra.mrb[8].mxu1 %v7878_v39  ;;  %v2211_v54 = vsel %vm1697_vm3, %v2206_v40, %v2210_v36  ;;  %v2012_v55 = vld [vmem:[#allocation2 + $0x3c] sm:$0xf] }
 0x28d   : > { %1496 = vst [vmem:[#allocation2 + $0x44] sm:$0xf] %v5512_v41  ;;  %1497 = vst [vmem:[#allocation2 + $0x48] sm:$0xf] %v5513_v42  ;;  %v956_v56 = vpop.f32.mrb[38].mxu0  ;;  %2676 = vmatprep.mubr.bf16.mxu1 %v2211_v54  ;;  %v1752_v59 = vor.u32 %v1750_v47, %v1748_v53  ;;  %6220 = vmatpush3.bf16.msra.mxu1 %v6807_v11  ;;  %v2377_v11 = vrot.slane %v5602_v14, 1 }
 0x28e   : > { %v7926_v44 = vld [vmem:[#allocation2 + $0x40] sm:$0xf]  ;;  %v1541_v62 = vld [vmem:[#allocation2 + $0x3c] sm:$0xf]  ;;  %v7928_v63 = vrot.slane %v1178_v48, 7  ;;  %v1058_v1 = vmax.f32 %v954_v28, 0.0  ;;  %v957_v2 = vadd.f32 %v7792_v27, %v956_v56  ;;  %3151 = vmatmul.mubr.bf16.gmra.mrb[96].mxu0 %v7880_v43  ;;  %6221 = vmatprep.subr.bf16.mxu1 %v6814_v26 }
 0x28f   : > { %v958_v3 = vpop.f32.mrb[39].mxu0  ;;  %v7933_v39 = vcombine.low %v2012_v55, %v7926_v44  ;;  %v1542_v5 = vld [vmem:[#allocation2 + $0x40] sm:$0xf]  ;;  %v1757_v18 = vsel %vm1697_vm3, %v1752_v59, %v1756_v9  ;;  %v7948_v35 = vsel %vm1898_vm4, %v2377_v11, %v2378_v12  ;;  %v7950_v58 = vld [vmem:[#allocation2 + $0x3c] sm:$0xe]  ;;  %v2380_v33 = vrot.slane %v7900_v4, 1 }
 0x290   : > { %v7935_v50 = vcombine.low %v1541_v62, %v1542_v5  ;;  %v1183_v15 = vor.u32 %v1181_v52, %v7928_v63  ;;  %v1059_v16 = vmax.f32 %v957_v2, 0.0  ;;  %3158 = vmatprep.mubr.bf16.mxu0 %v1757_v18  ;;  %v5603_v4 = vcombine.low %v7950_v58, %v7926_v44 }
 0x291   : > { %v2213_v43 = vshrl.u32 %v7933_v39, 16  ;;  %v2215_v17 = vshll.u32 %v7933_v39, 16  ;;  %6222 = vmatpush3.bf16.msra.mxu1 %v6814_v26  ;;  %v7964_v41 = vsel %vm1898_vm4, %v2378_v12, %v2380_v33 }
 0x292   : > { %v1759_v49 = vshrl.u32 %v7935_v50, 16  ;;  %v1761_v20 = vshll.u32 %v7935_v50, 16  ;;  %v1293_v14 = vsel %vm7799_vm2, 0, %v1183_v15  ;;  %v1100_v22 = vpack.c.bf16 %v1059_v16, %v1058_v1  ;;  %6223 = vmatprep.subr.bf16.mxu1 %v6821_v6  ;;  %v7954_v32 = vld [vmem:[#allocation2 + $0x4c] ss:$0 sps:$4 sm:$0x11]  }
 0x293   : > { %v2217_v24 = vrot.slane %v2215_v17, 1  ;;  %v5515_v25 = vcombine.low %v1293_v14, %v1293_v14  ;;  %v5516_v19 = vcombine.high %v1293_v14, %v1293_v14  ;;  %v961_v29 = vpop.f32.mrb[40].mxu0  ;;  %v2228_v30 = vshll.u32 %v7954_v32, 16  ;;  %v6797_v54 = vld [vmem:[#allocation2 + $0x4c] ss:$0 sps:$4 sm:$0x11]  }
 0x294   : > { %v1763_v31 = vrot.slane %v1761_v20, 1  ;;  %v1185_v34 = vshrl.u32 %v1100_v22, 16  ;;  %v1188_v53 = vshll.u32 %v1100_v22, 16  ;;  %v962_v36 = vadd.f32 %v7792_v27, %v961_v29  ;;  %v963_v37 = vpop.f32.mrb[41].mxu0  ;;  %2677 = vmatmul.mubr.bf16.gmra.mrb[12].mxu1 %v7904_v10  ;;  %v7959_v23 = vld [vmem:[#allocation2 + $0x44] sm:$0xff]  }
 0x295   : > { %1499 = vst [vmem:[#allocation2 + $0x50] sm:$0xf] %v5515_v25  ;;  %1500 = vst [vmem:[#allocation2 + $0x54] sm:$0xf] %v5516_v19  ;;  %v964_v40 = vpop.f32.mrb[42].mxu0  ;;  %v7961_v26 = vld [vmem:[#allocation2 + $0x44] sm:$0xff]   ;;  %6224 = vmatpush3.bf16.msra.mxu1 %v6821_v6  ;;  %v2218_v48 = vor.u32 %v2217_v24, %v2213_v43 }
 0x296   : > { %v1187_v42 = vrot.slane %v1185_v34, 7  ;;  %v1060_v45 = vmax.f32 %v962_v36, 0.0  ;;  %v965_v46 = vadd.f32 %v7792_v27, %v964_v40  ;;  %v966_v10 = vpop.f32.mrb[43].mxu0  ;;  %3159 = vmatmul.mubr.bf16.gmra.mrb[100].mxu0 %v7906_v13  ;;  %v2220_v47 = vshll.u32 %v7959_v23, 16  ;;  %6225 = vmatprep.subr.bf16.mxu1 %v6828_v21 }
 0x297   : > { %v1766_v52 = vshll.u32 %v7961_v26, 16  ;;  %v2224_v28 = vshrl.u32 %v7959_v23, 16  ;;  %v1764_v62 = vor.u32 %v1763_v31, %v1759_v49  ;;  %v2230_v1 = vrot.slane %v2228_v30, 1 }
 0x298   : > { %v1190_v55 = vor.u32 %v1188_v53, %v1187_v42  ;;  %v1303_v56 = vsel %vm7799_vm2, %v1187_v42, 0  ;;  %v1061_v59 = vmax.f32 %v965_v46, 0.0  ;;  %v2222_v60 = vrot.slane %v2220_v47, 1 }
 0x299   : > { %v5519_v44 = vcombine.low %v1303_v56, %v1303_v56  ;;  %v1768_v13 = vrot.slane %v1766_v52, 1  ;;  %6226 = vmatpush3.bf16.msra.mxu1 %v6828_v21  ;;  %v1770_v16 = vshrl.u32 %v7961_v26, 16  ;;  %v1774_v14 = vshll.u32 %v6797_v54, 16 }
 0x29a   : > { %v1191_v2 = vsel %vm1116_vm0, %v7928_v63, %v1190_v55  ;;  %v1101_v3 = vpack.c.bf16 %v1061_v59, %v1060_v45  ;;  %v2223_v5 = vsel %vm1697_vm3, %v2218_v48, %v2222_v60  ;;  %v2226_v6 = vor.u32 %v2224_v28, %v2222_v60  ;;  %6259 = vmatprep.subr.bf16.mxu1 %v6831_v38 }
 0x29b   : > { %v5517_v9 = vcombine.low %v1191_v2, %v1191_v2  ;;  %v5518_v11 = vcombine.high %v1191_v2, %v1191_v2  ;;  %1503 = vst [vmem:[#allocation2 + $0x60] sm:$0x1] %v5519_v44  ;;  %v969_v12 = vpop.f32.mrb[44].mxu0  ;;  %2684 = vmatprep.mubr.bf16.mxu1 %v2223_v5  ;;  %v1769_v15 = vsel %vm1697_vm3, %v1764_v62, %v1768_v13  ;;  %v1776_v34 = vrot.slane %v1774_v14, 1 }
 0x29c   : > { %v1193_v43 = vshrl.u32 %v1101_v3, 16  ;;  %v1196_v17 = vshll.u32 %v1101_v3, 16  ;;  %v970_v18 = vadd.f32 %v7792_v27, %v969_v12  ;;  %v971_v49 = vpop.f32.mrb[45].mxu0  ;;  %3166 = vmatprep.mubr.bf16.mxu0 %v1769_v15  ;;  %2685 = vmatmul.mubr.bf16.gmra.mrb[16].mxu1 %v7933_v39  ;;  %v2231_v63 = vsel %vm1697_vm3, %v2226_v6, %v2230_v1  ;;  %v2016_v20 = vld [vmem:[#allocation2 + $0x50] sm:$0xf] }
 0x29d   : > { %1501 = vst [vmem:[#allocation2 + $0x58] sm:$0xf] %v5517_v9  ;;  %1502 = vst [vmem:[#allocation2 + $0x5c] sm:$0xf] %v5518_v11  ;;  %v972_v21 = vpop.f32.mrb[46].mxu0  ;;  %2692 = vmatprep.mubr.bf16.mxu1 %v2231_v63  ;;  %v1772_v58 = vor.u32 %v1770_v16, %v1768_v13  ;;  %v2382_v36 = vrot.slane %v5603_v4, 1 }
 0x29e   : > { %v7984_v22 = vld [vmem:[#allocation2 + $0x54] sm:$0xf]  ;;  %v1545_v24 = vld [vmem:[#allocation2 + $0x50] sm:$0xf]  ;;  %v1195_v25 = vrot.slane %v1193_v43, 7  ;;  %v1062_v19 = vmax.f32 %v970_v18, 0.0  ;;  %v973_v29 = vadd.f32 %v7792_v27, %v972_v21  ;;  %3167 = vmatmul.mubr.bf16.gmra.mrb[104].mxu0 %v7935_v50 }
 0x29f   : > { %v974_v31 = vpop.f32.mrb[47].mxu0  ;;  %v7989_v39 = vcombine.low %v2016_v20, %v7984_v22  ;;  %v1546_v33 = vld [vmem:[#allocation2 + $0x54] sm:$0xf]  ;;  %v2383_v37 = vrot.slane %v7959_v23, 1  ;;  %v1777_v46 = vsel %vm1697_vm3, %v1772_v58, %v1776_v34  ;;  %v8002_v48 = vld [vmem:[#allocation2 + $0x50] sm:$0xe] }
 0x2a0   : > { %v7991_v53 = vcombine.low %v1545_v24, %v1546_v33  ;;  %v1198_v38 = vor.u32 %v1196_v17, %v1195_v25  ;;  %v1063_v40 = vmax.f32 %v973_v29, 0.0  ;;  %3174 = vmatprep.mubr.bf16.mxu0 %v1777_v46  ;;  %v2385_v60 = vrot.slane %v7954_v32, 1 }
 0x2a1   : > { %v2233_v42 = vshrl.u32 %v7989_v39, 16  ;;  %v2235_v45 = vshll.u32 %v7989_v39, 16  ;;  %v8000_v47 = vsel %vm1898_vm4, %v2382_v36, %v2383_v37  ;;  %v5604_v32 = vcombine.low %v8002_v48, %v7984_v22 }
 0x2a2   : > { %v1779_v50 = vshrl.u32 %v7991_v53, 16  ;;  %v1781_v10 = vshll.u32 %v7991_v53, 16  ;;  %v1294_v4 = vsel %vm7799_vm2, 0, %v1198_v38  ;;  %v1102_v52 = vpack.c.bf16 %v1063_v40, %v1062_v19  ;;  %v8006_v59 = vld [vmem:[#allocation2 + $0x60] ss:$0 sps:$4 sm:$0x11]  }
 0x2a3   : > { %v2237_v28 = vrot.slane %v2235_v45, 1  ;;  %v5520_v30 = vcombine.low %v1294_v4, %v1294_v4  ;;  %v5521_v54 = vcombine.high %v1294_v4, %v1294_v4  ;;  %v977_v55 = vpop.f32.mrb[48].mxu0  ;;  %v8016_v6 = vsel %vm1898_vm4, %v2383_v37, %v2385_v60  ;;  %v6804_v49 = vld [vmem:[#allocation2 + $0x60] ss:$0 sps:$4 sm:$0x11]  }
 0x2a4   : > { %v1783_v56 = vrot.slane %v1781_v10, 1  ;;  %v1200_v44 = vshrl.u32 %v1102_v52, 16  ;;  %v1203_v62 = vshll.u32 %v1102_v52, 16  ;;  %v978_v13 = vadd.f32 %v7792_v27, %v977_v55  ;;  %v979_v1 = vpop.f32.mrb[49].mxu0  ;;  %2693 = vmatmul.mubr.bf16.gmra.mrb[20].mxu1 %v7959_v23  ;;  %v8011_v2 = vld [vmem:[#allocation2 + $0x58] sm:$0xff]  }
 0x2a5   : > { %1504 = vst [vmem:[#allocation2 + $0x64] sm:$0xf] %v5520_v30  ;;  %1505 = vst [vmem:[#allocation2 + $0x68] sm:$0xf] %v5521_v54  ;;  %v980_v3 = vpop.f32.mrb[50].mxu0  ;;  %v8013_v5 = vld [vmem:[#allocation2 + $0x58] sm:$0xff]   ;;  %v2238_v16 = vor.u32 %v2237_v28, %v2233_v42 }
 0x2a6   : > { %v1202_v9 = vrot.slane %v1200_v44, 7  ;;  %v1064_v11 = vmax.f32 %v978_v13, 0.0  ;;  %v981_v12 = vadd.f32 %v7792_v27, %v980_v3  ;;  %v982_v15 = vpop.f32.mrb[51].mxu0  ;;  %3175 = vmatmul.mubr.bf16.gmra.mrb[108].mxu0 %v7961_v26  ;;  %v2240_v23 = vshll.u32 %v8011_v2, 16  ;;  %v8032_v45 = vld [vmem:[#allocation9] ss:$0 sm:$0xff] }
 0x2a7   : > { %v1786_v43 = vshll.u32 %v8013_v5, 16  ;;  %v2244_v17 = vshrl.u32 %v8011_v2, 16  ;;  %v2248_v18 = vshll.u32 %v8006_v59, 16  ;;  %v1784_v14 = vor.u32 %v1783_v56, %v1779_v50 }
 0x2a8   : > { %v1205_v63 = vor.u32 %v1203_v62, %v1202_v9  ;;  %v1304_v20 = vsel %vm7799_vm2, %v1202_v9, 0  ;;  %v1065_v21 = vmax.f32 %v981_v12, 0.0  ;;  %v2242_v58 = vrot.slane %v2240_v23, 1 }
 0x2a9   : > { %v5524_v27 = vcombine.low %v1304_v20, %v1304_v20  ;;  %v1788_v22 = vrot.slane %v1786_v43, 1  ;;  %v2250_v26 = vrot.slane %v2248_v18, 1  ;;  %v1790_v38 = vshrl.u32 %v8013_v5, 16 }
 0x2aa   : > { %v1206_v24 = vsel %vm1116_vm0, %v1195_v25, %v1205_v63  ;;  %v1103_v19 = vpack.c.bf16 %v1065_v21, %v1064_v11  ;;  %v2243_v29 = vsel %vm1697_vm3, %v2238_v16, %v2242_v58  ;;  %v2246_v31 = vor.u32 %v2244_v17, %v2242_v58 }
 0x2ab   : > { %v5522_v33 = vcombine.low %v1206_v24, %v1206_v24  ;;  %v5523_v34 = vcombine.high %v1206_v24, %v1206_v24  ;;  %1508 = vst [vmem:[#allocation2 + $0x74] sm:$0x1] %v5524_v27  ;;  %v985_v36 = vpop.f32.mrb[52].mxu0  ;;  %2700 = vmatprep.mubr.bf16.mxu1 %v2243_v29  ;;  %v1789_v37 = vsel %vm1697_vm3, %v1784_v14, %v1788_v22  ;;  %v1794_v52 = vshll.u32 %v6804_v49, 16 }
 0x2ac   : > { %v1208_v40 = vshrl.u32 %v1103_v19, 16  ;;  %v1211_v42 = vshll.u32 %v1103_v19, 16  ;;  %v986_v46 = vadd.f32 %v8032_v45, %v985_v36  ;;  %v987_v25 = vpop.f32.mrb[53].mxu0  ;;  %3182 = vmatprep.mubr.bf16.mxu0 %v1789_v37  ;;  %2701 = vmatmul.mubr.bf16.gmra.mrb[24].mxu1 %v7989_v39  ;;  %v2251_v50 = vsel %vm1697_vm3, %v2246_v31, %v2250_v26  ;;  %v2020_v10 = vld [vmem:[#allocation2 + $0x64] sm:$0xf] }
 0x2ad   : > { %1506 = vst [vmem:[#allocation2 + $0x6c] sm:$0xf] %v5522_v33  ;;  %1507 = vst [vmem:[#allocation2 + $0x70] sm:$0xf] %v5523_v34  ;;  %v988_v48 = vpop.f32.mrb[54].mxu0  ;;  %2708 = vmatprep.mubr.bf16.mxu1 %v2251_v50  ;;  %v1792_v4 = vor.u32 %v1790_v38, %v1788_v22  ;;  %v1796_v62 = vrot.slane %v1794_v52, 1 }
 0x2ae   : > { %v8037_v28 = vld [vmem:[#allocation2 + $0x68] sm:$0xf]  ;;  %v1549_v30 = vld [vmem:[#allocation2 + $0x64] sm:$0xf]  ;;  %v1210_v54 = vrot.slane %v1208_v40, 7  ;;  %v1066_v55 = vmax.f32 %v986_v46, 0.0  ;;  %v989_v56 = vadd.f32 %v8032_v45, %v988_v48  ;;  %3183 = vmatmul.mubr.bf16.gmra.mrb[112].mxu0 %v7991_v53 }
 0x2af   : > { %v990_v60 = vpop.f32.mrb[55].mxu0  ;;  %v8042_v39 = vcombine.low %v2020_v10, %v8037_v28  ;;  %v8044_v44 = vld [vmem:[#allocation2 + $0x68] sm:$0xf]  ;;  %v2387_v1 = vrot.slane %v5604_v32, 1  ;;  %v2388_v3 = vrot.slane %v8011_v2, 1  ;;  %v1797_v53 = vsel %vm1697_vm3, %v1792_v4, %v1796_v62 }
 0x2b0   : > { %v8047_v13 = vcombine.low %v1549_v30, %v8044_v44  ;;  %v1213_v9 = vor.u32 %v1211_v42, %v1210_v54  ;;  %v1067_v11 = vmax.f32 %v989_v56, 0.0  ;;  %v8058_v17 = vld [vmem:[#allocation2 + $0x64] sm:$0xe]  ;;  %3190 = vmatprep.mubr.bf16.mxu0 %v1797_v53  ;;  %v2390_v14 = vrot.slane %v8006_v59, 1 }
 0x2b1   : > { %v2253_v12 = vshrl.u32 %v8042_v39, 16  ;;  %v2255_v15 = vshll.u32 %v8042_v39, 16  ;;  %v8056_v43 = vsel %vm1898_vm4, %v2387_v1, %v2388_v3  ;;  %v5605_v59 = vcombine.low %v8058_v17, %v8037_v28 }
 0x2b2   : > { %v1799_v23 = vshrl.u32 %v8047_v13, 16  ;;  %v1801_v16 = vshll.u32 %v8047_v13, 16  ;;  %v1295_v32 = vsel %vm7799_vm2, 0, %v1213_v9  ;;  %v1104_v18 = vpack.c.bf16 %v1067_v11, %v1066_v55  ;;  %v8062_v27 = vld [vmem:[#allocation2 + $0x74] ss:$0 sps:$4 sm:$0x11]  }
 0x2b3   : > { %v2257_v49 = vrot.slane %v2255_v15, 1  ;;  %v5525_v63 = vcombine.low %v1295_v32, %v1295_v32  ;;  %v5526_v20 = vcombine.high %v1295_v32, %v1295_v32  ;;  %v993_v21 = vpop.f32.mrb[56].mxu0  ;;  %v8072_v34 = vsel %vm1898_vm4, %v2388_v3, %v2390_v14  ;;  %v8084_v28 = vld [vmem:[#allocation2 + $0x74] ss:$0 sps:$4 sm:$0x11]  }
 0x2b4   : > { %v1803_v58 = vrot.slane %v1801_v16, 1  ;;  %v1215_v22 = vshrl.u32 %v1104_v18, 16  ;;  %v1218_v26 = vshll.u32 %v1104_v18, 16  ;;  %v994_v24 = vadd.f32 %v8032_v45, %v993_v21  ;;  %v995_v19 = vpop.f32.mrb[57].mxu0  ;;  %2709 = vmatmul.mubr.bf16.gmra.mrb[28].mxu1 %v8011_v2  ;;  %v8067_v29 = vld [vmem:[#allocation2 + $0x6c] sm:$0xff]  }
 0x2b5   : > { %1509 = vst [vmem:[#allocation2 + $0x78] sm:$0xf] %v5525_v63  ;;  %1510 = vst [vmem:[#allocation2 + $0x7c] sm:$0xf] %v5526_v20  ;;  %v996_v31 = vpop.f32.mrb[58].mxu0  ;;  %v8069_v33 = vld [vmem:[#allocation2 + $0x6c] sm:$0xff]   ;;  %v2258_v2 = vor.u32 %v2257_v49, %v2253_v12 }
 0x2b6   : > { %v1217_v36 = vrot.slane %v1215_v22, 7  ;;  %v997_v37 = vadd.f32 %v8032_v45, %v996_v31  ;;  %v998_v38 = vpop.f32.mrb[59].mxu0  ;;  %3191 = vmatmul.mubr.bf16.gmra.mrb[116].mxu0 %v8013_v5  ;;  %v2260_v40 = vshll.u32 %v8067_v29, 16  ;;  %v1068_v42 = vmax.f32 %v994_v24, 0.0 }
 0x2b7   : > { %v1806_v46 = vshll.u32 %v8069_v33, 16  ;;  %v2264_v25 = vshrl.u32 %v8067_v29, 16  ;;  %v2268_v50 = vshll.u32 %v8062_v27, 16  ;;  %v1804_v5 = vor.u32 %v1803_v58, %v1799_v23 }
 0x2b8   : > { %v1220_v10 = vor.u32 %v1218_v26, %v1217_v36  ;;  %v1305_v48 = vsel %vm7799_vm2, %v1217_v36, 0  ;;  %v1069_v4 = vmax.f32 %v997_v37, 0.0  ;;  %v2262_v52 = vrot.slane %v2260_v40, 1 }
 0x2b9   : > { %v5529_v30 = vcombine.low %v1305_v48, %v1305_v48  ;;  %v1808_v55 = vrot.slane %v1806_v46, 1  ;;  %v2270_v56 = vrot.slane %v2268_v50, 1  ;;  %v1810_v53 = vshrl.u32 %v8069_v33, 16 }
 0x2ba   : > { %v1221_v60 = vsel %vm1116_vm0, %v1210_v54, %v1220_v10  ;;  %v1105_v62 = vpack.c.bf16 %v1069_v4, %v1068_v42  ;;  %v2263_v1 = vsel %vm1697_vm3, %v2258_v2, %v2262_v52  ;;  %v2266_v3 = vor.u32 %v2264_v25, %v2262_v52 }
 0x2bb   : > { %v5527_v9 = vcombine.low %v1221_v60, %v1221_v60  ;;  %v5528_v11 = vcombine.high %v1221_v60, %v1221_v60  ;;  %1513 = vst [vmem:[#allocation2 + $0x88] sm:$0x1] %v5529_v30  ;;  %v1001_v12 = vpop.f32.mrb[60].mxu0  ;;  %2716 = vmatprep.mubr.bf16.mxu1 %v2263_v1  ;;  %v1809_v15 = vsel %vm1697_vm3, %v1804_v5, %v1808_v55  ;;  %v1814_v20 = vshll.u32 %v8084_v28, 16 }
 0x2bc   : > { %v1223_v16 = vshrl.u32 %v1105_v62, 16  ;;  %v1226_v17 = vshll.u32 %v1105_v62, 16  ;;  %v1002_v23 = vadd.f32 %v8032_v45, %v1001_v12  ;;  %v1003_v32 = vpop.f32.mrb[61].mxu0  ;;  %3198 = vmatprep.mubr.bf16.mxu0 %v1809_v15  ;;  %2717 = vmatmul.mubr.bf16.gmra.mrb[32].mxu1 %v8042_v39  ;;  %v2271_v54 = vsel %vm1697_vm3, %v2266_v3, %v2270_v56  ;;  %v2024_v18 = vld [vmem:[#allocation2 + $0x78] sm:$0xf] }
 0x2bd   : > { %1511 = vst [vmem:[#allocation2 + $0x80] sm:$0xf] %v5527_v9  ;;  %1512 = vst [vmem:[#allocation2 + $0x84] sm:$0xf] %v5528_v11  ;;  %v1004_v49 = vpop.f32.mrb[62].mxu0  ;;  %2724 = vmatprep.mubr.bf16.mxu1 %v2271_v54  ;;  %v1812_v63 = vor.u32 %v1810_v53, %v1808_v55  ;;  %v1816_v31 = vrot.slane %v1814_v20, 1 }
 0x2be   : > { %v8094_v21 = vld [vmem:[#allocation2 + $0x7c] sm:$0xf]  ;;  %v1553_v58 = vld [vmem:[#allocation2 + $0x78] sm:$0xf]  ;;  %v1225_v14 = vrot.slane %v1223_v16, 7  ;;  %v1070_v22 = vmax.f32 %v1002_v23, 0.0  ;;  %v1005_v26 = vadd.f32 %v8032_v45, %v1004_v49  ;;  %3199 = vmatmul.mubr.bf16.gmra.mrb[120].mxu0 %v8047_v13 }
 0x2bf   : > { %v1006_v24 = vpop.f32.mrb[63].mxu0  ;;  %v8099_v39 = vcombine.low %v2024_v18, %v8094_v21  ;;  %v8101_v19 = vld [vmem:[#allocation2 + $0x7c] sm:$0xf]  ;;  %v2392_v37 = vrot.slane %v5605_v59, 1  ;;  %v2393_v38 = vrot.slane %v8067_v29, 1  ;;  %v1817_v13 = vsel %vm1697_vm3, %v1812_v63, %v1816_v31 }
 0x2c0   : > { %v8104_v36 = vcombine.low %v1553_v58, %v8101_v19  ;;  %v1228_v2 = vor.u32 %v1226_v17, %v1225_v14  ;;  %v1071_v40 = vmax.f32 %v1005_v26, 0.0  ;;  %v8115_v48 = vld [vmem:[#allocation2 + $0x78] sm:$0xe]  ;;  %3206 = vmatprep.mubr.bf16.mxu0 %v1817_v13  ;;  %v2395_v62 = vrot.slane %v8062_v27, 1 }
 0x2c1   : > { %v2273_v42 = vshrl.u32 %v8099_v39, 16  ;;  %v2275_v46 = vshll.u32 %v8099_v39, 16  ;;  %v8113_v10 = vsel %vm1898_vm4, %v2392_v37, %v2393_v38  ;;  %v5606_v27 = vcombine.low %v8115_v48, %v8094_v21 }
 0x2c2   : > { %v1819_v25 = vshrl.u32 %v8104_v36, 16  ;;  %v1821_v50 = vshll.u32 %v8104_v36, 16  ;;  %v1296_v59 = vsel %vm7799_vm2, 0, %v1228_v2  ;;  %v1106_v4 = vpack.c.bf16 %v1071_v40, %v1070_v22  ;;  %v8119_v60 = vld [vmem:[#allocation2 + $0x88] ss:$0 sps:$4 sm:$0x11]  }
 0x2c3   : > { %v2277_v52 = vrot.slane %v2275_v46, 1  ;;  %v5530_v30 = vcombine.low %v1296_v59, %v1296_v59  ;;  %v5531_v5 = vcombine.high %v1296_v59, %v1296_v59  ;;  %v1009_v55 = vpop.f32.mrb[64].mxu0  ;;  %v8129_v16 = vsel %vm1898_vm4, %v2393_v38, %v2395_v62  ;;  %v8141_v24 = vld [vmem:[#allocation2 + $0x88] ss:$0 sps:$4 sm:$0x11]  }
 0x2c4   : > { %v1823_v56 = vrot.slane %v1821_v50, 1  ;;  %v1230_v1 = vshrl.u32 %v1106_v4, 16  ;;  %v1233_v3 = vshll.u32 %v1106_v4, 16  ;;  %v1010_v9 = vadd.f32 %v8032_v45, %v1009_v55  ;;  %v1011_v11 = vpop.f32.mrb[65].mxu0  ;;  %2725 = vmatmul.mubr.bf16.gmra.mrb[36].mxu1 %v8067_v29  ;;  %v8124_v12 = vld [vmem:[#allocation2 + $0x80] sm:$0xff]  }
 0x2c5   : > { %1514 = vst [vmem:[#allocation2 + $0x8c] sm:$0xf] %v5530_v30  ;;  %1515 = vst [vmem:[#allocation2 + $0x90] sm:$0xf] %v5531_v5  ;;  %v1012_v15 = vpop.f32.mrb[66].mxu0  ;;  %v8126_v53 = vld [vmem:[#allocation2 + $0x80] sm:$0xff]   ;;  %v2278_v29 = vor.u32 %v2277_v52, %v2273_v42 }
 0x2c6   : > { %v1232_v17 = vrot.slane %v1230_v1, 7  ;;  %v1013_v23 = vadd.f32 %v8032_v45, %v1012_v15  ;;  %v1014_v32 = vpop.f32.mrb[67].mxu0  ;;  %3207 = vmatmul.mubr.bf16.gmra.mrb[124].mxu0 %v8069_v33  ;;  %v2280_v54 = vshll.u32 %v8124_v12, 16  ;;  %v1072_v18 = vmax.f32 %v1010_v9, 0.0 }
 0x2c7   : > { %v1826_v49 = vshll.u32 %v8126_v53, 16  ;;  %v2284_v63 = vshrl.u32 %v8124_v12, 16  ;;  %v2288_v20 = vshll.u32 %v8119_v60, 16  ;;  %v1824_v37 = vor.u32 %v1823_v56, %v1819_v25 }
 0x2c8   : > { %v1235_v58 = vor.u32 %v1233_v3, %v1232_v17  ;;  %v1306_v21 = vsel %vm7799_vm2, %v1232_v17, 0  ;;  %v1073_v22 = vmax.f32 %v1013_v23, 0.0  ;;  %v2282_v26 = vrot.slane %v2280_v54, 1 }
 0x2c9   : > { %v5534_v31 = vcombine.low %v1306_v21, %v1306_v21  ;;  %v1828_v38 = vrot.slane %v1826_v49, 1  ;;  %v2290_v2 = vrot.slane %v2288_v20, 1  ;;  %v1830_v52 = vshrl.u32 %v8126_v53, 16 }
 0x2ca   : > { %v1236_v40 = vsel %vm1116_vm0, %v1225_v14, %v1235_v58  ;;  %v1107_v42 = vpack.c.bf16 %v1073_v22, %v1072_v18  ;;  %v2283_v46 = vsel %vm1697_vm3, %v2278_v29, %v2282_v26  ;;  %v2286_v13 = vor.u32 %v2284_v63, %v2282_v26 }
 0x2cb   : > { %v5532_v50 = vcombine.low %v1236_v40, %v1236_v40  ;;  %v5533_v48 = vcombine.high %v1236_v40, %v1236_v40  ;;  %1518 = vst [vmem:[#allocation2 + $0x9c] sm:$0x1] %v5534_v31  ;;  %v1017_v59 = vpop.f32.mrb[68].mxu0  ;;  %2732 = vmatprep.mubr.bf16.mxu1 %v2283_v46  ;;  %v1829_v4 = vsel %vm1697_vm3, %v1824_v37, %v1828_v38  ;;  %v1834_v3 = vshll.u32 %v8141_v24, 16 }
 0x2cc   : > { %v1238_v30 = vshrl.u32 %v1107_v42, 16  ;;  %v1241_v25 = vshll.u32 %v1107_v42, 16  ;;  %v1018_v5 = vadd.f32 %v8032_v45, %v1017_v59  ;;  %v1019_v55 = vpop.f32.mrb[69].mxu0  ;;  %3214 = vmatprep.mubr.bf16.mxu0 %v1829_v4  ;;  %2733 = vmatmul.mubr.bf16.gmra.mrb[40].mxu1 %v8099_v39  ;;  %v2291_v14 = vsel %vm1697_vm3, %v2286_v13, %v2290_v2  ;;  %v2028_v56 = vld [vmem:[#allocation2 + $0x8c] sm:$0xf] }
 0x2cd   : > { %1516 = vst [vmem:[#allocation2 + $0x94] sm:$0xf] %v5532_v50  ;;  %1517 = vst [vmem:[#allocation2 + $0x98] sm:$0xf] %v5533_v48  ;;  %v1020_v62 = vpop.f32.mrb[70].mxu0  ;;  %2740 = vmatprep.mubr.bf16.mxu1 %v2291_v14  ;;  %v1832_v1 = vor.u32 %v1830_v52, %v1828_v38  ;;  %v1836_v54 = vrot.slane %v1834_v3, 1 }
 0x2ce   : > { %v2029_v9 = vld [vmem:[#allocation2 + $0x90] sm:$0xf]  ;;  %v1557_v11 = vld [vmem:[#allocation2 + $0x8c] sm:$0xf]  ;;  %v8152_v15 = vrot.slane %v1238_v30, 7  ;;  %v1074_v17 = vmax.f32 %v1018_v5, 0.0  ;;  %v1021_v23 = vadd.f32 %v8032_v45, %v1020_v62  ;;  %3215 = vmatmul.mubr.bf16.gmra.mrb[128].mxu0 %v8104_v36 }
 0x2cf   : > { %v1022_v32 = vpop.f32.mrb[71].mxu0  ;;  %v8156_v39 = vcombine.low %v2028_v56, %v2029_v9  ;;  %v8158_v29 = vld [vmem:[#allocation2 + $0x90] sm:$0xf]  ;;  %v2397_v49 = vrot.slane %v5606_v27, 1  ;;  %v2398_v63 = vrot.slane %v8124_v12, 1  ;;  %v1837_v26 = vsel %vm1697_vm3, %v1832_v1, %v1836_v54 }
 0x2d0   : > { %v8161_v18 = vcombine.low %v1557_v11, %v8158_v29  ;;  %v2050_v20 = vld [vmem:[#allocation2 + $0x8c] sm:$0xe]  ;;  %v1243_v58 = vor.u32 %v1241_v25, %v8152_v15  ;;  %v1075_v21 = vmax.f32 %v1021_v23, 0.0  ;;  %3222 = vmatprep.mubr.bf16.mxu0 %v1837_v26  ;;  %v2400_v59 = vrot.slane %v8119_v60, 1 }
 0x2d1   : > { %v2293_v22 = vshrl.u32 %v8156_v39, 16  ;;  %v2295_v36 = vshll.u32 %v8156_v39, 16  ;;  %v8171_v38 = vsel %vm1898_vm4, %v2397_v49, %v2398_v63  ;;  %v5607_v42 = vcombine.low %v2050_v20, %v2029_v9 }
 0x2d2   : > { %v1839_v31 = vshrl.u32 %v8161_v18, 16  ;;  %v1841_v37 = vshll.u32 %v8161_v18, 16  ;;  %v1297_v27 = vsel %vm7799_vm2, 0, %v1243_v58  ;;  %v1108_v2 = vpack.c.bf16 %v1075_v21, %v1074_v17  ;;  %v6824_v48 = vld [vmem:[#allocation2 + $0x9c] ss:$0 sps:$4 sm:$0x11]  }
 0x2d3   : > { %v2297_v40 = vrot.slane %v2295_v36, 1  ;;  %v5535_v46 = vcombine.low %v1297_v27, %v1297_v27  ;;  %v5536_v13 = vcombine.high %v1297_v27, %v1297_v27  ;;  %v1025_v4 = vpop.f32.mrb[72].mxu0  ;;  %v2308_v55 = vshll.u32 %v6824_v48, 16  ;;  %v8189_v1 = vld [vmem:[#allocation2 + $0x9c] ss:$0 sps:$4 sm:$0x11]  }
 0x2d4   : > { %v1843_v50 = vrot.slane %v1841_v37, 1  ;;  %v1245_v52 = vshrl.u32 %v1108_v2, 16  ;;  %v1248_v30 = vshll.u32 %v1108_v2, 16  ;;  %2741 = vmatmul.mubr.bf16.gmra.mrb[44].mxu1 %v8124_v12  ;;  %v8181_v25 = vld [vmem:[#allocation2 + $0x94] sm:$0xff]   ;;  %v8184_v14 = vsel %vm1898_vm4, %v2398_v63, %v2400_v59  ;;  %v1027_v32 = vpop.f32.mrb[73].mxu0 }
 0x2d5   : > { %1519 = vst [vmem:[#allocation2 + $0xa0] sm:$0xf] %v5535_v46  ;;  %1520 = vst [vmem:[#allocation2 + $0xa4] sm:$0xf] %v5536_v13  ;;  %v2298_v5 = vor.u32 %v2297_v40, %v2293_v22  ;;  %v8187_v62 = vld [vmem:[#allocation2 + $0x94] sm:$0xff]   ;;  %v2402_v3 = vrot.slane %v5607_v42, 1  ;;  %v1026_v12 = vadd.f32 %v8032_v45, %v1025_v4 }
 0x2d6   : > { %v1247_v56 = vrot.slane %v1245_v52, 7  ;;  %3223 = vmatmul.mubr.bf16.gmra.mrb[132].mxu0 %v8126_v53  ;;  %v1844_v60 = vor.u32 %v1843_v50, %v1839_v31  ;;  %v2300_v9 = vshll.u32 %v8181_v25, 16  ;;  %v2304_v11 = vshrl.u32 %v8181_v25, 16  ;;  %v1028_v58 = vpop.f32.mrb[74].mxu0 }
 0x2d7   : > { %v2310_v17 = vrot.slane %v2308_v55, 1  ;;  %v2403_v23 = vrot.slane %v8181_v25, 1  ;;  %v1846_v63 = vshll.u32 %v8187_v62, 16  ;;  %v1850_v20 = vshrl.u32 %v8187_v62, 16  ;;  %v1030_v31 = vpop.f32.mrb[75].mxu0 }
 0x2d8   : > { %v1250_v54 = vor.u32 %v1248_v30, %v1247_v56  ;;  %v1307_v49 = vsel %vm7799_vm2, %v1247_v56, 0  ;;  %v2302_v22 = vrot.slane %v2300_v9, 1  ;;  %v1854_v36 = vshll.u32 %v8189_v1, 16 }
 0x2d9   : > { %v5539_v21 = vcombine.low %v1307_v49, %v1307_v49  ;;  %v8201_v26 = vsel %vm1898_vm4, %v2402_v3, %v2403_v23  ;;  %v1848_v27 = vrot.slane %v1846_v63, 1  ;;  %v2405_v2 = vrot.slane %v6824_v48, 1 }
 0x2da   : > { %v1251_v37 = vsel %vm1116_vm0, %v8152_v15, %v1250_v54  ;;  %v1076_v40 = vmax.f32 %v1026_v12, 0.0  ;;  %v2303_v13 = vsel %vm1697_vm3, %v2298_v5, %v2302_v22  ;;  %v2306_v50 = vor.u32 %v2304_v11, %v2302_v22 }
 0x2db   : > { %v5537_v42 = vcombine.low %v1251_v37, %v1251_v37  ;;  %v5538_v46 = vcombine.high %v1251_v37, %v1251_v37  ;;  %1523 = vst [vmem:[#allocation2 + $0xb0] sm:$0x1] %v5539_v21  ;;  %v1033_v59 = vpop.f32.mrb[76].mxu0  ;;  %2748 = vmatprep.mubr.bf16.mxu1 %v2303_v13  ;;  %v1849_v4 = vsel %vm1697_vm3, %v1844_v60, %v1848_v27  ;;  %v1856_v30 = vrot.slane %v1854_v36, 1 }
 0x2dc   : > { %v1852_v52 = vor.u32 %v1850_v20, %v1848_v27  ;;  %v2032_v55 = vld [vmem:[#allocation2 + $0xa0] sm:$0xf]  ;;  %v2033_v56 = vld [vmem:[#allocation2 + $0xa4] sm:$0xf]  ;;  %v8209_v3 = vsel %vm1898_vm4, %v2403_v23, %v2405_v2  ;;  %v1035_v15 = vpop.f32.mrb[77].mxu0  ;;  %3230 = vmatprep.mubr.bf16.mxu0 %v1849_v4  ;;  %2749 = vmatmul.mubr.bf16.gmra.mrb[48].mxu1 %v8156_v39  ;;  %v2311_v48 = vsel %vm1697_vm3, %v2306_v50, %v2310_v17  ;;  %v1109_v12 = vstv %s1085_s25 }
 0x2dd   : > { %1521 = vst [vmem:[#allocation2 + $0xa8] sm:$0xf] %v5537_v42  ;;  %1522 = vst [vmem:[#allocation2 + $0xac] sm:$0xf] %v5538_v46  ;;  %v5591_v5 = vcombine.low %v2032_v55, %v2033_v56  ;;  %v1036_v9 = vpop.f32.mrb[78].mxu0  ;;  %2756 = vmatprep.mubr.bf16.mxu1 %v2311_v48  ;;  %v1029_v23 = vadd.f32 %v8032_v45, %v1028_v58  ;;  %v1034_v49 = vadd.f32 %v8032_v45, %v1033_v59 }
 0x2de   : > { %3231 = vmatmul.mubr.bf16.gmra.mrb[136].mxu0 %v8161_v18  ;;  %v1857_v60 = vsel %vm1697_vm3, %v1852_v52, %v1856_v30  ;;  %v2051_v11 = vld [vmem:[#allocation2 + $0xa0] sm:$0xe]  ;;  %v1038_v32 = vpop.f32.mrb[79].mxu0  ;;  %v1037_v39 = vadd.f32 %v8032_v45, %v1036_v9  ;;  %v1110_v63 = vmul.f32 %v1109_v12, %v1076_v40  ;;  %v1574_v45 = vld [vmem:[#allocation2 + $0x64] sm:$0xe]  ;;  %v1930_v51 = vrot.slane %v8126_v53, 1 }
 0x2df   : > { %3238 = vmatprep.mubr.bf16.mxu0 %v1857_v60  ;;  %v2315_v54 = vshll.u32 %v5591_v5, 16  ;;  %v1077_v17 = vmax.f32 %v1029_v23, 0.0  ;;  %v5608_v21 = vcombine.low %v2051_v11, %v2033_v56  ;;  %v1078_v22 = vmax.f32 %v1034_v49, 0.0  ;;  %v1575_v60 = vld [vmem:[#allocation2 + $0x78] sm:$0xe] }
 0x2e0   : > { %v1079_v36 = vmax.f32 %v1037_v39, 0.0  ;;  %v2313_v37 = vshrl.u32 %v5591_v5, 16  ;;  %v5574_v32 = vcombine.low %v1574_v45, %v8044_v44 }
 0x2e1   : > { %v2317_v20 = vrot.slane %v2315_v54, 1  ;;  %v1111_v18 = vmul.f32 %v1109_v12, %v1077_v17  ;;  %v1112_v27 = vmul.f32 %v1109_v12, %v1078_v22  ;;  %v2407_v13 = vrot.slane %v5608_v21, 1  ;;  %v1576_v54 = vld [vmem:[#allocation2 + $0x8c] sm:$0xe] }
 0x2e2   : > { %v6829_v31 = vld [vmem:[#allocation2 + $0xb0] ss:$0 sps:$4 sm:$0x11]   ;;  %v1113_v2 = vmul.f32 %v1109_v12, %v1079_v36  ;;  %v5575_v22 = vcombine.low %v1575_v60, %v8101_v19 }
 0x2e3   : > { %v1114_v58 = vpack.c.bf16 %v1111_v18, %v1110_v63  ;;  %v2318_v46 = vor.u32 %v2317_v20, %v2313_v37  ;;  %v2328_v59 = vshll.u32 %v6829_v31, 16  ;;  %v2410_v52 = vrot.slane %v6829_v31, 1 }
 0x2e4   : > { %v8218_v42 = vld [vmem:[#allocation2 + $0xa8] sm:$0xff]   ;;  %2757 = vmatmul.mubr.bf16.gmra.mrb[52].mxu1 %v8181_v25  ;;  %v1115_v50 = vpack.c.bf16 %v1113_v2, %v1112_v27  ;;  %v5576_v18 = vcombine.low %v1576_v54, %v8158_v29  ;;  %v1924_v27 = vrot.slane %v5574_v32, 1  ;;  %v1925_v2 = vrot.slane %v8069_v33, 1  ;;  %v6854_v32 = vld [vmem:[#allocation11 + $0x190] sm:$0xff]  }
 0x2e5   : > { %v2320_v40 = vshll.u32 %v8218_v42, 16  ;;  %v2408_v4 = vrot.slane %v8218_v42, 1  ;;  %v1253_v30 = vshrl.u32 %v1114_v58, 16  ;;  %v1256_v55 = vshll.u32 %v1114_v58, 16 }
 0x2e6   : > { %3239 = vmatmul.mubr.bf16.gmra.mrb[140].mxu0 %v8187_v62  ;;  %v1260_v56 = vshrl.u32 %v1115_v50, 16  ;;  %v1263_v15 = vshll.u32 %v1115_v50, 16  ;;  %v2324_v25 = vshrl.u32 %v8218_v42, 16  ;;  %v2330_v63 = vrot.slane %v2328_v59, 1 }
 0x2e7   : > { %4606 = vmatprep.mubr.bf16.mxu0 %v8941_v0  ;;  %v2322_v48 = vrot.slane %v2320_v40, 1  ;;  %v8227_v12 = vsel %vm1898_vm4, %v2407_v13, %v2408_v4  ;;  %v8230_v9 = vsel %vm1898_vm4, %v2408_v4, %v2410_v52  ;;  %v1255_v11 = vrot.slane %v1253_v30, 7 }
 0x2e8   : > { %v1262_v23 = vrot.slane %v1260_v56, 7  ;;  %v8244_v19 = vsel %vm1898_vm4, %v1924_v27, %v1925_v2  ;;  %v1927_v29 = vrot.slane %v8084_v28, 1  ;;  %v1932_v33 = vrot.slane %v8141_v24, 1  ;;  %v6833_v24 = vld [vmem:[#allocation11 + $0x88] sm:$0xff]   ;;  %v6942_v27 = vld [vmem:[#allocation2 + $0x44] sm:$0xff]  }
 0x2e9   : > { %v2323_v49 = vsel %vm1697_vm3, %v2318_v46, %v2322_v48  ;;  %v2326_v39 = vor.u32 %v2324_v25, %v2322_v48  ;;  %v1258_v17 = vor.u32 %v1256_v55, %v1255_v11  ;;  %v1934_v45 = vrot.slane %v5576_v18, 1  ;;  %v6837_v55 = vld [vmem:[#allocation11 + $0x98] sm:$0xff]   ;;  %v6853_v25 = vld [vmem:[#allocation11 + $0x1d0] sm:$0xff]  }
 0x2ea   : > { %2764 = vmatprep.mubr.bf16.mxu1 %v2323_v49  ;;  %v1265_v20 = vor.u32 %v1263_v15, %v1262_v23  ;;  %v1308_v21 = vsel %vm7799_vm2, %v1262_v23, 0  ;;  %v1935_v40 = vrot.slane %v8187_v62, 1  ;;  %v8251_v59 = vsel %vm1898_vm4, %v1925_v2, %v1927_v29  ;;  %v6935_v62 = vld [vmem:[#allocation11 + $0x80] sm:$0xff]  }
 0x2eb   : > { %v2331_v36 = vsel %vm1697_vm3, %v2326_v39, %v2330_v63  ;;  %v5544_v31 = vcombine.low %v1308_v21, %v1308_v21  ;;  %v1298_v44 = vsel %vm7799_vm2, 0, %v1258_v17  ;;  %v1937_v4 = vrot.slane %v8189_v1, 1  ;;  %v6835_v1 = vld [vmem:[#allocation11 + $0x90] sm:$0xff]   ;;  %v1571_v15 = vld [vmem:[#allocation2 + $0x28] sm:$0xe] }
 0x2ec   : > { %2765 = vmatmul.mubr.bf16.gmra.mrb[56].mxu1 %v5591_v5  ;;  %v1266_v37 = vsel %vm1116_vm0, %v1255_v11, %v1265_v20  ;;  %v5540_v58 = vcombine.low %v1298_v44, %v1298_v44  ;;  %v5541_v46 = vcombine.high %v1298_v44, %v1298_v44  ;;  %v1929_v5 = vrot.slane %v5575_v22, 1  ;;  %v6940_v11 = vld [vmem:[#allocation2 + $0x24] ss:$0 sps:$4 sm:$0x11]   ;;  %v1572_v20 = vld [vmem:[#allocation2 + $0x3c] sm:$0xe] }
 0x2ed   : > { %2772 = vmatprep.mubr.bf16.mxu1 %v2331_v36  ;;  %v5542_v13 = vcombine.low %v1266_v37, %v1266_v37  ;;  %v5543_v50 = vcombine.high %v1266_v37, %v1266_v37  ;;  %1528 = vst [vmem:[#allocation2 + $0xc4] sm:$0x1] %v5544_v31  ;;  %v8258_v28 = vsel %vm1898_vm4, %v1930_v51, %v1932_v33  ;;  %v1907_v23 = vrot.slane %v6940_v11, 1  ;;  %v6856_v39 = vld [vmem:[#allocation11 + $0x1d8] sm:$0xff]   ;;  %v6859_v44 = vld [vmem:[#allocation11 + $0x1e0] sm:$0xff]   ;;  %v6862_v33 = vld [vmem:[#allocation11 + $0x1e8] sm:$0xff]  }
 0x2ee   : > { %1524 = vst [vmem:[#allocation2 + $0xb4] sm:$0xf] %v5540_v58  ;;  %1525 = vst [vmem:[#allocation2 + $0xb8] sm:$0xf] %v5541_v46  ;;  %v8255_v52 = vsel %vm1898_vm4, %v1929_v5, %v1930_v51  ;;  %v8261_v30 = vsel %vm1898_vm4, %v1934_v45, %v1935_v40  ;;  %v8264_v53 = vsel %vm1898_vm4, %v1935_v40, %v1937_v4  ;;  %v6857_v36 = vld [vmem:[#allocation11 + $0x198] sm:$0xff]   ;;  %v1915_v2 = vrot.slane %v6942_v27, 1 }
 0x2ef   : > { %1526 = vst [vmem:[#allocation2 + $0xbc] sm:$0xf] %v5542_v13  ;;  %1527 = vst [vmem:[#allocation2 + $0xc0] sm:$0xf] %v5543_v50  ;;  %v6941_v31 = vld [vmem:[#allocation2 + $0x40] sm:$0xf] }
 0x2f0   : > { %v5572_v18 = vcombine.low %v1572_v20, %v6941_v31  ;;  %v6943_v46 = vld [vmem:[#allocation2 + $0x38] ss:$0 sps:$4 sm:$0x11]   ;;  %v6860_v50 = vld [vmem:[#allocation11 + $0x1a0] sm:$0xff]  }
 0x2f1   : > { %v1912_v13 = vrot.slane %v6943_v46, 1  ;;  %v1573_v4 = vld [vmem:[#allocation2 + $0x50] sm:$0xe] }
 0x2f2   : > { %v1914_v51 = vrot.slane %v5572_v18, 1 }
 0x2f4   : > { %2773 = vmatmul.mubr.bf16.gmra.mrb[60].mxu1 %v8218_v42  ;;  %v6839_v42 = vld [vmem:[#allocation11 + $0xa0] sm:$0xff]  }
 0x2f5   : > { %6227 = vmatprep.mubr.bf16.mxu1 %v7890_v57  ;;  %v6841_v57 = vld [vmem:[#allocation11 + $0xa8] sm:$0xff]  }
 0x2fc   : > { %6228 = vmatmul.mubr.bf16.vlgmr.msra.gmra.mrb[64].mxu1 %v7898_v61  ;;  %v6843_v61 = vld [vmem:[#allocation11 + $0xb0] sm:$0xff]  }
 0x2fd   : > { %6260 = vmatpush3.bf16.msra.mxu1 %v6935_v62  ;;  %6231 = vmatprep.mubr.bf16.mxu1 %v7948_v35  ;;  %v6845_v35 = vld [vmem:[#allocation11 + $0xb8] sm:$0xff]   ;;  %v1916_v62 = vsel %vm1898_vm4, %v1914_v51, %v1915_v2 }
 0x2fe   : > { %6261 = vmatprep.subr.bf16.mxu1 %v6833_v24 }
 0x301   : > { %6262 = vmatpush3.bf16.msra.mxu1 %v6833_v24 }
 0x302   : > { %6263 = vmatprep.subr.bf16.mxu1 %v6835_v1 }
 0x304   : > { %6232 = vmatmul.mubr.bf16.gmra.mrb[68].mxu1 %v7964_v41  ;;  %v6847_v41 = vld [vmem:[#allocation11 + $0x1c0] sm:$0xff]  }
 0x305   : > { %6235 = vmatprep.mubr.bf16.mxu1 %v8000_v47  ;;  %6264 = vmatpush3.bf16.msra.mxu1 %v6835_v1  ;;  %v1570_v47 = vld [vmem:[#allocation2 + $0x14] sm:$0xe] }
 0x306   : > { %6265 = vmatprep.subr.bf16.mxu1 %v6837_v55  ;;  %v6863_v1 = vld [vmem:[#allocation11 + $0x1a8] sm:$0xff]  }
 0x309   : > { %6266 = vmatpush3.bf16.msra.mxu1 %v6837_v55 }
 0x30a   : > { %6267 = vmatprep.subr.bf16.mxu1 %v6839_v42 }
 0x30c   : > { %6236 = vmatmul.mubr.bf16.gmra.mrb[72].mxu1 %v8016_v6  ;;  %v6936_v6 = vld [vmem:[#allocation2 + $0x18] sm:$0xf] }
 0x30d   : > { %6239 = vmatprep.mubr.bf16.mxu1 %v8056_v43  ;;  %6268 = vmatpush3.bf16.msra.mxu1 %v6839_v42  ;;  %v5570_v43 = vcombine.low %v1570_v47, %v6936_v6  ;;  %v6944_v42 = vld [vmem:[#allocation2 + $0x54] sm:$0xf] }
 0x30e   : > { %6269 = vmatprep.subr.bf16.mxu1 %v6841_v57 }
 0x30f   : > { %v1904_v56 = vrot.slane %v5570_v43, 1  ;;  %v6945_v43 = vld [vmem:[#allocation2 + $0x58] sm:$0xff]  }
 0x311   : > { %6270 = vmatpush3.bf16.msra.mxu1 %v6841_v57  ;;  %v5573_v57 = vcombine.low %v1573_v4, %v6944_v42  ;;  %v3409_v42 = vld [vmem:[#allocation2 + $0x28] sm:$0xf] }
 0x312   : > { %6271 = vmatprep.subr.bf16.mxu1 %v6843_v61 }
 0x314   : > { %6240 = vmatmul.mubr.bf16.gmra.mrb[76].mxu1 %v8072_v34  ;;  %v6937_v34 = vld [vmem:[#allocation2 + $0x1c] sm:$0xff]  }
 0x315   : > { %6243 = vmatprep.mubr.bf16.mxu1 %v8113_v10  ;;  %6272 = vmatpush3.bf16.msra.mxu1 %v6843_v61  ;;  %v1905_v10 = vrot.slane %v6937_v34, 1  ;;  %v6865_v61 = vld [vmem:[#allocation11 + $0x1f0] sm:$0xff]   ;;  %v1920_v34 = vrot.slane %v6945_v43, 1 }
 0x316   : > { %6273 = vmatprep.subr.bf16.mxu1 %v6845_v35 }
 0x317   : > { %v1908_v17 = vsel %vm1898_vm4, %v1905_v10, %v1907_v23 }
 0x319   : > { %6274 = vmatpush3.bf16.msra.mxu1 %v6845_v35 }
 0x31a   : > { %6075 = vmatprep.subr.bf16.mxu1 %v6847_v41 }
 0x31c   : > { %6244 = vmatmul.mubr.bf16.gmra.mrb[80].mxu1 %v8129_v16  ;;  %v6848_v16 = vld [vmem:[#allocation11 + $0x180] sm:$0xff]  }
 0x31d   : > { %6247 = vmatprep.mubr.bf16.mxu1 %v8171_v38  ;;  %v6850_v38 = vld [vmem:[#allocation11 + $0x1c8] sm:$0xff]  }
 0x324   : > { %6248 = vmatmul.mubr.bf16.gmra.mrb[84].mxu1 %v8184_v14  ;;  %v1906_v14 = vsel %vm1898_vm4, %v1904_v56, %v1905_v10  ;;  %v6946_v56 = vld [vmem:[#allocation2 + $0x4c] ss:$0 sps:$4 sm:$0x11]  }
 0x325   : > { %6251 = vmatprep.mubr.bf16.mxu1 %v8201_v26  ;;  %v6851_v26 = vld [vmem:[#allocation11 + $0x188] sm:$0xff]  }
 0x32c   : > { %6252 = vmatmul.mubr.bf16.gmra.mrb[88].mxu1 %v8209_v3  ;;  %v6938_v3 = vld [vmem:[#allocation2 + $0x2c] sm:$0xf] }
 0x32d   : > { %6255 = vmatprep.mubr.bf16.mxu1 %v8227_v12  ;;  %v5571_v48 = vcombine.low %v1571_v15, %v6938_v3  ;;  %v6939_v12 = vld [vmem:[#allocation2 + $0x30] sm:$0xff]   ;;  %v6866_v15 = vld [vmem:[#allocation11 + $0x1b0] sm:$0xff]  }
 0x334   : > { %6256 = vmatmul.mubr.bf16.gmra.mrb[92].mxu1 %v8230_v9  ;;  %v1910_v9 = vrot.slane %v6939_v12, 1 }
 0x335   : > { %6275 = vmatprep.mubr.bf16.mxu1 %v7825_v7 }
 0x336   : > { %v1913_v40 = vsel %vm1898_vm4, %v1910_v9, %v1912_v13 }
 0x33c   : > { %6276 = vmatmul.mubr.bf16.vlgmr.msra.gmra.mrb[64].mxu1 %v7828_v8  ;;  %v1909_v8 = vrot.slane %v5571_v48, 1 }
 0x33d   : > { %6076 = vmatpush3.bf16.msra.mxu1 %v6848_v16  ;;  %6279 = vmatprep.mubr.bf16.mxu1 %v1906_v14 }
 0x33e   : > { %6077 = vmatprep.subr.bf16.mxu1 %v6850_v38  ;;  %v1911_v22 = vsel %vm1898_vm4, %v1909_v8, %v1910_v9  ;;  %v1917_v38 = vrot.slane %v6946_v56, 1 }
 0x340   : > { %v5955_v7 = vpop.f32.mrb[80].mxu0  ;;  %v1918_v9 = vsel %vm1898_vm4, %v1915_v2, %v1917_v38 }
 0x341   : > { %v5956_v60 = vpop.f32.mrb[81].mxu0  ;;  %6078 = vmatpush3.bf16.msra.mxu1 %v6851_v26 }
 0x342   : > { %v5957_v54 = vadd.f32 %v5956_v60, %v5955_v7  ;;  %v5958_v49 = vpop.f32.mrb[82].mxu0  ;;  %6079 = vmatprep.subr.bf16.mxu1 %v6853_v25  ;;  %v1919_v25 = vrot.slane %v5573_v57, 1  ;;  %v6868_v7 = vld [vmem:[#allocation11 + $0x1f8] sm:$0xff]  }
 0x343   : > { %v5959_v63 = vpop.f32.mrb[83].mxu0 }
 0x344   : > { %v5960_v21 = vadd.f32 %v5959_v63, %v5958_v49  ;;  %6280 = vmatmul.mubr.bf16.gmra.mrb[68].mxu1 %v1908_v17  ;;  %v1921_v23 = vsel %vm1898_vm4, %v1919_v25, %v1920_v34  ;;  %v8296_v49 = vld [vmem:[#allocation11 + $0x200] sm:$0xff]  }
 0x345   : > { %6283 = vmatprep.mubr.bf16.mxu1 %v1911_v22  ;;  %6080 = vmatpush3.bf16.msra.mxu1 %v6854_v32  ;;  %v6869_v32 = vld [vmem:[#allocation11 + $0x1b8] sm:$0xff]  }
 0x346   : > { %6081 = vmatprep.subr.bf16.mxu1 %v6856_v39 }
 0x348   : > { %v5961_v37 = vpop.f32.mrb[84].mxu0 }
 0x349   : > { %v5962_v58 = vpop.f32.mrb[85].mxu0  ;;  %6082 = vmatpush3.bf16.msra.mxu1 %v6857_v36  ;;  %v6947_v36 = vld [vmem:[#allocation2 + $0x60] ss:$0 sps:$4 sm:$0x11]  }
 0x34a   : > { %v5963_v29 = vadd.f32 %v5962_v58, %v5961_v37  ;;  %v5964_v5 = vpop.f32.mrb[86].mxu0  ;;  %6083 = vmatprep.subr.bf16.mxu1 %v6859_v44 }
 0x34b   : > { %v5965_v45 = vpop.f32.mrb[87].mxu0 }
 0x34c   : > { %v5966_v24 = vadd.f32 %v5965_v45, %v5964_v5  ;;  %6284 = vmatmul.mubr.bf16.gmra.mrb[72].mxu1 %v1913_v40 }
 0x34d   : > { %6287 = vmatprep.mubr.bf16.mxu1 %v1916_v62  ;;  %6084 = vmatpush3.bf16.msra.mxu1 %v6860_v50 }
 0x34e   : > { %6085 = vmatprep.subr.bf16.mxu1 %v6862_v33 }
 0x34f   : > { %v5819_v55 = vpop.f32.mrb[0].mxu1 }
 0x350   : > { %v5820_v35 = vpop.f32.mrb[1].mxu1 }
 0x351   : > { %v5821_v41 = vadd.f32 %v5820_v35, %v5819_v55  ;;  %v5822_v47 = vpop.f32.mrb[2].mxu1  ;;  %v5967_v6 = vpop.f32.mrb[88].mxu0  ;;  %6086 = vmatpush3.bf16.msra.mxu1 %v6863_v1 }
 0x352   : > { %v5823_v10 = vpop.f32.mrb[3].mxu1  ;;  %v5968_v16 = vpop.f32.mrb[89].mxu0  ;;  %6087 = vmatprep.subr.bf16.mxu1 %v6865_v61 }
 0x353   : > { %v8290_v14 = vadd.f32 %v5957_v54, %v5821_v41  ;;  %v5824_v26 = vadd.f32 %v5823_v10, %v5822_v47  ;;  %v5969_v3 = vadd.f32 %v5968_v16, %v5967_v6  ;;  %v5970_v48 = vpop.f32.mrb[90].mxu0 }
 0x354   : > { %v5971_v12 = vpop.f32.mrb[91].mxu0  ;;  %6288 = vmatmul.mubr.bf16.gmra.mrb[76].mxu1 %v1918_v9 }
 0x355   : > { %v8293_v60 = vadd.f32 %v5960_v21, %v5824_v26  ;;  %v5972_v11 = vadd.f32 %v5971_v12, %v5970_v48  ;;  %6291 = vmatprep.mubr.bf16.mxu1 %v1921_v23  ;;  %6088 = vmatpush3.bf16.msra.mxu1 %v6866_v15  ;;  %v1922_v21 = vrot.slane %v6947_v36, 1 }
 0x356   : > { %6089 = vmatprep.subr.bf16.mxu1 %v6868_v7 }
 0x357   : > { %v5825_v54 = vpop.f32.mrb[4].mxu1  ;;  %v1923_v2 = vsel %vm1898_vm4, %v1920_v34, %v1922_v21  ;;  %v8316_v34 = vld [vmem:[#allocation2 + $0x30] sm:$0xff]  }
 0x358   : > { %v5826_v8 = vpop.f32.mrb[5].mxu1  ;;  %v3585_v25 = vshll.u32 %v8316_v34, 16 }
 0x359   : > { %v5827_v39 = vadd.f32 %v5826_v8, %v5825_v54  ;;  %v5828_v63 = vpop.f32.mrb[6].mxu1  ;;  %v5973_v17 = vpop.f32.mrb[92].mxu0  ;;  %6090 = vmatpush3.bf16.msra.mxu1 %v6869_v32 }
 0x35a   : > { %v5829_v20 = vpop.f32.mrb[7].mxu1  ;;  %v5974_v22 = vpop.f32.mrb[93].mxu0  ;;  %6307 = vmatprep.subr.bf16.mxu1 %v8296_v49  ;;  %v3587_v8 = vrot.slane %v3585_v25, 1 }
 0x35b   : > { %v8298_v31 = vadd.f32 %v5963_v29, %v5827_v39  ;;  %v5830_v18 = vadd.f32 %v5829_v20, %v5828_v63  ;;  %v5975_v44 = vadd.f32 %v5974_v22, %v5973_v17  ;;  %v5976_v37 = vpop.f32.mrb[94].mxu0  ;;  %v8327_v17 = vld [vmem:[#allocation2 + $0x38] ss:$0 sps:$4 sm:$0x11]  }
 0x35c   : > { %v5977_v27 = vpop.f32.mrb[95].mxu0  ;;  %6292 = vmatmul.mubr.bf16.gmra.mrb[80].mxu1 %v1923_v2 }
 0x35d   : > { %v8302_v58 = vadd.f32 %v5966_v24, %v5830_v18  ;;  %v5978_v46 = vadd.f32 %v5977_v27, %v5976_v37  ;;  %6295 = vmatprep.mubr.bf16.mxu1 %v8244_v19  ;;  %v8307_v24 = vld [vmem:[#allocation2 + $0x2c] sm:$0xf]  ;;  %v8331_v18 = vld [vmem:[#allocation2 + $0x40] sm:$0xf] }
 0x35e   : > { %v8314_v35 = vcombine.low %v3409_v42, %v8307_v24 }
 0x35f   : > { %v5831_v13 = vpop.f32.mrb[8].mxu1 }
 0x360   : > { %v5832_v50 = vpop.f32.mrb[9].mxu1  ;;  %v3578_v54 = vshrl.u32 %v8314_v35, 16 }
 0x361   : > { %v5833_v5 = vadd.f32 %v5832_v50, %v5831_v13  ;;  %v5834_v51 = vpop.f32.mrb[10].mxu1  ;;  %v5979_v29 = vpop.f32.mrb[96].mxu0  ;;  %v3589_v50 = vshrl.u32 %v8316_v34, 16 }
 0x362   : > { %v5835_v33 = vpop.f32.mrb[11].mxu1  ;;  %v5980_v45 = vpop.f32.mrb[97].mxu0 }
 0x363   : > { %v8305_v40 = vadd.f32 %v5969_v3, %v5833_v5  ;;  %v5836_v4 = vadd.f32 %v5835_v33, %v5834_v51  ;;  %v5981_v62 = vadd.f32 %v5980_v45, %v5979_v29  ;;  %v5982_v1 = vpop.f32.mrb[98].mxu0  ;;  %v3593_v5 = vshll.u32 %v8327_v17, 16 }
 0x364   : > { %v5983_v55 = vpop.f32.mrb[99].mxu0  ;;  %6296 = vmatmul.mubr.bf16.gmra.mrb[84].mxu1 %v8251_v59  ;;  %v3580_v59 = vshll.u32 %v8314_v35, 16 }
 0x365   : > { %v8309_v57 = vadd.f32 %v5972_v11, %v5836_v4  ;;  %v5984_v61 = vadd.f32 %v5983_v55, %v5982_v1  ;;  %6299 = vmatprep.mubr.bf16.mxu1 %v8255_v52  ;;  %v3591_v4 = vor.u32 %v3589_v50, %v3587_v8 }
 0x366   : > { %v3582_v12 = vrot.slane %v3580_v59, 1 }
 0x367   : > { %v5837_v19 = vpop.f32.mrb[12].mxu1 }
 0x368   : > { %v5838_v41 = vpop.f32.mrb[13].mxu1  ;;  %v3583_v21 = vor.u32 %v3582_v12, %v3578_v54 }
 0x369   : > { %v5839_v47 = vadd.f32 %v5838_v41, %v5837_v19  ;;  %v5840_v6 = vpop.f32.mrb[14].mxu1  ;;  %v5985_v43 = vpop.f32.mrb[100].mxu0 }
 0x36a   : > { %v5841_v10 = vpop.f32.mrb[15].mxu1  ;;  %v5986_v16 = vpop.f32.mrb[101].mxu0  ;;  %v3588_v2 = vsel %vm1697_vm3, %v3583_v21, %v3587_v8  ;;  %v3417_v21 = vld [vmem:[#allocation2 + $0x50] sm:$0xf] }
 0x36b   : > { %v8318_v56 = vadd.f32 %v5975_v44, %v5839_v47  ;;  %v5842_v38 = vadd.f32 %v5841_v10, %v5840_v6  ;;  %v5987_v15 = vadd.f32 %v5986_v16, %v5985_v43  ;;  %v5988_v26 = vpop.f32.mrb[102].mxu0  ;;  %v3595_v47 = vrot.slane %v3593_v5, 1  ;;  %v6876_v6 = vld [vmem:[#allocation11 + $0x208] sm:$0xff]  }
 0x36c   : > { %v5989_v52 = vpop.f32.mrb[103].mxu0  ;;  %6300 = vmatmul.mubr.bf16.gmra.mrb[88].mxu1 %v8258_v28 }
 0x36d   : > { %v8321_v3 = vadd.f32 %v5978_v46, %v5842_v38  ;;  %v5990_v48 = vadd.f32 %v5989_v52, %v5988_v26  ;;  %6303 = vmatprep.mubr.bf16.mxu1 %v8261_v30  ;;  %v3413_v30 = vld [vmem:[#allocation2 + $0x3c] sm:$0xf]  ;;  %v3596_v38 = vsel %vm1697_vm3, %v3591_v4, %v3595_v47 }
 0x36e   : > { %v8338_v46 = vcombine.low %v3413_v30, %v8331_v18  ;;  %v6880_v52 = vld [vmem:[#allocation11 + $0x210] sm:$0xff]   ;;  %v8358_v30 = vld [vmem:[#allocation2 + $0x54] sm:$0xf] }
 0x36f   : > { %v5843_v7 = vpop.f32.mrb[16].mxu1 }
 0x370   : > { %v5844_v9 = vpop.f32.mrb[17].mxu1  ;;  %v3600_v55 = vshll.u32 %v8338_v46, 16 }
 0x371   : > { %v5845_v11 = vadd.f32 %v5844_v9, %v5843_v7  ;;  %v5846_v23 = vpop.f32.mrb[18].mxu1  ;;  %v5991_v32 = vpop.f32.mrb[104].mxu0 }
 0x372   : > { %v5847_v39 = vpop.f32.mrb[19].mxu1  ;;  %v5992_v63 = vpop.f32.mrb[105].mxu0  ;;  %v3602_v59 = vrot.slane %v3600_v55, 1 }
 0x373   : > { %v8329_v20 = vadd.f32 %v5981_v62, %v5845_v11  ;;  %v5848_v28 = vadd.f32 %v5847_v39, %v5846_v23  ;;  %v5993_v22 = vadd.f32 %v5992_v63, %v5991_v32  ;;  %v5994_v36 = vpop.f32.mrb[106].mxu0  ;;  %v8342_v62 = vld [vmem:[#allocation2 + $0x44] sm:$0xff]   ;;  %v8354_v32 = vld [vmem:[#allocation2 + $0x4c] ss:$0 sps:$4 sm:$0x11]  }
 0x374   : > { %v5995_v44 = vpop.f32.mrb[107].mxu0  ;;  %6304 = vmatmul.mubr.bf16.gmra.mrb[92].mxu1 %v8264_v53  ;;  %v3605_v26 = vshll.u32 %v8342_v62, 16  ;;  %v3609_v5 = vshrl.u32 %v8342_v62, 16 }
 0x375   : > { %v8333_v37 = vadd.f32 %v5984_v61, %v5848_v28  ;;  %v5996_v27 = vadd.f32 %v5995_v44, %v5994_v36  ;;  %4057 = vmatprep.mubr.bf16.mxu1 %v3588_v2  ;;  %v6884_v28 = vld [vmem:[#allocation11 + $0x218] sm:$0xff]  }
 0x376   : > { %v3607_v11 = vrot.slane %v3605_v26, 1 }
 0x377   : > { %v5849_v13 = vpop.f32.mrb[20].mxu1 }
 0x378   : > { %v5850_v51 = vpop.f32.mrb[21].mxu1 }
 0x379   : > { %v5851_v29 = vadd.f32 %v5850_v51, %v5849_v13  ;;  %v5852_v33 = vpop.f32.mrb[22].mxu1  ;;  %v5997_v45 = vpop.f32.mrb[108].mxu0  ;;  %v8367_v51 = vcombine.low %v3417_v21, %v8358_v30 }
 0x37a   : > { %v5853_v1 = vpop.f32.mrb[23].mxu1  ;;  %v5998_v53 = vpop.f32.mrb[109].mxu0 }
 0x37b   : > { %v8345_v42 = vadd.f32 %v5987_v15, %v5851_v29  ;;  %v5854_v61 = vadd.f32 %v5853_v1, %v5852_v33  ;;  %v5999_v19 = vadd.f32 %v5998_v53, %v5997_v45  ;;  %v6000_v41 = vpop.f32.mrb[110].mxu0  ;;  %v6888_v29 = vld [vmem:[#allocation11 + $0x220] sm:$0xff]   ;;  %v3611_v1 = vor.u32 %v3609_v5, %v3607_v11  ;;  %v8369_v53 = vld [vmem:[#allocation2 + $0x58] sm:$0xff]   ;;  %v3421_v5 = vld [vmem:[#allocation2 + $0x64] sm:$0xf] }
 0x37c   : > { %v6001_v43 = vpop.f32.mrb[111].mxu0  ;;  %4058 = vmatmul.mubr.bf16.vlgmr.msra.gmra.mrb[96].mxu1 %v8314_v35  ;;  %v3620_v26 = vshll.u32 %v8367_v51, 16 }
 0x37d   : > { %v8347_v10 = vadd.f32 %v5990_v48, %v5854_v61  ;;  %v6002_v16 = vadd.f32 %v6001_v43, %v6000_v41  ;;  %6308 = vmatpush3.bf16.msra.mxu1 %v8296_v49  ;;  %4065 = vmatprep.mubr.bf16.mxu1 %v3596_v38  ;;  %v3598_v48 = vshrl.u32 %v8338_v46, 16 }
 0x37e   : > { %6309 = vmatprep.subr.bf16.mxu1 %v6876_v6 }
 0x37f   : > { %v5855_v15 = vpop.f32.mrb[24].mxu1  ;;  %v3603_v63 = vor.u32 %v3602_v59, %v3598_v48  ;;  %v6896_v48 = vld [vmem:[#allocation11 + $0x230] sm:$0xff]  }
 0x380   : > { %v5856_v25 = vpop.f32.mrb[25].mxu1 }
 0x381   : > { %v5857_v7 = vadd.f32 %v5856_v25, %v5855_v15  ;;  %v5858_v12 = vpop.f32.mrb[26].mxu1  ;;  %v6003_v9 = vpop.f32.mrb[112].mxu0  ;;  %6310 = vmatpush3.bf16.msra.mxu1 %v6876_v6  ;;  %v3608_v13 = vsel %vm1697_vm3, %v3603_v63, %v3607_v11  ;;  %v6892_v15 = vld [vmem:[#allocation11 + $0x228] sm:$0xff]  }
 0x382   : > { %v5859_v23 = vpop.f32.mrb[27].mxu1  ;;  %v6004_v35 = vpop.f32.mrb[113].mxu0  ;;  %6311 = vmatprep.subr.bf16.mxu1 %v6880_v52 }
 0x383   : > { %v8356_v54 = vadd.f32 %v5993_v22, %v5857_v7  ;;  %v5860_v49 = vadd.f32 %v5859_v23, %v5858_v12  ;;  %v6005_v8 = vadd.f32 %v6004_v35, %v6003_v9  ;;  %v6006_v39 = vpop.f32.mrb[114].mxu0  ;;  %v3613_v22 = vshll.u32 %v8354_v32, 16 }
 0x384   : > { %v6007_v36 = vpop.f32.mrb[115].mxu0  ;;  %4066 = vmatmul.mubr.bf16.gmra.mrb[100].mxu1 %v8316_v34  ;;  %v3625_v12 = vshll.u32 %v8369_v53, 16  ;;  %v3622_v9 = vrot.slane %v3620_v26, 1 }
 0x385   : > { %v8360_v44 = vadd.f32 %v5996_v27, %v5860_v49  ;;  %v6008_v2 = vadd.f32 %v6007_v36, %v6006_v39  ;;  %4073 = vmatprep.mubr.bf16.mxu1 %v3608_v13  ;;  %6312 = vmatpush3.bf16.msra.mxu1 %v6880_v52  ;;  %v3615_v41 = vrot.slane %v3613_v22, 1 }
 0x386   : > { %6313 = vmatprep.subr.bf16.mxu1 %v6884_v28  ;;  %v3627_v39 = vrot.slane %v3625_v12, 1 }
 0x387   : > { %v5861_v50 = vpop.f32.mrb[28].mxu1  ;;  %v3616_v7 = vsel %vm1697_vm3, %v3611_v1, %v3615_v41 }
 0x388   : > { %v5862_v33 = vpop.f32.mrb[29].mxu1 }
 0x389   : > { %v5863_v27 = vadd.f32 %v5862_v33, %v5861_v50  ;;  %v5864_v45 = vpop.f32.mrb[30].mxu1  ;;  %v6009_v4 = vpop.f32.mrb[116].mxu0  ;;  %6314 = vmatpush3.bf16.msra.mxu1 %v6884_v28  ;;  %v6900_v33 = vld [vmem:[#allocation11 + $0x238] sm:$0xff]  }
 0x38a   : > { %v5865_v55 = vpop.f32.mrb[31].mxu1  ;;  %v6010_v61 = vpop.f32.mrb[117].mxu0  ;;  %6315 = vmatprep.subr.bf16.mxu1 %v6888_v29 }
 0x38b   : > { %v8371_v47 = vadd.f32 %v5999_v19, %v5863_v27  ;;  %v5866_v6 = vadd.f32 %v5865_v55, %v5864_v45  ;;  %v6011_v43 = vadd.f32 %v6010_v61, %v6009_v4  ;;  %v6012_v38 = vpop.f32.mrb[118].mxu0  ;;  %v3629_v61 = vshrl.u32 %v8369_v53, 16 }
 0x38c   : > { %v6013_v59 = vpop.f32.mrb[119].mxu0  ;;  %4074 = vmatmul.mubr.bf16.gmra.mrb[104].mxu1 %v8338_v46  ;;  %v8380_v46 = vld [vmem:[#allocation2 + $0x60] ss:$0 sps:$4 sm:$0x11]  }
 0x38d   : > { %v8374_v52 = vadd.f32 %v6002_v16, %v5866_v6  ;;  %v6014_v25 = vadd.f32 %v6013_v59, %v6012_v38  ;;  %4081 = vmatprep.mubr.bf16.mxu1 %v3616_v7  ;;  %6316 = vmatpush3.bf16.msra.mxu1 %v6888_v29  ;;  %v3618_v16 = vshrl.u32 %v8367_v51, 16  ;;  %v8384_v29 = vld [vmem:[#allocation2 + $0x68] sm:$0xf]  ;;  %v3633_v41 = vshll.u32 %v8380_v46, 16  ;;  %v8395_v59 = vld [vmem:[#allocation2 + $0x6c] sm:$0xff]  }
 0x38e   : > { %6317 = vmatprep.subr.bf16.mxu1 %v6892_v15 }
 0x38f   : > { %v5867_v19 = vpop.f32.mrb[32].mxu1  ;;  %v3623_v50 = vor.u32 %v3622_v9, %v3618_v16 }
 0x390   : > { %v5868_v11 = vpop.f32.mrb[33].mxu1 }
 0x391   : > { %v5869_v23 = vadd.f32 %v5868_v11, %v5867_v19  ;;  %v5870_v35 = vpop.f32.mrb[34].mxu1  ;;  %v6015_v49 = vpop.f32.mrb[120].mxu0  ;;  %6318 = vmatpush3.bf16.msra.mxu1 %v6892_v15  ;;  %v3628_v1 = vsel %vm1697_vm3, %v3623_v50, %v3627_v39  ;;  %v3631_v15 = vor.u32 %v3629_v61, %v3627_v39  ;;  %v8406_v61 = vld [vmem:[#allocation2 + $0x74] ss:$0 sps:$4 sm:$0x11]  }
 0x392   : > { %v5871_v63 = vpop.f32.mrb[35].mxu1  ;;  %v6016_v28 = vpop.f32.mrb[121].mxu0  ;;  %6319 = vmatprep.subr.bf16.mxu1 %v6896_v48 }
 0x393   : > { %v8382_v36 = vadd.f32 %v6005_v8, %v5869_v23  ;;  %v5872_v21 = vadd.f32 %v5871_v63, %v5870_v35  ;;  %v6017_v13 = vadd.f32 %v6016_v28, %v6015_v49  ;;  %v6018_v22 = vpop.f32.mrb[122].mxu0  ;;  %v8391_v8 = vcombine.low %v3421_v5, %v8384_v29 }
 0x394   : > { %v6019_v27 = vpop.f32.mrb[123].mxu0  ;;  %4082 = vmatmul.mubr.bf16.gmra.mrb[108].mxu1 %v8342_v62  ;;  %v3635_v35 = vrot.slane %v3633_v41, 1  ;;  %v3645_v28 = vshll.u32 %v8395_v59, 16 }
 0x395   : > { %v8386_v45 = vadd.f32 %v6008_v2, %v5872_v21  ;;  %v6020_v4 = vadd.f32 %v6019_v27, %v6018_v22  ;;  %4089 = vmatprep.mubr.bf16.mxu1 %v3628_v1  ;;  %6320 = vmatpush3.bf16.msra.mxu1 %v6896_v48  ;;  %v3640_v19 = vshll.u32 %v8391_v8, 16  ;;  %v3638_v27 = vshrl.u32 %v8391_v8, 16 }
 0x396   : > { %6321 = vmatprep.subr.bf16.mxu1 %v6900_v33  ;;  %v3636_v39 = vsel %vm1697_vm3, %v3631_v15, %v3635_v35  ;;  %v3647_v1 = vrot.slane %v3645_v28, 1  ;;  %v8410_v15 = vld [vmem:[#allocation2 + $0x7c] sm:$0xf]  ;;  %v3649_v35 = vshrl.u32 %v8395_v59, 16 }
 0x397   : > { %v5873_v55 = vpop.f32.mrb[36].mxu1  ;;  %v3642_v22 = vrot.slane %v3640_v19, 1 }
 0x398   : > { %v5874_v6 = vpop.f32.mrb[37].mxu1 }
 0x399   : > { %v5875_v38 = vadd.f32 %v5874_v6, %v5873_v55  ;;  %v5876_v2 = vpop.f32.mrb[38].mxu1  ;;  %v6021_v26 = vpop.f32.mrb[124].mxu0  ;;  %6322 = vmatpush3.bf16.msra.mxu1 %v6900_v33 }
 0x39a   : > { %v5877_v7 = vpop.f32.mrb[39].mxu1  ;;  %v6022_v12 = vpop.f32.mrb[125].mxu0 }
 0x39b   : > { %v8398_v9 = vadd.f32 %v6011_v43, %v5875_v38  ;;  %v5878_v48 = vadd.f32 %v5877_v7, %v5876_v2  ;;  %v6023_v11 = vadd.f32 %v6022_v12, %v6021_v26  ;;  %v6024_v23 = vpop.f32.mrb[126].mxu0  ;;  %v3643_v2 = vor.u32 %v3642_v22, %v3638_v27  ;;  %v3425_v26 = vld [vmem:[#allocation2 + $0x78] sm:$0xf] }
 0x39c   : > { %v6025_v49 = vpop.f32.mrb[127].mxu0  ;;  %4090 = vmatmul.mubr.bf16.gmra.mrb[112].mxu1 %v8367_v51 }
 0x39d   : > { %v8400_v16 = vadd.f32 %v6014_v25, %v5878_v48  ;;  %v6026_v63 = vadd.f32 %v6025_v49, %v6024_v23  ;;  %4097 = vmatprep.mubr.bf16.mxu1 %v3636_v39  ;;  %v3648_v48 = vsel %vm1697_vm3, %v3643_v2, %v3647_v1  ;;  %v8417_v23 = vcombine.low %v3425_v26, %v8410_v15 }
 0x39e   : > { %v3653_v49 = vshll.u32 %v8406_v61, 16 }
 0x39f   : > { %v5879_v21 = vpop.f32.mrb[40].mxu1 }
 0x3a0   : > { %v5880_v50 = vpop.f32.mrb[41].mxu1 }
 0x3a1   : > { %v5881_v43 = vadd.f32 %v5880_v50, %v5879_v21  ;;  %v5882_v5 = vpop.f32.mrb[42].mxu1  ;;  %v6027_v33 = vpop.f32.mrb[128].mxu0  ;;  %v8421_v50 = vld [vmem:[#allocation2 + $0x80] sm:$0xff]  }
 0x3a2   : > { %v5883_v55 = vpop.f32.mrb[43].mxu1  ;;  %v6028_v25 = vpop.f32.mrb[129].mxu0 }
 0x3a3   : > { %v8408_v41 = vadd.f32 %v6017_v13, %v5881_v43  ;;  %v5884_v51 = vadd.f32 %v5883_v55, %v5882_v5  ;;  %v6029_v6 = vadd.f32 %v6028_v25, %v6027_v33  ;;  %v6030_v38 = vpop.f32.mrb[130].mxu0  ;;  %v3660_v33 = vshll.u32 %v8417_v23, 16 }
 0x3a4   : > { %v6031_v7 = vpop.f32.mrb[131].mxu0  ;;  %4098 = vmatmul.mubr.bf16.gmra.mrb[116].mxu1 %v8369_v53 }
 0x3a5   : > { %8988 = vst [vmem:[#allocation29_spill] sm:$0xff] %v8408_v41  ;;  %v8412_v12 = vadd.f32 %v6020_v4, %v5884_v51  ;;  %v6032_v19 = vadd.f32 %v6031_v7, %v6030_v38  ;;  %4105 = vmatprep.mubr.bf16.mxu1 %v3648_v48  ;;  %v3651_v4 = vor.u32 %v3649_v35, %v3647_v1  ;;  %v3655_v38 = vrot.slane %v3653_v49, 1 }
 0x3a6   : > { %v3665_v48 = vshll.u32 %v8421_v50, 16 }
 0x3a7   : > { %8989 = vst [vmem:[#allocation30_spill] sm:$0xff] %v8412_v12  ;;  %v5885_v13 = vpop.f32.mrb[44].mxu1  ;;  %v3656_v1 = vsel %vm1697_vm3, %v3651_v4, %v3655_v38 }
 0x3a8   : > { %v5886_v39 = vpop.f32.mrb[45].mxu1 }
 0x3a9   : > { %v5887_v28 = vadd.f32 %v5886_v39, %v5885_v13  ;;  %v5888_v21 = vpop.f32.mrb[46].mxu1  ;;  %v6033_v22 = vpop.f32.mrb[132].mxu0  ;;  %v3662_v13 = vrot.slane %v3660_v33, 1  ;;  %v3429_v33 = vld [vmem:[#allocation2 + $0x8c] sm:$0xf] }
 0x3aa   : > { %v5889_v43 = vpop.f32.mrb[47].mxu1  ;;  %v6034_v5 = vpop.f32.mrb[133].mxu0 }
 0x3ab   : > { %v8424_v27 = vadd.f32 %v6023_v11, %v5887_v28  ;;  %v5890_v55 = vadd.f32 %v5889_v43, %v5888_v21  ;;  %v6035_v25 = vadd.f32 %v6034_v5, %v6033_v22  ;;  %v6036_v51 = vpop.f32.mrb[134].mxu0  ;;  %v3658_v28 = vshrl.u32 %v8417_v23, 16 }
 0x3ac   : > { %v6037_v2 = vpop.f32.mrb[135].mxu0  ;;  %4106 = vmatmul.mubr.bf16.gmra.mrb[120].mxu1 %v8391_v8  ;;  %v3667_v21 = vrot.slane %v3665_v48, 1  ;;  %v8432_v8 = vld [vmem:[#allocation2 + $0x88] ss:$0 sps:$4 sm:$0x11]  }
 0x3ad   : > { %8990 = vst [vmem:[#allocation31_spill] sm:$0xff] %v8424_v27  ;;  %v8426_v26 = vadd.f32 %v6026_v63, %v5890_v55  ;;  %v6038_v7 = vadd.f32 %v6037_v2, %v6036_v51  ;;  %4113 = vmatprep.mubr.bf16.mxu1 %v3656_v1  ;;  %v3663_v51 = vor.u32 %v3662_v13, %v3658_v28  ;;  %v8436_v1 = vld [vmem:[#allocation2 + $0x90] sm:$0xf]  ;;  %v3673_v13 = vshll.u32 %v8432_v8, 16 }
 0x3af   : > { %8991 = vst [vmem:[#allocation32_spill] sm:$0xff] %v8426_v26  ;;  %v5891_v35 = vpop.f32.mrb[48].mxu1  ;;  %v3668_v48 = vsel %vm1697_vm3, %v3663_v51, %v3667_v21 }
 0x3b0   : > { %v5892_v39 = vpop.f32.mrb[49].mxu1 }
 0x3b1   : > { %v6039_v11 = vpop.f32.mrb[136].mxu0  ;;  %v5893_v22 = vadd.f32 %v5892_v39, %v5891_v35  ;;  %v5894_v49 = vpop.f32.mrb[50].mxu1  ;;  %v3669_v39 = vshrl.u32 %v8421_v50, 16 }
 0x3b2   : > { %v6040_v43 = vpop.f32.mrb[137].mxu0  ;;  %v5895_v63 = vpop.f32.mrb[51].mxu1 }
 0x3b3   : > { %v6041_v5 = vadd.f32 %v6040_v43, %v6039_v11  ;;  %v6042_v55 = vpop.f32.mrb[138].mxu0  ;;  %v8434_v4 = vadd.f32 %v6029_v6, %v5893_v22  ;;  %v5896_v38 = vadd.f32 %v5895_v63, %v5894_v49  ;;  %v5667_v6 = vcombine.low %v3429_v33, %v8436_v1  ;;  %v8445_v43 = vld [vmem:[#allocation2 + $0x94] sm:$0xff]  }
 0x3b4   : > { %v6043_v2 = vpop.f32.mrb[139].mxu0  ;;  %4114 = vmatmul.mubr.bf16.gmra.mrb[124].mxu1 %v8395_v59  ;;  %v3671_v49 = vor.u32 %v3669_v39, %v3667_v21  ;;  %v3685_v21 = vshll.u32 %v8445_v43, 16 }
 0x3b5   : > { %8992 = vst [vmem:[#allocation33_spill] sm:$0xff] %v8434_v4  ;;  %v6044_v0 = vadd.f32 %v6043_v2, %v6042_v55  ;;  %v8440_v35 = vadd.f32 %v6032_v19, %v5896_v38  ;;  %4121 = vmatprep.mubr.bf16.mxu1 %v3668_v48  ;;  %v3675_v38 = vrot.slane %v3673_v13, 1  ;;  %v3680_v48 = vshll.u32 %v5667_v6, 16 }
 0x3b6   : > { %v3687_v13 = vrot.slane %v3685_v21, 1 }
 0x3b7   : > { %8993 = vst [vmem:[#allocation34_spill] sm:$0xff] %v8440_v35  ;;  %v5897_v11 = vpop.f32.mrb[52].mxu1  ;;  %v3676_v33 = vsel %vm1697_vm3, %v3671_v49, %v3675_v38  ;;  %v3433_v49 = vld [vmem:[#allocation2 + $0xa0] sm:$0xf]  ;;  %v3689_v38 = vshrl.u32 %v8445_v43, 16 }
 0x3b8   : > { %v5898_v28 = vpop.f32.mrb[53].mxu1 }
 0x3b9   : > { %v6045_v22 = vpop.f32.mrb[140].mxu0  ;;  %v5899_v63 = vadd.f32 %v5898_v28, %v5897_v11  ;;  %v5900_v55 = vpop.f32.mrb[54].mxu1  ;;  %v3682_v11 = vrot.slane %v3680_v48, 1 }
 0x3ba   : > { %v6046_v2 = vpop.f32.mrb[141].mxu0  ;;  %v5901_v4 = vpop.f32.mrb[55].mxu1 }
 0x3bb   : > { %v6047_v51 = vadd.f32 %v6046_v2, %v6045_v22  ;;  %v6048_v19 = vpop.f32.mrb[142].mxu0  ;;  %v8447_v35 = vadd.f32 %v6035_v25, %v5899_v63  ;;  %v5902_v26 = vadd.f32 %v5901_v4, %v5900_v55  ;;  %v3678_v2 = vshrl.u32 %v5667_v6, 16  ;;  %v8454_v55 = vld [vmem:[#allocation2 + $0x9c] ss:$0 sps:$4 sm:$0x11]  }
 0x3bc   : > { %v6049_v27 = vpop.f32.mrb[143].mxu0  ;;  %4122 = vmatmul.mubr.bf16.gmra.mrb[128].mxu1 %v8417_v23  ;;  %v3693_v48 = vshll.u32 %v8454_v55, 16 }
 0x3bd   : > { %v6050_v12 = vadd.f32 %v6049_v27, %v6048_v19  ;;  %v8452_v39 = vadd.f32 %v6038_v7, %v5902_v26  ;;  %4129 = vmatprep.mubr.bf16.mxu1 %v3676_v33  ;;  %v3683_v4 = vor.u32 %v3682_v11, %v3678_v2  ;;  %v8458_v19 = vld [vmem:[#allocation2 + $0xa4] sm:$0xf]  ;;  %v8467_v11 = vld [vmem:[#allocation2 + $0xa8] sm:$0xff]  }
 0x3be   : > { %v5669_v33 = vcombine.low %v3433_v49, %v8458_v19 }
 0x3bf   : > { %v5903_v28 = vpop.f32.mrb[56].mxu1  ;;  %v3688_v26 = vsel %vm1697_vm3, %v3683_v4, %v3687_v13 }
 0x3c0   : > { %v5904_v22 = vpop.f32.mrb[57].mxu1 }
 0x3c1   : > { %v5905_v41 = vadd.f32 %v5904_v22, %v5903_v28  ;;  %v5906_v25 = vpop.f32.mrb[58].mxu1 }
 0x3c2   : > { %v5907_v63 = vpop.f32.mrb[59].mxu1 }
 0x3c3   : > { %v8456_v27 = vadd.f32 %v6041_v5, %v5905_v41  ;;  %v5908_v23 = vadd.f32 %v5907_v63, %v5906_v25  ;;  %v3691_v5 = vor.u32 %v3689_v38, %v3687_v13  ;;  %v3695_v25 = vrot.slane %v3693_v48, 1  ;;  %v8477_v48 = vld [vmem:[#allocation2 + $0xb0] ss:$0 sps:$4 sm:$0x11]  }
 0x3c4   : > { %4130 = vmatmul.mubr.bf16.gmra.mrb[132].mxu1 %v8421_v50  ;;  %v3700_v63 = vshll.u32 %v5669_v33, 16  ;;  %v3698_v13 = vshrl.u32 %v5669_v33, 16 }
 0x3c5   : > { %8994 = vst [vmem:[#allocation35_spill] sm:$0xff] %v8456_v27  ;;  %v8462_v7 = vadd.f32 %v6044_v0, %v5908_v23  ;;  %4137 = vmatprep.mubr.bf16.mxu1 %v3688_v26  ;;  %v3696_v23 = vsel %vm1697_vm3, %v3691_v5, %v3695_v25  ;;  %v3705_v26 = vshll.u32 %v8467_v11, 16  ;;  %v3437_v27 = vld [vmem:[#allocation2 + $0xb4] sm:$0xf]  ;;  %v3713_v5 = vshll.u32 %v8477_v48, 16  ;;  %v8484_v25 = vld [vmem:[#allocation2 + $0xbc] sm:$0xff]  }
 0x3c6   : > { %v3702_v49 = vrot.slane %v3700_v63, 1  ;;  %v6910_v63 = vld [vmem:[#allocation14] ss:$8 sps:$4 sm:$0xff]  }
 0x3c7   : > { %8995 = vst [vmem:[#allocation36_spill] sm:$0xff] %v8462_v7  ;;  %v5909_v21 = vpop.f32.mrb[60].mxu1  ;;  %v3707_v38 = vrot.slane %v3705_v26, 1 }
 0x3c8   : > { %v5910_v41 = vpop.f32.mrb[61].mxu1 }
 0x3c9   : > { %v5911_v28 = vadd.f32 %v5910_v41, %v5909_v21  ;;  %v5912_v22 = vpop.f32.mrb[62].mxu1  ;;  %v8475_v21 = vld [vmem:[#allocation2 + $0xb8] sm:$0xf]  ;;  %v3703_v41 = vor.u32 %v3702_v49, %v3698_v13 }
 0x3ca   : > { %v5913_v2 = vpop.f32.mrb[63].mxu1 }
 0x3cb   : > { %v8469_v4 = vadd.f32 %v6047_v51, %v5911_v28  ;;  %v5914_v0 = vadd.f32 %v5913_v2, %v5912_v22  ;;  %v5671_v51 = vcombine.low %v3437_v27, %v8475_v21  ;;  %v3715_v2 = vrot.slane %v3713_v5, 1 }
 0x3cc   : > { %4138 = vmatmul.mubr.bf16.gmra.mrb[136].mxu1 %v5667_v6  ;;  %v3708_v6 = vsel %vm1697_vm3, %v3703_v41, %v3707_v38  ;;  %v3725_v27 = vshll.u32 %v8484_v25, 16  ;;  %v8488_v41 = vld [vmem:[#allocation2 + $0xc4] ss:$0 sps:$4 sm:$0x11]  }
 0x3cd   : > { %v8473_v7 = vadd.f32 %v6050_v12, %v5914_v0  ;;  %4145 = vmatprep.mubr.bf16.mxu1 %v3696_v23  ;;  %v3709_v12 = vshrl.u32 %v8467_v11, 16  ;;  %v3720_v22 = vshll.u32 %v5671_v51, 16  ;;  %v6912_v0 = vld [vmem:[#allocation14 + $0x4] ss:$8 sps:$4 sm:$0xff]   ;;  %v3718_v26 = vshrl.u32 %v5671_v51, 16 }
 0x3ce   : > { %4574 = vmatprep.subr.bf16.mxu0 %v6912_v0  ;;  %v6915_v0 = vld [vmem:[#allocation14 + $0x14] ss:$8 sps:$4 sm:$0xff]  }
 0x3cf   : > { %v3711_v28 = vor.u32 %v3709_v12, %v3707_v38  ;;  %v3722_v49 = vrot.slane %v3720_v22, 1  ;;  %4575 = vmatpush1.bf16.msra.mxu0 %v6910_v63  ;;  %v3727_v38 = vrot.slane %v3725_v27, 1  ;;  %v3729_v12 = vshrl.u32 %v8484_v25, 16  ;;  %v3449_v22 = vld [vmem:[#allocation2 + $0x28] sm:$0xe] }
 0x3d0   : > { %4576 = vmatprep.subr.bf16.mxu0 %v6915_v0  ;;  %v3450_v27 = vld [vmem:[#allocation2 + $0x3c] sm:$0xe]  ;;  %v3452_v0 = vld [vmem:[#allocation2 + $0x64] sm:$0xe] }
 0x3d1   : > { %v3716_v23 = vsel %vm1697_vm3, %v3711_v28, %v3715_v2  ;;  %v3723_v13 = vor.u32 %v3722_v49, %v3718_v26  ;;  %v3731_v5 = vor.u32 %v3729_v12, %v3727_v38  ;;  %v6913_v2 = vld [vmem:[#allocation14 + $0x10] ss:$8 sps:$4 sm:$0xff]   ;;  %v3778_v26 = vrot.slane %v8316_v34, 1 }
 0x3d3   : > { %4577 = vmatpush1.bf16.msra.mxu0 %v6913_v2 }
 0x3d4   : > { %4146 = vmatmul.mubr.bf16.gmra.mrb[140].mxu1 %v8445_v43 }
 0x3d5   : > { %4153 = vmatprep.mubr.bf16.mxu1 %v3708_v6  ;;  %v3728_v6 = vsel %vm1697_vm3, %v3723_v13, %v3727_v38  ;;  %v5682_v38 = vcombine.low %v3450_v27, %v8331_v18  ;;  %v3788_v18 = vrot.slane %v8369_v53, 1  ;;  %v3453_v53 = vld [vmem:[#allocation2 + $0x78] sm:$0xe] }
 0x3d7   : > { %v3782_v12 = vrot.slane %v5682_v38, 1 }
 0x3dc   : > { %4154 = vmatmul.mubr.bf16.gmra.mrb[144].mxu1 %v5669_v33  ;;  %v3733_v33 = vshll.u32 %v8488_v41, 16 }
 0x3dd   : > { %4161 = vmatprep.mubr.bf16.mxu1 %v3716_v23  ;;  %v5681_v23 = vcombine.low %v3449_v22, %v8307_v24  ;;  %v3451_v24 = vld [vmem:[#allocation2 + $0x50] sm:$0xe] }
 0x3de   : > { %v3735_v28 = vrot.slane %v3733_v33, 1  ;;  %v5683_v22 = vcombine.low %v3451_v24, %v8358_v30 }
 0x3df   : > { %v3777_v49 = vrot.slane %v5681_v23, 1  ;;  %v5684_v23 = vcombine.low %v3452_v0, %v8384_v29  ;;  %v3798_v29 = vrot.slane %v8421_v50, 1  ;;  %v3455_v50 = vld [vmem:[#allocation2 + $0xa0] sm:$0xe] }
 0x3e0   : > { %v3736_v63 = vsel %vm1697_vm3, %v3731_v5, %v3735_v28  ;;  %v6916_v5 = vld [vmem:[#allocation14 + $0x20] ss:$8 sps:$4 sm:$0xff]   ;;  %v6918_v28 = vld [vmem:[#allocation14 + $0x24] ss:$8 sps:$4 sm:$0xff]   ;;  %v3787_v2 = vrot.slane %v5683_v22, 1 }
 0x3e1   : > { %v3779_v13 = vsel %vm1898_vm4, %v3777_v49, %v3778_v26  ;;  %4578 = vmatprep.subr.bf16.mxu0 %v6918_v28  ;;  %v3790_v49 = vrot.slane %v8380_v46, 1  ;;  %v3792_v30 = vrot.slane %v5684_v23, 1  ;;  %v3800_v28 = vrot.slane %v8432_v8, 1  ;;  %v6922_v22 = vld [vmem:[#allocation14 + $0x40] ss:$8 sps:$4 sm:$0xff]  }
 0x3e2   : > { %4579 = vmatpush1.bf16.msra.mxu0 %v6916_v5  ;;  %v3803_v5 = vrot.slane %v8445_v43, 1  ;;  %v3805_v43 = vrot.slane %v8454_v55, 1 }
 0x3e3   : > { %v3791_v27 = vsel %vm1898_vm4, %v3788_v18, %v3790_v49 }
 0x3e4   : > { %4162 = vmatmul.mubr.bf16.gmra.mrb[148].mxu1 %v8467_v11 }
 0x3e5   : > { %4169 = vmatprep.mubr.bf16.mxu1 %v3728_v6  ;;  %v3780_v6 = vrot.slane %v8327_v17, 1 }
 0x3e7   : > { %v3781_v33 = vsel %vm1898_vm4, %v3778_v26, %v3780_v6  ;;  %v3793_v26 = vrot.slane %v8395_v59, 1  ;;  %v3795_v59 = vrot.slane %v8406_v61, 1  ;;  %v6924_v61 = vld [vmem:[#allocation14 + $0x44] ss:$8 sps:$4 sm:$0xff]  }
 0x3e9   : > { %v3794_v38 = vsel %vm1898_vm4, %v3792_v30, %v3793_v26  ;;  %v3796_v46 = vsel %vm1898_vm4, %v3793_v26, %v3795_v59  ;;  %v3813_v26 = vrot.slane %v8484_v25, 1  ;;  %v6927_v30 = vld [vmem:[#allocation14 + $0x54] ss:$8 sps:$4 sm:$0xff]  }
 0x3ec   : > { %4170 = vmatmul.mubr.bf16.gmra.mrb[152].mxu1 %v5671_v51  ;;  %v3783_v51 = vrot.slane %v8342_v62, 1  ;;  %v3785_v62 = vrot.slane %v8354_v32, 1  ;;  %v6921_v32 = vld [vmem:[#allocation14 + $0x34] ss:$8 sps:$4 sm:$0xff]  }
 0x3ed   : > { %4177 = vmatprep.mubr.bf16.mxu1 %v3736_v63  ;;  %v3789_v63 = vsel %vm1898_vm4, %v3787_v2, %v3788_v18  ;;  %4580 = vmatprep.subr.bf16.mxu0 %v6921_v32  ;;  %v3456_v2 = vld [vmem:[#allocation2 + $0xb4] sm:$0xe] }
 0x3ee   : > { %v3784_v34 = vsel %vm1898_vm4, %v3782_v12, %v3783_v51  ;;  %v3786_v17 = vsel %vm1898_vm4, %v3783_v51, %v3785_v62  ;;  %v5685_v51 = vcombine.low %v3453_v53, %v8410_v15  ;;  %v3454_v12 = vld [vmem:[#allocation2 + $0x8c] sm:$0xe]  ;;  %v5687_v62 = vcombine.low %v3455_v50, %v8458_v19 }
 0x3ef   : > { %v5686_v24 = vcombine.low %v3454_v12, %v8436_v1  ;;  %v3808_v1 = vrot.slane %v8467_v11, 1  ;;  %v3810_v19 = vrot.slane %v8477_v48, 1  ;;  %v6925_v11 = vld [vmem:[#allocation14 + $0x50] ss:$8 sps:$4 sm:$0xff]   ;;  %v6928_v53 = vld [vmem:[#allocation14 + $0x60] ss:$8 sps:$4 sm:$0xff]  }
 0x3f0   : > { %v3797_v6 = vrot.slane %v5685_v51, 1  ;;  %v3807_v8 = vrot.slane %v5687_v62, 1  ;;  %v6931_v48 = vld [vmem:[#allocation14 + $0x70] ss:$8 sps:$4 sm:$0xff]  }
 0x3f1   : > { %v3802_v15 = vrot.slane %v5686_v24, 1  ;;  %v3811_v49 = vsel %vm1898_vm4, %v3808_v1, %v3810_v19 }
 0x3f2   : > { %v3809_v0 = vsel %vm1898_vm4, %v3807_v8, %v3808_v1 }
 0x3f3   : > { %v3804_v18 = vsel %vm1898_vm4, %v3802_v15, %v3803_v5 }
 0x3f4   : > { %4178 = vmatmul.mubr.bf16.gmra.mrb[156].mxu1 %v8484_v25  ;;  %v6933_v25 = vld [vmem:[#allocation14 + $0x74] ss:$8 sps:$4 sm:$0xff]  }
 0x3f5   : > { %6323 = vmatprep.mubr.bf16.mxu1 %v3779_v13  ;;  %v6919_v13 = vld [vmem:[#allocation14 + $0x30] ss:$8 sps:$4 sm:$0xff]  }
 0x3f6   : > { %4581 = vmatpush1.bf16.msra.mxu0 %v6919_v13  ;;  %v6930_v13 = vld [vmem:[#allocation14 + $0x64] ss:$8 sps:$4 sm:$0xff]  }
 0x3f7   : > { %4582 = vmatprep.subr.bf16.mxu0 %v6924_v61 }
 0x3fa   : > { %4583 = vmatpush1.bf16.msra.mxu0 %v6922_v22 }
 0x3fb   : > { %4584 = vmatprep.subr.bf16.mxu0 %v6927_v30 }
 0x3fc   : > { %6324 = vmatmul.mubr.bf16.vlgmr.msra.gmra.mrb[64].mxu1 %v3781_v33  ;;  %v3799_v33 = vsel %vm1898_vm4, %v3797_v6, %v3798_v29 }
 0x3fd   : > { %6327 = vmatprep.mubr.bf16.mxu1 %v3784_v34  ;;  %v3801_v34 = vsel %vm1898_vm4, %v3798_v29, %v3800_v28 }
 0x3fe   : > { %4585 = vmatpush1.bf16.msra.mxu0 %v6925_v11 }
 0x3ff   : > { %4586 = vmatprep.subr.bf16.mxu0 %v6930_v13 }
 0x402   : > { %4587 = vmatpush1.bf16.msra.mxu0 %v6928_v53 }
 0x403   : > { %4588 = vmatprep.subr.bf16.mxu0 %v6933_v25 }
 0x404   : > { %6328 = vmatmul.mubr.bf16.gmra.mrb[68].mxu1 %v3786_v17  ;;  %v3806_v17 = vsel %vm1898_vm4, %v3803_v5, %v3805_v43 }
 0x405   : > { %6331 = vmatprep.mubr.bf16.mxu1 %v3789_v63  ;;  %v5688_v63 = vcombine.low %v3456_v2, %v8475_v21 }
 0x406   : > { %4589 = vmatpush1.bf16.msra.mxu0 %v6931_v48 }
 0x407   : > { %v3812_v23 = vrot.slane %v5688_v63, 1 }
 0x409   : > { %v3814_v55 = vsel %vm1898_vm4, %v3812_v23, %v3813_v26 }
 0x40c   : > { %6332 = vmatmul.mubr.bf16.gmra.mrb[72].mxu1 %v3791_v27  ;;  %v3815_v27 = vrot.slane %v8488_v41, 1 }
 0x40d   : > { %6335 = vmatprep.mubr.bf16.mxu1 %v3794_v38 }
 0x40e   : > { %v3816_v21 = vsel %vm1898_vm4, %v3813_v26, %v3815_v27 }
 0x414   : > { %6336 = vmatmul.mubr.bf16.gmra.mrb[76].mxu1 %v3796_v46 }
 0x415   : > { %6339 = vmatprep.mubr.bf16.mxu1 %v3799_v33 }
 0x41c   : > { %6340 = vmatmul.mubr.bf16.gmra.mrb[80].mxu1 %v3801_v34 }
 0x41d   : > { %6343 = vmatprep.mubr.bf16.mxu1 %v3804_v18 }
 0x424   : > { %6344 = vmatmul.mubr.bf16.gmra.mrb[84].mxu1 %v3806_v17 }
 0x425   : > { %6347 = vmatprep.mubr.bf16.mxu1 %v3809_v0 }
 0x42c   : > { %6348 = vmatmul.mubr.bf16.gmra.mrb[88].mxu1 %v3811_v49 }
 0x42d   : > { %6351 = vmatprep.mubr.bf16.mxu1 %v3814_v55 }
 0x434   : > { %6352 = vmatmul.mubr.bf16.gmra.mrb[92].mxu1 %v3816_v21 }
 0x44f   : > { %v6091_v32 = vpop.f32.mrb[96].mxu1 }
 0x450   : > { %v6092_v38 = vpop.f32.mrb[97].mxu1 }
 0x451   : > { %v6093_v51 = vadd.f32 %v6092_v38, %v6091_v32  ;;  %v6094_v29 = vpop.f32.mrb[98].mxu1 }
 0x452   : > { %v6095_v59 = vpop.f32.mrb[99].mxu1 }
 0x453   : > { %v6096_v6 = vadd.f32 %v6095_v59, %v6094_v29  ;;  %v8537_v46 = vadd.f32 %v8290_v14, %v6093_v51 }
 0x455   : > { %v8540_v41 = vadd.f32 %v8293_v60, %v6096_v6 }
 0x457   : > { %v6097_v12 = vpop.f32.mrb[100].mxu1 }
 0x458   : > { %v6098_v33 = vpop.f32.mrb[101].mxu1 }
 0x459   : > { %v6099_v24 = vadd.f32 %v6098_v33, %v6097_v12  ;;  %v6100_v5 = vpop.f32.mrb[102].mxu1 }
 0x45a   : > { %v6101_v28 = vpop.f32.mrb[103].mxu1 }
 0x45b   : > { %v6102_v15 = vadd.f32 %v6101_v28, %v6100_v5  ;;  %v8543_v34 = vadd.f32 %v8298_v31, %v6099_v24 }
 0x45d   : > { %v8546_v50 = vadd.f32 %v8302_v58, %v6102_v15 }
 0x45f   : > { %v6103_v22 = vpop.f32.mrb[104].mxu1 }
 0x460   : > { %v6104_v61 = vpop.f32.mrb[105].mxu1 }
 0x461   : > { %v6105_v18 = vadd.f32 %v6104_v61, %v6103_v22  ;;  %v6106_v14 = vpop.f32.mrb[106].mxu1 }
 0x462   : > { %v6107_v62 = vpop.f32.mrb[107].mxu1 }
 0x463   : > { %v6108_v1 = vadd.f32 %v6107_v62, %v6106_v14  ;;  %v8549_v60 = vadd.f32 %v8305_v40, %v6105_v18 }
 0x465   : > { %v8552_v43 = vadd.f32 %v8309_v57, %v6108_v1 }
 0x467   : > { %v6109_v2 = vpop.f32.mrb[108].mxu1 }
 0x468   : > { %v6110_v8 = vpop.f32.mrb[109].mxu1 }
 0x469   : > { %v6111_v17 = vadd.f32 %v6110_v8, %v6109_v2  ;;  %v6112_v31 = vpop.f32.mrb[110].mxu1 }
 0x46a   : > { %v6113_v0 = vpop.f32.mrb[111].mxu1 }
 0x46b   : > { %v6114_v63 = vadd.f32 %v6113_v0, %v6112_v31  ;;  %v8555_v58 = vadd.f32 %v8318_v56, %v6111_v17 }
 0x46d   : > { %v8558_v23 = vadd.f32 %v8321_v3, %v6114_v63 }
 0x46f   : > { %v6115_v26 = vpop.f32.mrb[112].mxu1 }
 0x470   : > { %v6116_v19 = vpop.f32.mrb[113].mxu1 }
 0x471   : > { %v6117_v49 = vadd.f32 %v6116_v19, %v6115_v26  ;;  %v6118_v40 = vpop.f32.mrb[114].mxu1 }
 0x472   : > { %v6119_v11 = vpop.f32.mrb[115].mxu1 }
 0x473   : > { %v6120_v30 = vadd.f32 %v6119_v11, %v6118_v40  ;;  %v8561_v57 = vadd.f32 %v8329_v20, %v6117_v49 }
 0x475   : > { %v8564_v55 = vadd.f32 %v8333_v37, %v6120_v30 }
 0x477   : > { %v6121_v27 = vpop.f32.mrb[116].mxu1 }
 0x478   : > { %v6122_v21 = vpop.f32.mrb[117].mxu1 }
 0x479   : > { %v6123_v53 = vadd.f32 %v6122_v21, %v6121_v27  ;;  %v6124_v56 = vpop.f32.mrb[118].mxu1  ;;  %v8997_v27 = vld [vmem:[#allocation30_spill] sm:$0xff] }
 0x47a   : > { %v6125_v13 = vpop.f32.mrb[119].mxu1 }
 0x47b   : > { %v6126_v48 = vadd.f32 %v6125_v13, %v6124_v56  ;;  %v8567_v3 = vadd.f32 %v8345_v42, %v6123_v53 }
 0x47d   : > { %v8570_v25 = vadd.f32 %v8347_v10, %v6126_v48 }
 0x47f   : > { %v6127_v32 = vpop.f32.mrb[120].mxu1 }
 0x480   : > { %v6128_v38 = vpop.f32.mrb[121].mxu1 }
 0x481   : > { %v6129_v51 = vadd.f32 %v6128_v38, %v6127_v32  ;;  %v6130_v20 = vpop.f32.mrb[122].mxu1 }
 0x482   : > { %v6131_v29 = vpop.f32.mrb[123].mxu1 }
 0x483   : > { %v6132_v59 = vadd.f32 %v6131_v29, %v6130_v20  ;;  %v8573_v37 = vadd.f32 %v8356_v54, %v6129_v51  ;;  %v8999_v51 = vld [vmem:[#allocation32_spill] sm:$0xff] }
 0x485   : > { %v8576_v6 = vadd.f32 %v8360_v44, %v6132_v59 }
 0x487   : > { %v6133_v12 = vpop.f32.mrb[124].mxu1 }
 0x488   : > { %v6134_v33 = vpop.f32.mrb[125].mxu1 }
 0x489   : > { %v6135_v24 = vadd.f32 %v6134_v33, %v6133_v12  ;;  %v6136_v42 = vpop.f32.mrb[126].mxu1 }
 0x48a   : > { %v6137_v5 = vpop.f32.mrb[127].mxu1 }
 0x48b   : > { %v6138_v28 = vadd.f32 %v6137_v5, %v6136_v42  ;;  %v8579_v10 = vadd.f32 %v8371_v47, %v6135_v24  ;;  %v9000_v5 = vld [vmem:[#allocation33_spill] sm:$0xff] }
 0x48d   : > { %v8582_v15 = vadd.f32 %v8374_v52, %v6138_v28 }
 0x48f   : > { %v6139_v22 = vpop.f32.mrb[128].mxu1 }
 0x490   : > { %v6140_v61 = vpop.f32.mrb[129].mxu1 }
 0x491   : > { %v6141_v18 = vadd.f32 %v6140_v61, %v6139_v22  ;;  %v6142_v54 = vpop.f32.mrb[130].mxu1  ;;  %v9001_v22 = vld [vmem:[#allocation34_spill] sm:$0xff] }
 0x492   : > { %v6143_v14 = vpop.f32.mrb[131].mxu1 }
 0x493   : > { %v6144_v62 = vadd.f32 %v6143_v14, %v6142_v54  ;;  %v8585_v44 = vadd.f32 %v8382_v36, %v6141_v18 }
 0x495   : > { %v8588_v1 = vadd.f32 %v8386_v45, %v6144_v62  ;;  %v8996_v45 = vld [vmem:[#allocation29_spill] sm:$0xff] }
 0x497   : > { %v6145_v2 = vpop.f32.mrb[132].mxu1 }
 0x498   : > { %v6146_v8 = vpop.f32.mrb[133].mxu1 }
 0x499   : > { %v6147_v17 = vadd.f32 %v6146_v8, %v6145_v2  ;;  %v6148_v47 = vpop.f32.mrb[134].mxu1 }
 0x49a   : > { %v6149_v31 = vpop.f32.mrb[135].mxu1 }
 0x49b   : > { %v6150_v0 = vadd.f32 %v6149_v31, %v6148_v47  ;;  %v8591_v52 = vadd.f32 %v8398_v9, %v6147_v17 }
 0x49d   : > { %v8594_v63 = vadd.f32 %v8400_v16, %v6150_v0  ;;  %v8998_v16 = vld [vmem:[#allocation31_spill] sm:$0xff] }
 0x49f   : > { %v6151_v26 = vpop.f32.mrb[136].mxu1 }
 0x4a0   : > { %v6152_v19 = vpop.f32.mrb[137].mxu1 }
 0x4a1   : > { %v6153_v49 = vadd.f32 %v6152_v19, %v6151_v26  ;;  %v6154_v36 = vpop.f32.mrb[138].mxu1 }
 0x4a2   : > { %v6155_v40 = vpop.f32.mrb[139].mxu1 }
 0x4a3   : > { %v6156_v11 = vadd.f32 %v6155_v40, %v6154_v36  ;;  %v8597_v30 = vadd.f32 %v8996_v45, %v6153_v49  ;;  %v9002_v40 = vld [vmem:[#allocation35_spill] sm:$0xff]  ;;  %v9003_v45 = vld [vmem:[#allocation36_spill] sm:$0xff] }
 0x4a5   : > { %v8600_v21 = vadd.f32 %v8997_v27, %v6156_v11 }
 0x4a7   : > { %v6157_v53 = vpop.f32.mrb[140].mxu1 }
 0x4a8   : > { %v6158_v56 = vpop.f32.mrb[141].mxu1 }
 0x4a9   : > { %v6159_v13 = vadd.f32 %v6158_v56, %v6157_v53  ;;  %v6160_v9 = vpop.f32.mrb[142].mxu1 }
 0x4aa   : > { %v6161_v48 = vpop.f32.mrb[143].mxu1 }
 0x4ab   : > { %v6162_v32 = vadd.f32 %v6161_v48, %v6160_v9  ;;  %v8603_v38 = vadd.f32 %v8998_v16, %v6159_v13 }
 0x4ad   : > { %v8606_v20 = vadd.f32 %v8999_v51, %v6162_v32  ;;  %v8632_v51 = vld [vmem:[#allocation12] ss:$0 sm:$0xff] }
 0x4af   : > { %v6163_v29 = vpop.f32.mrb[144].mxu1 }
 0x4b0   : > { %v6164_v59 = vpop.f32.mrb[145].mxu1 }
 0x4b1   : > { %v6165_v12 = vadd.f32 %v6164_v59, %v6163_v29  ;;  %v6166_v33 = vpop.f32.mrb[146].mxu1 }
 0x4b2   : > { %v6167_v24 = vpop.f32.mrb[147].mxu1 }
 0x4b3   : > { %v6168_v42 = vadd.f32 %v6167_v24, %v6166_v33  ;;  %v8609_v28 = vadd.f32 %v9000_v5, %v6165_v12 }
 0x4b5   : > { %v8612_v61 = vadd.f32 %v9001_v22, %v6168_v42 }
 0x4b7   : > { %v6169_v18 = vpop.f32.mrb[148].mxu1 }
 0x4b8   : > { %v6170_v54 = vpop.f32.mrb[149].mxu1 }
 0x4b9   : > { %v6171_v14 = vadd.f32 %v6170_v54, %v6169_v18  ;;  %v6172_v62 = vpop.f32.mrb[150].mxu1 }
 0x4ba   : > { %v6173_v2 = vpop.f32.mrb[151].mxu1 }
 0x4bb   : > { %v6174_v8 = vadd.f32 %v6173_v2, %v6172_v62  ;;  %v8615_v17 = vadd.f32 %v8447_v35, %v6171_v14 }
 0x4bd   : > { %v8618_v47 = vadd.f32 %v8452_v39, %v6174_v8 }
 0x4bf   : > { %v6175_v31 = vpop.f32.mrb[152].mxu1 }
 0x4c0   : > { %v6176_v0 = vpop.f32.mrb[153].mxu1 }
 0x4c1   : > { %v6177_v26 = vadd.f32 %v6176_v0, %v6175_v31  ;;  %v6178_v19 = vpop.f32.mrb[154].mxu1 }
 0x4c2   : > { %v6179_v49 = vpop.f32.mrb[155].mxu1 }
 0x4c3   : > { %v6180_v36 = vadd.f32 %v6179_v49, %v6178_v19  ;;  %v8621_v11 = vadd.f32 %v9002_v40, %v6177_v26 }
 0x4c5   : > { %v8624_v27 = vadd.f32 %v9003_v45, %v6180_v36 }
 0x4c7   : > { %v6181_v53 = vpop.f32.mrb[156].mxu1 }
 0x4c8   : > { %v6182_v56 = vpop.f32.mrb[157].mxu1 }
 0x4c9   : > { %v6183_v13 = vadd.f32 %v6182_v56, %v6181_v53  ;;  %v6184_v35 = vpop.f32.mrb[158].mxu1  ;;  %v9004_v53 = vmov 0  }
 0x4ca   : > { %v6185_v9 = vpop.f32.mrb[159].mxu1 }
 0x4cb   : > { %v6186_v48 = vadd.f32 %v6185_v9, %v6184_v35  ;;  %v8627_v39 = vadd.f32 %v8469_v4, %v6183_v13 }
 0x4cd   : > { %v8630_v32 = vadd.f32 %v8473_v7, %v6186_v48 }
 0x4cf   : > { %v6325_v16 = vpop.f32.mrb[64].mxu1 }
 0x4d0   : > { %v6357_v29 = vadd.f32 %v8543_v34, %v6325_v16  ;;  %v4220_v59 = vpop.f32.mrb[65].mxu1 }
 0x4d1   : > { %v6360_v12 = vadd.f32 %v8537_v46, %v4220_v59  ;;  %v6326_v33 = vpop.f32.mrb[66].mxu1 }
 0x4d2   : > { %v4388_v24 = vadd.f32 %v6357_v29, %v8632_v51  ;;  %v6363_v42 = vadd.f32 %v8546_v50, %v6326_v33  ;;  %v4223_v5 = vpop.f32.mrb[67].mxu1 }
 0x4d3   : > { %v4386_v4 = vadd.f32 %v6360_v12, %v8632_v51  ;;  %v6366_v22 = vadd.f32 %v8540_v41, %v4223_v5 }
 0x4d4   : > { %v4389_v7 = vadd.f32 %v6363_v42, %v8632_v51  ;;  %v4420_v54 = vmax.f32 %v4388_v24, 0.0 }
 0x4d5   : > { %v4387_v18 = vadd.f32 %v6366_v22, %v8632_v51  ;;  %v4418_v34 = vmax.f32 %v4386_v4, 0.0 }
 0x4d6   : > { %v4421_v14 = vmax.f32 %v4389_v7, 0.0 }
 0x4d7   : > { %v4419_v62 = vmax.f32 %v4387_v18, 0.0  ;;  %v6329_v2 = vpop.f32.mrb[68].mxu1 }
 0x4d8   : > { %v6369_v46 = vadd.f32 %v8555_v58, %v6329_v2  ;;  %v4236_v8 = vpop.f32.mrb[69].mxu1  ;;  %v4451_v31 = vpack.c.bf16 %v4421_v14, %v4420_v54 }
 0x4d9   : > { %v4450_v0 = vpack.c.bf16 %v4419_v62, %v4418_v34  ;;  %v6372_v50 = vadd.f32 %v8549_v60, %v4236_v8  ;;  %v6330_v26 = vpop.f32.mrb[70].mxu1 }
 0x4da   : > { %v4392_v19 = vadd.f32 %v6369_v46, %v8632_v51  ;;  %v6375_v41 = vadd.f32 %v8558_v23, %v6330_v26  ;;  %v4239_v49 = vpop.f32.mrb[71].mxu1 }
 0x4db   : > { %v4390_v36 = vadd.f32 %v6372_v50, %v8632_v51  ;;  %v6378_v40 = vadd.f32 %v8552_v43, %v4239_v49  ;;  %4607 = vmatmul.mubr.bf16.vlgmr.msra.gmra.mrb[144].mxu0 %v4450_v0 }
 0x4dc   : > { %v4393_v45 = vadd.f32 %v6375_v41, %v8632_v51  ;;  %4616 = vmatprep.mubr.bf16.mxu0 %v9004_v53  ;;  %v4424_v56 = vmax.f32 %v4392_v19, 0.0 }
 0x4dd   : > { %v4391_v58 = vadd.f32 %v6378_v40, %v8632_v51  ;;  %v4422_v60 = vmax.f32 %v4390_v36, 0.0 }
 0x4de   : > { %v4425_v13 = vmax.f32 %v4393_v45, 0.0 }
 0x4df   : > { %v4423_v35 = vmax.f32 %v4391_v58, 0.0  ;;  %v6333_v9 = vpop.f32.mrb[72].mxu1 }
 0x4e0   : > { %v6381_v48 = vadd.f32 %v8567_v3, %v6333_v9  ;;  %v4252_v23 = vpop.f32.mrb[73].mxu1  ;;  %v4453_v16 = vpack.c.bf16 %v4425_v13, %v4424_v56 }
 0x4e1   : > { %v6384_v29 = vadd.f32 %v8561_v57, %v4252_v23  ;;  %v6334_v59 = vpop.f32.mrb[74].mxu1  ;;  %v4452_v43 = vpack.c.bf16 %v4423_v35, %v4422_v60 }
 0x4e2   : > { %v4396_v12 = vadd.f32 %v6381_v48, %v8632_v51  ;;  %v6387_v33 = vadd.f32 %v8570_v25, %v6334_v59  ;;  %v4255_v24 = vpop.f32.mrb[75].mxu1 }
 0x4e3   : > { %v4394_v42 = vadd.f32 %v6384_v29, %v8632_v51  ;;  %v6390_v5 = vadd.f32 %v8564_v55, %v4255_v24  ;;  %4617 = vmatmul.mubr.bf16.gmra.mrb[148].mxu0 %v4451_v31 }
 0x4e4   : > { %v4397_v4 = vadd.f32 %v6387_v33, %v8632_v51  ;;  %4626 = vmatprep.mubr.bf16.mxu0 %v9004_v53  ;;  %v4428_v22 = vmax.f32 %v4396_v12, 0.0 }
 0x4e5   : > { %v4395_v3 = vadd.f32 %v6390_v5, %v8632_v51  ;;  %v4426_v7 = vmax.f32 %v4394_v42, 0.0 }
 0x4e6   : > { %v4429_v57 = vmax.f32 %v4397_v4, 0.0 }
 0x4e7   : > { %v4427_v18 = vmax.f32 %v4395_v3, 0.0  ;;  %v6337_v54 = vpop.f32.mrb[76].mxu1 }
 0x4e8   : > { %v6393_v14 = vadd.f32 %v8579_v10, %v6337_v54  ;;  %v4268_v25 = vpop.f32.mrb[77].mxu1  ;;  %v8661_v34 = vpack.c.bf16 %v4429_v57, %v4428_v22 }
 0x4e9   : > { %v6396_v62 = vadd.f32 %v8573_v37, %v4268_v25  ;;  %v6338_v55 = vpop.f32.mrb[78].mxu1  ;;  %v4454_v2 = vpack.c.bf16 %v4427_v18, %v4426_v7 }
 0x4ea   : > { %v4400_v46 = vadd.f32 %v6393_v14, %v8632_v51  ;;  %v6399_v8 = vadd.f32 %v8582_v15, %v6338_v55  ;;  %v4271_v31 = vpop.f32.mrb[79].mxu1 }
 0x4eb   : > { %v4398_v0 = vadd.f32 %v6396_v62, %v8632_v51  ;;  %v6402_v50 = vadd.f32 %v8576_v6, %v4271_v31  ;;  %4627 = vmatmul.mubr.bf16.gmra.mrb[152].mxu0 %v4452_v43 }
 0x4ec   : > { %v4401_v26 = vadd.f32 %v6399_v8, %v8632_v51  ;;  %4636 = vmatprep.mubr.bf16.mxu0 %v9004_v53  ;;  %v4432_v19 = vmax.f32 %v4400_v46, 0.0 }
 0x4ed   : > { %v4399_v10 = vadd.f32 %v6402_v50, %v8632_v51  ;;  %v4430_v41 = vmax.f32 %v4398_v0, 0.0 }
 0x4ee   : > { %v4433_v37 = vmax.f32 %v4401_v26, 0.0 }
 0x4ef   : > { %v4431_v49 = vmax.f32 %v4399_v10, 0.0  ;;  %v6341_v36 = vpop.f32.mrb[80].mxu1 }
 0x4f0   : > { %v6405_v40 = vadd.f32 %v8591_v52, %v6341_v36  ;;  %v4284_v15 = vpop.f32.mrb[81].mxu1  ;;  %v8672_v45 = vpack.c.bf16 %v4433_v37, %v4432_v19 }
 0x4f1   : > { %v6408_v58 = vadd.f32 %v8585_v44, %v4284_v15  ;;  %v6342_v6 = vpop.f32.mrb[82].mxu1  ;;  %v8675_v56 = vpack.c.bf16 %v4431_v49, %v4430_v41 }
 0x4f2   : > { %v4404_v13 = vadd.f32 %v6405_v40, %v8632_v51  ;;  %v6411_v60 = vadd.f32 %v8594_v63, %v6342_v6  ;;  %v4287_v35 = vpop.f32.mrb[83].mxu1 }
 0x4f3   : > { %v4402_v9 = vadd.f32 %v6408_v58, %v8632_v51  ;;  %v6414_v48 = vadd.f32 %v8588_v1, %v4287_v35  ;;  %4637 = vmatmul.mubr.bf16.gmra.mrb[156].mxu0 %v4453_v16 }
 0x4f4   : > { %v4405_v52 = vadd.f32 %v6411_v60, %v8632_v51  ;;  %4646 = vmatprep.mubr.bf16.mxu0 %v9004_v53  ;;  %v4436_v44 = vmax.f32 %v4404_v13, 0.0 }
 0x4f5   : > { %v4403_v23 = vadd.f32 %v6414_v48, %v8632_v51  ;;  %v4434_v59 = vmax.f32 %v4402_v9, 0.0 }
 0x4f6   : > { %v4437_v29 = vmax.f32 %v4405_v52, 0.0 }
 0x4f7   : > { %v4435_v43 = vmax.f32 %v4403_v23, 0.0  ;;  %v6345_v12 = vpop.f32.mrb[84].mxu1 }
 0x4f8   : > { %v6417_v33 = vadd.f32 %v8603_v38, %v6345_v12  ;;  %v4300_v63 = vpop.f32.mrb[85].mxu1  ;;  %v4459_v24 = vpack.c.bf16 %v4437_v29, %v4436_v44 }
 0x4f9   : > { %v6420_v42 = vadd.f32 %v8597_v30, %v4300_v63  ;;  %v6346_v5 = vpop.f32.mrb[86].mxu1  ;;  %v4458_v1 = vpack.c.bf16 %v4435_v43, %v4434_v59  ;;  %v4767_v59 = vld [vmem:[%s7702_s20] sm:$0xff] }
 0x4fa   : > { %v4408_v16 = vadd.f32 %v6417_v33, %v8632_v51  ;;  %v6423_v4 = vadd.f32 %v8606_v20, %v6346_v5  ;;  %v4303_v3 = vpop.f32.mrb[87].mxu1  ;;  %v4768_v33 = vld [vmem:[%s7702_s20 + $0x8] sm:$0xff]  ;;  %v4799_v63 = vunpack.c.l.bf16 %v4767_v59 }
 0x4fb   : > { %v4406_v22 = vadd.f32 %v6420_v42, %v8632_v51  ;;  %v6426_v57 = vadd.f32 %v8600_v21, %v4303_v3  ;;  %4647 = vmatmul.mubr.bf16.gmra.mrb[160].mxu0 %v4454_v2  ;;  %v4800_v42 = vunpack.c.h.bf16 %v4767_v59  ;;  %v4802_v3 = vunpack.c.h.bf16 %v4768_v33 }
 0x4fc   : > { %v4409_v7 = vadd.f32 %v6423_v4, %v8632_v51  ;;  %4656 = vmatprep.mubr.bf16.mxu0 %v9004_v53  ;;  %v4440_v18 = vmax.f32 %v4408_v16, 0.0 }
 0x4fd   : > { %v4407_v38 = vadd.f32 %v6426_v57, %v8632_v51  ;;  %v4438_v54 = vmax.f32 %v4406_v22, 0.0 }
 0x4fe   : > { %v4441_v30 = vmax.f32 %v4409_v7, 0.0 }
 0x4ff   : > { %v4439_v14 = vmax.f32 %v4407_v38, 0.0  ;;  %v6349_v25 = vpop.f32.mrb[88].mxu1 }
 0x500   : > { %v6429_v62 = vadd.f32 %v8615_v17, %v6349_v25  ;;  %v4316_v20 = vpop.f32.mrb[89].mxu1  ;;  %v4461_v55 = vpack.c.bf16 %v4441_v30, %v4440_v18  ;;  %v4769_v30 = vld [vmem:[%s7702_s20 + $0x10] sm:$0xff] }
 0x501   : > { %v6432_v46 = vadd.f32 %v8609_v28, %v4316_v20  ;;  %v6350_v8 = vpop.f32.mrb[90].mxu1  ;;  %v4460_v21 = vpack.c.bf16 %v4439_v14, %v4438_v54  ;;  %v4770_v20 = vld [vmem:[%s7702_s20 + $0x18] sm:$0xff] }
 0x502   : > { %v4412_v2 = vadd.f32 %v6429_v62, %v8632_v51  ;;  %v6435_v31 = vadd.f32 %v8618_v47, %v6350_v8  ;;  %v4319_v0 = vpop.f32.mrb[91].mxu1 }
 0x503   : > { %v4410_v50 = vadd.f32 %v6432_v46, %v8632_v51  ;;  %v6438_v26 = vadd.f32 %v8612_v61, %v4319_v0  ;;  %4657 = vmatmul.mubr.bf16.gmra.mrb[164].mxu0 %v8661_v34  ;;  %v4803_v46 = vunpack.c.l.bf16 %v4769_v30 }
 0x504   : > { %v4413_v10 = vadd.f32 %v6435_v31, %v8632_v51  ;;  %4666 = vmatprep.mubr.bf16.mxu0 %v9004_v53  ;;  %v4444_v28 = vmax.f32 %v4412_v2, 0.0  ;;  %v4804_v31 = vunpack.c.h.bf16 %v4769_v30 }
 0x505   : > { %v4411_v17 = vadd.f32 %v6438_v26, %v8632_v51  ;;  %v4442_v37 = vmax.f32 %v4410_v50, 0.0  ;;  %v4805_v26 = vunpack.c.l.bf16 %v4770_v20 }
 0x506   : > { %v4445_v19 = vmax.f32 %v4413_v10, 0.0 }
 0x507   : > { %v4443_v41 = vmax.f32 %v4411_v17, 0.0  ;;  %v6353_v49 = vpop.f32.mrb[92].mxu1 }
 0x508   : > { %v6441_v47 = vadd.f32 %v8627_v39, %v6353_v49  ;;  %v4332_v36 = vpop.f32.mrb[93].mxu1  ;;  %v4463_v40 = vpack.c.bf16 %v4445_v19, %v4444_v28  ;;  %v4806_v19 = vunpack.c.h.bf16 %v4770_v20 }
 0x509   : > { %v6444_v15 = vadd.f32 %v8621_v11, %v4332_v36  ;;  %v6354_v61 = vpop.f32.mrb[94].mxu1  ;;  %v4462_v58 = vpack.c.bf16 %v4443_v41, %v4442_v37 }
 0x50a   : > { %v4416_v34 = vadd.f32 %v6441_v47, %v8632_v51  ;;  %v6447_v6 = vadd.f32 %v8630_v32, %v6354_v61  ;;  %v4335_v13 = vpop.f32.mrb[95].mxu1 }
 0x50b   : > { %v4414_v60 = vadd.f32 %v6444_v15, %v8632_v51  ;;  %v6450_v35 = vadd.f32 %v8624_v27, %v4335_v13  ;;  %4667 = vmatmul.mubr.bf16.gmra.mrb[168].mxu0 %v8675_v56  ;;  %v4484_v27 = vlaneseq }
 0x50c   : > { %v4417_v9 = vadd.f32 %v6447_v6, %v8632_v51  ;;  %4676 = vmatprep.mubr.bf16.mxu0 %v9004_v53  ;;  %v4448_v11 = vmax.f32 %v4416_v34, 0.0  ;;  %v4772_v6 = vld [vmem:[%s7702_s20 + $0x28] sm:$0xff] }
 0x50d   : > { %v4415_v39 = vadd.f32 %v6450_v35, %v8632_v51  ;;  %v4446_v52 = vmax.f32 %v4414_v60, 0.0  ;;  %v4485_v32 = vshrl.u32 %v4484_v27, 7 }
 0x50e   : > { %v4449_v48 = vmax.f32 %v4417_v9, 0.0 }
 0x50f   : > { %v4447_v23 = vmax.f32 %v4415_v39, 0.0  ;;  %v4486_v51 = vsub.s32 0, %v4485_v32  ;;  %v4490_v56 = vsub.s32 1, %v4485_v32  ;;  %v4810_v32 = vunpack.c.h.bf16 %v4772_v6 }
 0x510   : > { %v4465_v44 = vpack.c.bf16 %v4449_v48, %v4448_v11 }
 0x511   : > { %v4464_v29 = vpack.c.bf16 %v4447_v23, %v4446_v52  ;;  %v4809_v23 = vunpack.c.l.bf16 %v4772_v6 }
 0x513   : > { %4677 = vmatmul.mubr.bf16.gmra.mrb[172].mxu0 %v8672_v45  ;;  %v4482_v45 = vld [vmem:[#allocation15] sm:$0x3] }
 0x514   : > { %4686 = vmatprep.mubr.bf16.mxu0 %v9004_v53  ;;  %v8723_v43 = vrot.slane %v4482_v45, %v4486_v51  ;;  %v8725_v12 = vrot.slane %v4482_v45, %v4490_v56 }
 0x51b   : > { %4687 = vmatmul.mubr.bf16.gmra.mrb[176].mxu0 %v4458_v1  ;;  %v4801_v1 = vunpack.c.l.bf16 %v4768_v33 }
 0x51c   : > { %4696 = vmatprep.mubr.bf16.mxu0 %v9004_v53 }
 0x523   : > { %4697 = vmatmul.mubr.bf16.gmra.mrb[180].mxu0 %v4459_v24 }
 0x524   : > { %4706 = vmatprep.mubr.bf16.mxu0 %v9004_v53 }
 0x52b   : > { %4707 = vmatmul.mubr.bf16.gmra.mrb[184].mxu0 %v4460_v21 }
 0x52c   : > { %4716 = vmatprep.mubr.bf16.mxu0 %v9004_v53 }
 0x533   : > { %4717 = vmatmul.mubr.bf16.gmra.mrb[188].mxu0 %v4461_v55 }
 0x534   : > { %4726 = vmatprep.mubr.bf16.mxu0 %v9004_v53 }
 0x53b   : > { %4727 = vmatmul.mubr.bf16.gmra.mrb[192].mxu0 %v4462_v58 }
 0x53c   : > { %4736 = vmatprep.mubr.bf16.mxu0 %v9004_v53 }
 0x543   : > { %4737 = vmatmul.mubr.bf16.gmra.mrb[196].mxu0 %v4463_v40  ;;  %v4771_v40 = vld [vmem:[%s7702_s20 + $0x20] sm:$0xff] }
 0x544   : > { %4746 = vmatprep.mubr.bf16.mxu0 %v9004_v53  ;;  %v4807_v60 = vunpack.c.l.bf16 %v4771_v40  ;;  %v4808_v11 = vunpack.c.h.bf16 %v4771_v40 }
 0x54b   : > { %4747 = vmatmul.mubr.bf16.gmra.mrb[200].mxu0 %v4464_v29 }
 0x54c   : > { %4756 = vmatprep.mubr.bf16.mxu0 %v9004_v53 }
 0x553   : > { %4757 = vmatmul.mubr.bf16.gmra.mrb[204].mxu0 %v4465_v44 }
 0x5ae   : > { %v4608_v24 = vpop.f32.mrb[144].mxu0 }
 0x5af   : > { %v4609_v5 = vadd.f32 %v4608_v24, %v8723_v43  ;;  %v4610_v53 = vpop.f32.mrb[145].mxu0 }
 0x5b0   : > { %v4611_v16 = vadd.f32 %v4610_v53, %v8725_v12  ;;  %v4612_v4 = vpop.f32.mrb[146].mxu0 }
 0x5b1   : > { %v4863_v22 = vadd.f32 %v4799_v63, %v4609_v5  ;;  %v4613_v57 = vadd.f32 %v4612_v4, %v8723_v43  ;;  %v4614_v7 = vpop.f32.mrb[147].mxu0  ;;  %v4773_v63 = vld [vmem:[%s7702_s20 + $0x30] sm:$0xff] }
 0x5b2   : > { %v4864_v38 = vadd.f32 %v4800_v42, %v4611_v16  ;;  %v4615_v18 = vadd.f32 %v4614_v7, %v8725_v12  ;;  %v4811_v4 = vunpack.c.l.bf16 %v4773_v63  ;;  %v4812_v7 = vunpack.c.h.bf16 %v4773_v63 }
 0x5b3   : > { %v4927_v54 = vmax.f32 %v4863_v22, 0.0  ;;  %v4865_v14 = vadd.f32 %v4801_v1, %v4613_v57  ;;  %v4774_v1 = vld [vmem:[%s7702_s20 + $0x38] sm:$0xff] }
 0x5b4   : > { %v4928_v25 = vmax.f32 %v4864_v38, 0.0  ;;  %v4866_v62 = vadd.f32 %v4802_v3, %v4615_v18  ;;  %v4813_v30 = vunpack.c.l.bf16 %v4774_v1 }
 0x5b5   : > { %v4929_v55 = vmax.f32 %v4865_v14, 0.0 }
 0x5b6   : > { %v5770_v8 = vpack.c.bf16 %v4928_v25, %v4927_v54  ;;  %v4930_v21 = vmax.f32 %v4866_v62, 0.0  ;;  %v4618_v2 = vpop.f32.mrb[148].mxu0  ;;  %v4814_v62 = vunpack.c.h.bf16 %v4774_v1 }
 0x5b7   : > { %v4619_v0 = vadd.f32 %v4618_v2, %v8723_v43  ;;  %v4620_v50 = vpop.f32.mrb[149].mxu0  ;;  %v4775_v2 = vld [vmem:[%s7702_s20 + $0x40] sm:$0xff] }
 0x5b8   : > { %5183 = vst [vmem:[%s8737_s5] sm:$0xff] %v5770_v8  ;;  %v5771_v10 = vpack.c.bf16 %v4930_v21, %v4929_v55  ;;  %v4621_v17 = vadd.f32 %v4620_v50, %v8725_v12  ;;  %v4622_v28 = vpop.f32.mrb[150].mxu0 }
 0x5b9   : > { %v4867_v37 = vadd.f32 %v4803_v46, %v4619_v0  ;;  %v4623_v41 = vadd.f32 %v4622_v28, %v8723_v43  ;;  %v4624_v49 = vpop.f32.mrb[151].mxu0  ;;  %v4815_v28 = vunpack.c.l.bf16 %v4775_v2 }
 0x5ba   : > { %5184 = vst [vmem:[%s8737_s5 + $0x8] sm:$0xff] %v5771_v10  ;;  %v4868_v47 = vadd.f32 %v4804_v31, %v4621_v17  ;;  %v4625_v36 = vadd.f32 %v4624_v49, %v8725_v12  ;;  %v4776_v10 = vld [vmem:[%s7702_s20 + $0x48] sm:$0xff]  ;;  %v4816_v49 = vunpack.c.h.bf16 %v4775_v2 }
 0x5bb   : > { %v4931_v15 = vmax.f32 %v4867_v37, 0.0  ;;  %v4869_v61 = vadd.f32 %v4805_v26, %v4623_v41  ;;  %v4817_v40 = vunpack.c.l.bf16 %v4776_v10 }
 0x5bc   : > { %v4932_v58 = vmax.f32 %v4868_v47, 0.0  ;;  %v4870_v34 = vadd.f32 %v4806_v19, %v4625_v36 }
 0x5bd   : > { %v4933_v13 = vmax.f32 %v4869_v61, 0.0 }
 0x5be   : > { %v5772_v35 = vpack.c.bf16 %v4932_v58, %v4931_v15  ;;  %v4934_v9 = vmax.f32 %v4870_v34, 0.0  ;;  %v4628_v39 = vpop.f32.mrb[152].mxu0  ;;  %v4818_v34 = vunpack.c.h.bf16 %v4776_v10 }
 0x5bf   : > { %v4629_v48 = vadd.f32 %v4628_v39, %v8723_v43  ;;  %v4630_v52 = vpop.f32.mrb[153].mxu0  ;;  %v4777_v39 = vld [vmem:[%s7702_s20 + $0x50] sm:$0xff] }
 0x5c0   : > { %5185 = vst [vmem:[%s8737_s5 + $0x10] sm:$0xff] %v5772_v35  ;;  %v5773_v44 = vpack.c.bf16 %v4934_v9, %v4933_v13  ;;  %v4631_v29 = vadd.f32 %v4630_v52, %v8725_v12  ;;  %v4632_v27 = vpop.f32.mrb[154].mxu0 }
 0x5c1   : > { %v4871_v51 = vadd.f32 %v4807_v60, %v4629_v48  ;;  %v4633_v45 = vadd.f32 %v4632_v27, %v8723_v43  ;;  %v4634_v56 = vpop.f32.mrb[155].mxu0  ;;  %v4819_v27 = vunpack.c.l.bf16 %v4777_v39 }
 0x5c2   : > { %5186 = vst [vmem:[%s8737_s5 + $0x18] sm:$0xff] %v5773_v44  ;;  %v4872_v59 = vadd.f32 %v4808_v11, %v4631_v29  ;;  %v4635_v33 = vadd.f32 %v4634_v56, %v8725_v12  ;;  %v4778_v44 = vld [vmem:[%s7702_s20 + $0x58] sm:$0xff]  ;;  %v4820_v56 = vunpack.c.h.bf16 %v4777_v39 }
 0x5c3   : > { %v4935_v24 = vmax.f32 %v4871_v51, 0.0  ;;  %v4873_v42 = vadd.f32 %v4809_v23, %v4633_v45  ;;  %v4821_v63 = vunpack.c.l.bf16 %v4778_v44 }
 0x5c4   : > { %v4936_v5 = vmax.f32 %v4872_v59, 0.0  ;;  %v4874_v53 = vadd.f32 %v4810_v32, %v4635_v33 }
 0x5c5   : > { %v4937_v16 = vmax.f32 %v4873_v42, 0.0 }
 0x5c6   : > { %v5774_v3 = vpack.c.bf16 %v4936_v5, %v4935_v24  ;;  %v4938_v22 = vmax.f32 %v4874_v53, 0.0  ;;  %v4638_v57 = vpop.f32.mrb[156].mxu0  ;;  %v4822_v53 = vunpack.c.h.bf16 %v4778_v44 }
 0x5c7   : > { %v4639_v38 = vadd.f32 %v4638_v57, %v8723_v43  ;;  %v4640_v18 = vpop.f32.mrb[157].mxu0  ;;  %v4779_v57 = vld [vmem:[%s7702_s20 + $0x60] sm:$0xff] }
 0x5c8   : > { %5187 = vst [vmem:[%s8737_s5 + $0x20] sm:$0xff] %v5774_v3  ;;  %v5775_v54 = vpack.c.bf16 %v4938_v22, %v4937_v16  ;;  %v4641_v14 = vadd.f32 %v4640_v18, %v8725_v12  ;;  %v4642_v25 = vpop.f32.mrb[158].mxu0 }
 0x5c9   : > { %v4875_v20 = vadd.f32 %v4811_v4, %v4639_v38  ;;  %v4643_v55 = vadd.f32 %v4642_v25, %v8723_v43  ;;  %v4644_v46 = vpop.f32.mrb[159].mxu0  ;;  %v4823_v25 = vunpack.c.l.bf16 %v4779_v57 }
 0x5ca   : > { %5188 = vst [vmem:[%s8737_s5 + $0x28] sm:$0xff] %v5775_v54  ;;  %v4876_v8 = vadd.f32 %v4812_v7, %v4641_v14  ;;  %v4645_v21 = vadd.f32 %v4644_v46, %v8725_v12  ;;  %v4780_v54 = vld [vmem:[%s7702_s20 + $0x68] sm:$0xff]  ;;  %v4824_v46 = vunpack.c.h.bf16 %v4779_v57 }
 0x5cb   : > { %v4939_v31 = vmax.f32 %v4875_v20, 0.0  ;;  %v4877_v0 = vadd.f32 %v4813_v30, %v4643_v55  ;;  %v4825_v2 = vunpack.c.l.bf16 %v4780_v54 }
 0x5cc   : > { %v4940_v50 = vmax.f32 %v4876_v8, 0.0  ;;  %v4878_v26 = vadd.f32 %v4814_v62, %v4645_v21 }
 0x5cd   : > { %v4941_v17 = vmax.f32 %v4877_v0, 0.0 }
 0x5ce   : > { %v5776_v19 = vpack.c.bf16 %v4940_v50, %v4939_v31  ;;  %v4942_v37 = vmax.f32 %v4878_v26, 0.0  ;;  %v4648_v41 = vpop.f32.mrb[160].mxu0  ;;  %v4826_v26 = vunpack.c.h.bf16 %v4780_v54 }
 0x5cf   : > { %v4649_v47 = vadd.f32 %v4648_v41, %v8723_v43  ;;  %v4650_v36 = vpop.f32.mrb[161].mxu0  ;;  %v4781_v41 = vld [vmem:[%s7702_s20 + $0x70] sm:$0xff] }
 0x5d0   : > { %5189 = vst [vmem:[%s8737_s5 + $0x30] sm:$0xff] %v5776_v19  ;;  %v5777_v15 = vpack.c.bf16 %v4942_v37, %v4941_v17  ;;  %v4651_v61 = vadd.f32 %v4650_v36, %v8725_v12  ;;  %v4652_v58 = vpop.f32.mrb[162].mxu0 }
 0x5d1   : > { %v4879_v6 = vadd.f32 %v4815_v28, %v4649_v47  ;;  %v4653_v13 = vadd.f32 %v4652_v58, %v8723_v43  ;;  %v4654_v60 = vpop.f32.mrb[163].mxu0  ;;  %v4827_v58 = vunpack.c.l.bf16 %v4781_v41 }
 0x5d2   : > { %5190 = vst [vmem:[%s8737_s5 + $0x38] sm:$0xff] %v5777_v15  ;;  %v4880_v35 = vadd.f32 %v4816_v49, %v4651_v61  ;;  %v4655_v9 = vadd.f32 %v4654_v60, %v8725_v12  ;;  %v4782_v15 = vld [vmem:[%s7702_s20 + $0x78] sm:$0xff]  ;;  %v4828_v60 = vunpack.c.h.bf16 %v4781_v41 }
 0x5d3   : > { %v4943_v11 = vmax.f32 %v4879_v6, 0.0  ;;  %v4881_v48 = vadd.f32 %v4817_v40, %v4653_v13  ;;  %v4829_v39 = vunpack.c.l.bf16 %v4782_v15 }
 0x5d4   : > { %v4944_v52 = vmax.f32 %v4880_v35, 0.0  ;;  %v4882_v23 = vadd.f32 %v4818_v34, %v4655_v9 }
 0x5d5   : > { %v4945_v29 = vmax.f32 %v4881_v48, 0.0 }
 0x5d6   : > { %v5778_v32 = vpack.c.bf16 %v4944_v52, %v4943_v11  ;;  %v4946_v51 = vmax.f32 %v4882_v23, 0.0  ;;  %v4658_v45 = vpop.f32.mrb[164].mxu0  ;;  %v4830_v23 = vunpack.c.h.bf16 %v4782_v15 }
 0x5d7   : > { %v4659_v59 = vadd.f32 %v4658_v45, %v8723_v43  ;;  %v4660_v33 = vpop.f32.mrb[165].mxu0  ;;  %v4783_v45 = vld [vmem:[%s7702_s20 + $0x80] sm:$0xff] }
 0x5d8   : > { %5191 = vst [vmem:[%s8737_s5 + $0x40] sm:$0xff] %v5778_v32  ;;  %v5779_v24 = vpack.c.bf16 %v4946_v51, %v4945_v29  ;;  %v4661_v42 = vadd.f32 %v4660_v33, %v8725_v12  ;;  %v4662_v5 = vpop.f32.mrb[166].mxu0 }
 0x5d9   : > { %v4883_v1 = vadd.f32 %v4819_v27, %v4659_v59  ;;  %v4663_v16 = vadd.f32 %v4662_v5, %v8723_v43  ;;  %v4664_v4 = vpop.f32.mrb[167].mxu0  ;;  %v4831_v5 = vunpack.c.l.bf16 %v4783_v45 }
 0x5da   : > { %5192 = vst [vmem:[%s8737_s5 + $0x48] sm:$0xff] %v5779_v24  ;;  %v4884_v3 = vadd.f32 %v4820_v56, %v4661_v42  ;;  %v4665_v22 = vadd.f32 %v4664_v4, %v8725_v12  ;;  %v4784_v24 = vld [vmem:[%s7702_s20 + $0x88] sm:$0xff]  ;;  %v4832_v4 = vunpack.c.h.bf16 %v4783_v45 }
 0x5db   : > { %v4947_v7 = vmax.f32 %v4883_v1, 0.0  ;;  %v4885_v38 = vadd.f32 %v4821_v63, %v4663_v16  ;;  %v4833_v57 = vunpack.c.l.bf16 %v4784_v24 }
 0x5dc   : > { %v4948_v18 = vmax.f32 %v4884_v3, 0.0  ;;  %v4886_v30 = vadd.f32 %v4822_v53, %v4665_v22 }
 0x5dd   : > { %v4949_v14 = vmax.f32 %v4885_v38, 0.0 }
 0x5de   : > { %v5780_v62 = vpack.c.bf16 %v4948_v18, %v4947_v7  ;;  %v4950_v20 = vmax.f32 %v4886_v30, 0.0  ;;  %v4668_v55 = vpop.f32.mrb[168].mxu0  ;;  %v4834_v30 = vunpack.c.h.bf16 %v4784_v24 }
 0x5df   : > { %v4669_v8 = vadd.f32 %v4668_v55, %v8723_v43  ;;  %v4670_v21 = vpop.f32.mrb[169].mxu0  ;;  %v4785_v55 = vld [vmem:[%s7702_s20 + $0x90] sm:$0xff] }
 0x5e0   : > { %5193 = vst [vmem:[%s8737_s5 + $0x50] sm:$0xff] %v5780_v62  ;;  %v5781_v31 = vpack.c.bf16 %v4950_v20, %v4949_v14  ;;  %v4671_v0 = vadd.f32 %v4670_v21, %v8725_v12  ;;  %v4672_v50 = vpop.f32.mrb[170].mxu0 }
 0x5e1   : > { %v4887_v10 = vadd.f32 %v4823_v25, %v4669_v8  ;;  %v4673_v17 = vadd.f32 %v4672_v50, %v8723_v43  ;;  %v4674_v28 = vpop.f32.mrb[171].mxu0  ;;  %v4835_v50 = vunpack.c.l.bf16 %v4785_v55 }
 0x5e2   : > { %5194 = vst [vmem:[%s8737_s5 + $0x58] sm:$0xff] %v5781_v31  ;;  %v4888_v19 = vadd.f32 %v4824_v46, %v4671_v0  ;;  %v4675_v37 = vadd.f32 %v4674_v28, %v8725_v12  ;;  %v4786_v31 = vld [vmem:[%s7702_s20 + $0x98] sm:$0xff]  ;;  %v4836_v28 = vunpack.c.h.bf16 %v4785_v55 }
 0x5e3   : > { %v4951_v49 = vmax.f32 %v4887_v10, 0.0  ;;  %v4889_v47 = vadd.f32 %v4825_v2, %v4673_v17  ;;  %v4837_v41 = vunpack.c.l.bf16 %v4786_v31 }
 0x5e4   : > { %v4952_v36 = vmax.f32 %v4888_v19, 0.0  ;;  %v4890_v40 = vadd.f32 %v4826_v26, %v4675_v37 }
 0x5e5   : > { %v4953_v61 = vmax.f32 %v4889_v47, 0.0 }
 0x5e6   : > { %v5782_v34 = vpack.c.bf16 %v4952_v36, %v4951_v49  ;;  %v4954_v6 = vmax.f32 %v4890_v40, 0.0  ;;  %v4678_v13 = vpop.f32.mrb[172].mxu0  ;;  %v4838_v40 = vunpack.c.h.bf16 %v4786_v31 }
 0x5e7   : > { %v4679_v35 = vadd.f32 %v4678_v13, %v8723_v43  ;;  %v4680_v9 = vpop.f32.mrb[173].mxu0  ;;  %v4787_v13 = vld [vmem:[%s7702_s20 + $0xa0] sm:$0xff] }
 0x5e8   : > { %5195 = vst [vmem:[%s8737_s5 + $0x60] sm:$0xff] %v5782_v34  ;;  %v5783_v11 = vpack.c.bf16 %v4954_v6, %v4953_v61  ;;  %v4681_v48 = vadd.f32 %v4680_v9, %v8725_v12  ;;  %v4682_v52 = vpop.f32.mrb[174].mxu0 }
 0x5e9   : > { %v4891_v44 = vadd.f32 %v4827_v58, %v4679_v35  ;;  %v4683_v29 = vadd.f32 %v4682_v52, %v8723_v43  ;;  %v4684_v27 = vpop.f32.mrb[175].mxu0  ;;  %v4839_v52 = vunpack.c.l.bf16 %v4787_v13 }
 0x5ea   : > { %5196 = vst [vmem:[%s8737_s5 + $0x68] sm:$0xff] %v5783_v11  ;;  %v4892_v32 = vadd.f32 %v4828_v60, %v4681_v48  ;;  %v4685_v51 = vadd.f32 %v4684_v27, %v8725_v12  ;;  %v4788_v11 = vld [vmem:[%s7702_s20 + $0xa8] sm:$0xff]  ;;  %v4840_v27 = vunpack.c.h.bf16 %v4787_v13 }
 0x5eb   : > { %v4955_v56 = vmax.f32 %v4891_v44, 0.0  ;;  %v4893_v59 = vadd.f32 %v4829_v39, %v4683_v29  ;;  %v4841_v45 = vunpack.c.l.bf16 %v4788_v11 }
 0x5ec   : > { %v4956_v33 = vmax.f32 %v4892_v32, 0.0  ;;  %v4894_v63 = vadd.f32 %v4830_v23, %v4685_v51 }
 0x5ed   : > { %v4957_v42 = vmax.f32 %v4893_v59, 0.0 }
 0x5ee   : > { %v5784_v53 = vpack.c.bf16 %v4956_v33, %v4955_v56  ;;  %v4958_v1 = vmax.f32 %v4894_v63, 0.0  ;;  %v4688_v16 = vpop.f32.mrb[176].mxu0  ;;  %v4842_v63 = vunpack.c.h.bf16 %v4788_v11 }
 0x5ef   : > { %v4689_v3 = vadd.f32 %v4688_v16, %v8723_v43  ;;  %v4690_v22 = vpop.f32.mrb[177].mxu0  ;;  %v4789_v16 = vld [vmem:[%s7702_s20 + $0xb0] sm:$0xff] }
 0x5f0   : > { %5197 = vst [vmem:[%s8737_s5 + $0x70] sm:$0xff] %v5784_v53  ;;  %v5785_v7 = vpack.c.bf16 %v4958_v1, %v4957_v42  ;;  %v4691_v38 = vadd.f32 %v4690_v22, %v8725_v12  ;;  %v4692_v18 = vpop.f32.mrb[178].mxu0 }
 0x5f1   : > { %v4895_v54 = vadd.f32 %v4831_v5, %v4689_v3  ;;  %v4693_v14 = vadd.f32 %v4692_v18, %v8723_v43  ;;  %v4694_v25 = vpop.f32.mrb[179].mxu0  ;;  %v4843_v18 = vunpack.c.l.bf16 %v4789_v16 }
 0x5f2   : > { %5198 = vst [vmem:[%s8737_s5 + $0x78] sm:$0xff] %v5785_v7  ;;  %v4896_v62 = vadd.f32 %v4832_v4, %v4691_v38  ;;  %v4695_v20 = vadd.f32 %v4694_v25, %v8725_v12  ;;  %v4790_v7 = vld [vmem:[%s7702_s20 + $0xb8] sm:$0xff]  ;;  %v4844_v25 = vunpack.c.h.bf16 %v4789_v16 }
 0x5f3   : > { %v4959_v46 = vmax.f32 %v4895_v54, 0.0  ;;  %v4897_v8 = vadd.f32 %v4833_v57, %v4693_v14  ;;  %v4845_v55 = vunpack.c.l.bf16 %v4790_v7 }
 0x5f4   : > { %v4960_v21 = vmax.f32 %v4896_v62, 0.0  ;;  %v4898_v2 = vadd.f32 %v4834_v30, %v4695_v20 }
 0x5f5   : > { %v4961_v0 = vmax.f32 %v4897_v8, 0.0 }
 0x5f6   : > { %v5786_v26 = vpack.c.bf16 %v4960_v21, %v4959_v46  ;;  %v4962_v10 = vmax.f32 %v4898_v2, 0.0  ;;  %v4698_v17 = vpop.f32.mrb[180].mxu0  ;;  %v4846_v2 = vunpack.c.h.bf16 %v4790_v7 }
 0x5f7   : > { %v4699_v19 = vadd.f32 %v4698_v17, %v8723_v43  ;;  %v4700_v37 = vpop.f32.mrb[181].mxu0  ;;  %v4791_v17 = vld [vmem:[%s7702_s20 + $0xc0] sm:$0xff] }
 0x5f8   : > { %5199 = vst [vmem:[%s8737_s5 + $0x80] sm:$0xff] %v5786_v26  ;;  %v5787_v49 = vpack.c.bf16 %v4962_v10, %v4961_v0  ;;  %v4701_v47 = vadd.f32 %v4700_v37, %v8725_v12  ;;  %v4702_v36 = vpop.f32.mrb[182].mxu0 }
 0x5f9   : > { %v4899_v15 = vadd.f32 %v4835_v50, %v4699_v19  ;;  %v4703_v61 = vadd.f32 %v4702_v36, %v8723_v43  ;;  %v4704_v58 = vpop.f32.mrb[183].mxu0  ;;  %v4847_v36 = vunpack.c.l.bf16 %v4791_v17 }
 0x5fa   : > { %5200 = vst [vmem:[%s8737_s5 + $0x88] sm:$0xff] %v5787_v49  ;;  %v4900_v34 = vadd.f32 %v4836_v28, %v4701_v47  ;;  %v4705_v6 = vadd.f32 %v4704_v58, %v8725_v12  ;;  %v4792_v49 = vld [vmem:[%s7702_s20 + $0xc8] sm:$0xff]  ;;  %v4848_v58 = vunpack.c.h.bf16 %v4791_v17 }
 0x5fb   : > { %v4963_v60 = vmax.f32 %v4899_v15, 0.0  ;;  %v4901_v35 = vadd.f32 %v4837_v41, %v4703_v61  ;;  %v4849_v13 = vunpack.c.l.bf16 %v4792_v49 }
 0x5fc   : > { %v4964_v9 = vmax.f32 %v4900_v34, 0.0  ;;  %v4902_v39 = vadd.f32 %v4838_v40, %v4705_v6 }
 0x5fd   : > { %v4965_v48 = vmax.f32 %v4901_v35, 0.0 }
 0x5fe   : > { %v5788_v23 = vpack.c.bf16 %v4964_v9, %v4963_v60  ;;  %v4966_v44 = vmax.f32 %v4902_v39, 0.0  ;;  %v4708_v29 = vpop.f32.mrb[184].mxu0  ;;  %v4850_v39 = vunpack.c.h.bf16 %v4792_v49 }
 0x5ff   : > { %v4709_v32 = vadd.f32 %v4708_v29, %v8723_v43  ;;  %v4710_v51 = vpop.f32.mrb[185].mxu0  ;;  %v4793_v29 = vld [vmem:[%s7702_s20 + $0xd0] sm:$0xff] }
 0x600   : > { %5201 = vst [vmem:[%s8737_s5 + $0x90] sm:$0xff] %v5788_v23  ;;  %v5789_v56 = vpack.c.bf16 %v4966_v44, %v4965_v48  ;;  %v4711_v59 = vadd.f32 %v4710_v51, %v8725_v12  ;;  %v4712_v33 = vpop.f32.mrb[186].mxu0 }
 0x601   : > { %v4903_v24 = vadd.f32 %v4839_v52, %v4709_v32  ;;  %v4713_v42 = vadd.f32 %v4712_v33, %v8723_v43  ;;  %v4714_v5 = vpop.f32.mrb[187].mxu0  ;;  %v4851_v33 = vunpack.c.l.bf16 %v4793_v29 }
 0x602   : > { %5202 = vst [vmem:[%s8737_s5 + $0x98] sm:$0xff] %v5789_v56  ;;  %v4904_v53 = vadd.f32 %v4840_v27, %v4711_v59  ;;  %v4715_v1 = vadd.f32 %v4714_v5, %v8725_v12  ;;  %v4794_v56 = vld [vmem:[%s7702_s20 + $0xd8] sm:$0xff]  ;;  %v4852_v5 = vunpack.c.h.bf16 %v4793_v29 }
 0x603   : > { %v4967_v4 = vmax.f32 %v4903_v24, 0.0  ;;  %v4905_v3 = vadd.f32 %v4841_v45, %v4713_v42  ;;  %v4853_v16 = vunpack.c.l.bf16 %v4794_v56 }
 0x604   : > { %v4968_v22 = vmax.f32 %v4904_v53, 0.0  ;;  %v4906_v57 = vadd.f32 %v4842_v63, %v4715_v1 }
 0x605   : > { %v4969_v38 = vmax.f32 %v4905_v3, 0.0 }
 0x606   : > { %v5790_v30 = vpack.c.bf16 %v4968_v22, %v4967_v4  ;;  %v4970_v54 = vmax.f32 %v4906_v57, 0.0  ;;  %v4718_v14 = vpop.f32.mrb[188].mxu0  ;;  %v4854_v57 = vunpack.c.h.bf16 %v4794_v56 }
 0x607   : > { %v4719_v62 = vadd.f32 %v4718_v14, %v8723_v43  ;;  %v4720_v20 = vpop.f32.mrb[189].mxu0  ;;  %v4795_v14 = vld [vmem:[%s7702_s20 + $0xe0] sm:$0xff] }
 0x608   : > { %5203 = vst [vmem:[%s8737_s5 + $0xa0] sm:$0xff] %v5790_v30  ;;  %v5791_v46 = vpack.c.bf16 %v4970_v54, %v4969_v38  ;;  %v4721_v8 = vadd.f32 %v4720_v20, %v8725_v12  ;;  %v4722_v21 = vpop.f32.mrb[190].mxu0 }
 0x609   : > { %v4907_v31 = vadd.f32 %v4843_v18, %v4719_v62  ;;  %v4723_v0 = vadd.f32 %v4722_v21, %v8723_v43  ;;  %v4724_v50 = vpop.f32.mrb[191].mxu0  ;;  %v4855_v21 = vunpack.c.l.bf16 %v4795_v14 }
 0x60a   : > { %5204 = vst [vmem:[%s8737_s5 + $0xa8] sm:$0xff] %v5791_v46  ;;  %v4908_v26 = vadd.f32 %v4844_v25, %v4721_v8  ;;  %v4725_v10 = vadd.f32 %v4724_v50, %v8725_v12  ;;  %v4796_v46 = vld [vmem:[%s7702_s20 + $0xe8] sm:$0xff]  ;;  %v4856_v50 = vunpack.c.h.bf16 %v4795_v14 }
 0x60b   : > { %v4971_v28 = vmax.f32 %v4907_v31, 0.0  ;;  %v4909_v19 = vadd.f32 %v4845_v55, %v4723_v0  ;;  %v4857_v17 = vunpack.c.l.bf16 %v4796_v46 }
 0x60c   : > { %v4972_v37 = vmax.f32 %v4908_v26, 0.0  ;;  %v4910_v41 = vadd.f32 %v4846_v2, %v4725_v10 }
 0x60d   : > { %v4973_v47 = vmax.f32 %v4909_v19, 0.0 }
 0x60e   : > { %v5792_v40 = vpack.c.bf16 %v4972_v37, %v4971_v28  ;;  %v4974_v15 = vmax.f32 %v4910_v41, 0.0  ;;  %v4728_v61 = vpop.f32.mrb[192].mxu0  ;;  %v4858_v41 = vunpack.c.h.bf16 %v4796_v46 }
 0x60f   : > { %v4729_v34 = vadd.f32 %v4728_v61, %v8723_v43  ;;  %v4730_v6 = vpop.f32.mrb[193].mxu0  ;;  %v4797_v61 = vld [vmem:[%s7702_s20 + $0xf0] sm:$0xff] }
 0x610   : > { %5205 = vst [vmem:[%s8737_s5 + $0xb0] sm:$0xff] %v5792_v40  ;;  %v5793_v60 = vpack.c.bf16 %v4974_v15, %v4973_v47  ;;  %v4731_v35 = vadd.f32 %v4730_v6, %v8725_v12  ;;  %v4732_v9 = vpop.f32.mrb[194].mxu0 }
 0x611   : > { %v4911_v11 = vadd.f32 %v4847_v36, %v4729_v34  ;;  %v4733_v48 = vadd.f32 %v4732_v9, %v8723_v43  ;;  %v4734_v52 = vpop.f32.mrb[195].mxu0  ;;  %v4859_v9 = vunpack.c.l.bf16 %v4797_v61 }
 0x612   : > { %5206 = vst [vmem:[%s8737_s5 + $0xb8] sm:$0xff] %v5793_v60  ;;  %v4912_v23 = vadd.f32 %v4848_v58, %v4731_v35  ;;  %v4735_v44 = vadd.f32 %v4734_v52, %v8725_v12  ;;  %v4798_v60 = vld [vmem:[%s7702_s20 + $0xf8] sm:$0xff]  ;;  %v4860_v52 = vunpack.c.h.bf16 %v4797_v61  ;;  %s9006_s20 = sld [smem:[#allocation44_spill]] }
 0x613   : > { %v4975_v27 = vmax.f32 %v4911_v11, 0.0  ;;  %v4913_v32 = vadd.f32 %v4849_v13, %v4733_v48  ;;  %v4861_v29 = vunpack.c.l.bf16 %v4798_v60 }
 0x614   : > { %v4976_v51 = vmax.f32 %v4912_v23, 0.0  ;;  %v4914_v45 = vadd.f32 %v4850_v39, %v4735_v44 }
 0x615   : > { %v4977_v59 = vmax.f32 %v4913_v32, 0.0 }
 0x616   : > { %v5794_v63 = vpack.c.bf16 %v4976_v51, %v4975_v27  ;;  %v4978_v24 = vmax.f32 %v4914_v45, 0.0  ;;  %v4738_v42 = vpop.f32.mrb[196].mxu0  ;;  %v4862_v45 = vunpack.c.h.bf16 %v4798_v60 }
 0x617   : > { %v4739_v53 = vadd.f32 %v4738_v42, %v8723_v43  ;;  %v4740_v1 = vpop.f32.mrb[197].mxu0 }
 0x618   : > { %5207 = vst [vmem:[%s8737_s5 + $0xc0] sm:$0xff] %v5794_v63  ;;  %v5795_v4 = vpack.c.bf16 %v4978_v24, %v4977_v59  ;;  %v4741_v3 = vadd.f32 %v4740_v1, %v8725_v12  ;;  %v4742_v22 = vpop.f32.mrb[198].mxu0  ;;  %s8865_s7 = scalar_lea.hbm %s9006_s20, %s5766_s3 }
 0x619   : > { %v4915_v7 = vadd.f32 %v4851_v33, %v4739_v53  ;;  %v4743_v38 = vadd.f32 %v4742_v22, %v8723_v43  ;;  %v4744_v18 = vpop.f32.mrb[199].mxu0 }
 0x61a   : > { %5208 = vst [vmem:[%s8737_s5 + $0xc8] sm:$0xff] %v5795_v4  ;;  %v4916_v30 = vadd.f32 %v4852_v5, %v4741_v3  ;;  %v4745_v54 = vadd.f32 %v4744_v18, %v8725_v12 }
 0x61b   : > { %v4979_v25 = vmax.f32 %v4915_v7, 0.0  ;;  %v4917_v62 = vadd.f32 %v4853_v16, %v4743_v38 }
 0x61c   : > { %v4980_v20 = vmax.f32 %v4916_v30, 0.0  ;;  %v4918_v55 = vadd.f32 %v4854_v57, %v4745_v54 }
 0x61d   : > { %v4981_v8 = vmax.f32 %v4917_v62, 0.0 }
 0x61e   : > { %v5796_v2 = vpack.c.bf16 %v4980_v20, %v4979_v25  ;;  %v4982_v31 = vmax.f32 %v4918_v55, 0.0  ;;  %v4748_v0 = vpop.f32.mrb[200].mxu0 }
 0x61f   : > { %v4749_v26 = vadd.f32 %v4748_v0, %v8723_v43  ;;  %v4750_v10 = vpop.f32.mrb[201].mxu0 }
 0x620   : > { %5209 = vst [vmem:[%s8737_s5 + $0xd0] sm:$0xff] %v5796_v2  ;;  %v5797_v28 = vpack.c.bf16 %v4982_v31, %v4981_v8  ;;  %v4751_v19 = vadd.f32 %v4750_v10, %v8725_v12  ;;  %v4752_v37 = vpop.f32.mrb[202].mxu0 }
 0x621   : > { %v4919_v49 = vadd.f32 %v4855_v21, %v4749_v26  ;;  %v4753_v47 = vadd.f32 %v4752_v37, %v8723_v43  ;;  %v4754_v36 = vpop.f32.mrb[203].mxu0 }
 0x622   : > { %5210 = vst [vmem:[%s8737_s5 + $0xd8] sm:$0xff] %v5797_v28  ;;  %v4920_v40 = vadd.f32 %v4856_v50, %v4751_v19  ;;  %v4755_v15 = vadd.f32 %v4754_v36, %v8725_v12 }
 0x623   : > { %v4983_v58 = vmax.f32 %v4919_v49, 0.0  ;;  %v4921_v34 = vadd.f32 %v4857_v17, %v4753_v47 }
 0x624   : > { %v4984_v6 = vmax.f32 %v4920_v40, 0.0  ;;  %v4922_v13 = vadd.f32 %v4858_v41, %v4755_v15 }
 0x625   : > { %v4985_v35 = vmax.f32 %v4921_v34, 0.0 }
 0x626   : > { %v5798_v39 = vpack.c.bf16 %v4984_v6, %v4983_v58  ;;  %v4986_v11 = vmax.f32 %v4922_v13, 0.0  ;;  %v4758_v48 = vpop.f32.mrb[204].mxu0 }
 0x627   : > { %v4759_v23 = vadd.f32 %v4758_v48, %v8723_v43  ;;  %v4760_v44 = vpop.f32.mrb[205].mxu0 }
 0x628   : > { %5211 = vst [vmem:[%s8737_s5 + $0xe0] sm:$0xff] %v5798_v39  ;;  %v5799_v27 = vpack.c.bf16 %v4986_v11, %v4985_v35  ;;  %v4761_v32 = vadd.f32 %v4760_v44, %v8725_v12  ;;  %v4762_v51 = vpop.f32.mrb[206].mxu0 }
 0x629   : > { %v4923_v56 = vadd.f32 %v4859_v9, %v4759_v23  ;;  %v4763_v59 = vadd.f32 %v4762_v51, %v8723_v43  ;;  %v4764_v33 = vpop.f32.mrb[207].mxu0 }
 0x62a   : > { %5212 = vst [vmem:[%s8737_s5 + $0xe8] sm:$0xff] %v5799_v27  ;;  %v4924_v63 = vadd.f32 %v4860_v52, %v4761_v32  ;;  %v4765_v24 = vadd.f32 %v4764_v33, %v8725_v12 }
 0x62b   : > { %v4987_v42 = vmax.f32 %v4923_v56, 0.0  ;;  %v4925_v5 = vadd.f32 %v4861_v29, %v4763_v59 }
 0x62c   : > { %v4988_v53 = vmax.f32 %v4924_v63, 0.0  ;;  %v4926_v1 = vadd.f32 %v4862_v45, %v4765_v24 }
 0x62d   : > { %v4989_v16 = vmax.f32 %v4925_v5, 0.0 }
 0x62e   : > { %v5800_v4 = vpack.c.bf16 %v4988_v53, %v4987_v42  ;;  %v4990_v3 = vmax.f32 %v4926_v1, 0.0 }
 0x630   : > { %5213 = vst [vmem:[%s8737_s5 + $0xf0] sm:$0xff] %v5800_v4  ;;  %v5801_v43 = vpack.c.bf16 %v4990_v3, %v4989_v16 }
 0x632   : > { %5214 = vst [vmem:[%s8737_s5 + $0xf8] sm:$0xff] %v5801_v43 }
 0x633   : > { %7189 = shalt.err (!%p7186_p11)
}
 0x634   : > { %s7190_s4 = scalar_lea.hbm %s8865_s7, 4096  ;;  %s7194_s5 = scalar_lea.hbm %s9006_s20, 32768 }
 0x635   : > { %p7191_p12 = scmp.ne.s32.totalorder %s8865_s7, %s7190_s4  ;;  %p7195_p0 = scmp.lt.u32.totalorder %s8865_s7, %s9006_s20 }
 0x636   : > { %p7196_p4 = scmp.lt.u32.totalorder %s7194_s5, %s7190_s4  ;;  %p7198_p6 = scmp.lt.u32.totalorder %s7190_s4, %s8865_s7 }
 0x637   : > { %p7192_p13 = pnand %p7191_p12, %p9007_p8 }
 0x638   : > { %p7197_p10 = por %p7196_p4, %p7195_p0 }
 0x639   : > { %p7193_p2 = pneg %p7192_p13 }
 0x63a   : > { %p7199_p9 = por %p7198_p6, %p7197_p10 }
 0x63c   : > { %p7200_p3 = pnand %p7199_p9, %p7193_p2 }
 0x63e   : > { %7203 = shalt.err (!%p7200_p3)
}
 0x63f   : > { %s7310_s17 = smov 128   ;;  %s7311_s30 = smov 8  }
 0x640   : > { %6543 = dma.vmem_to_hbm [thread:$0]  (%p9007_p8), %s8859_s2, 4096, %s8865_s7, %s5216_s9, %s7310_s17, %s7310_s17, %s7311_s30  }
 0x641 PF: > { %p6588_p7 = scmp.ge.s32.totalorder %s7294_s12, 2  ;;  %s5247_s3 = sand.u32 1, %s7266_s27  }
 0x642   : > { %p9008_p5 = scmp.ne.s32.totalorder %s8969_s21, 0  ;;  %s5248_s22 = scalar_lea.sflag [#allocation5], %s5247_s3 }
 0x644   : > { %p6572_p1 = pnand %p6588_p7, %p9008_p5 }
 0x646   : > { %7261 = dma.done.wait (!%p6572_p1), %s5248_s22, 4096  }
 0x647   : > { %7263 = vsyncadd (!%p6572_p1), %s5248_s22, 4294963200  ;;  %s30_s12 = sadd.s32 1, %s7294_s12   ;;  %s9009_s8 = sld [smem:[#allocation28_spill]] }
 0x648   : > { %p27_p11 = scmp.ge.s32.totalorder %s30_s12, 10   ;;  %s9010_s27 = smov %s7270_s28 }
 0x649   : > { %s9011_s28 = smov %s7274_s29  ;;  %s9012_s29 = smov %s7599_s23 }
 0x64a   : > { %s9013_s30 = smov %s7286_s10  ;;  %s9014_s9 = smov %s7290_s11 }
 0x64b   : > { %s9015_s10 = smov %s9018_s14  ;;  %29 = sbr.rel (!%p27_p11) target bundleno = 21 (0x15), region = 137 }
 0x64d   : > { %s9016_s11 = smov %s9009_s8 }
 0x652   :  { %5253 = vsyncpa [#allocation4], 1 }
 0x653   :  { %5255 = vsyncpa [#allocation4 + $0x1], 1 }
 0x654   :  { %5256 = vsyncpa [#allocation7], 1 }
 0x655   :  { %5258 = vsyncpa [#allocation7 + $0x1], 1 }
 0x656   :  { %5259 = vsyncpa [#allocation10], 1 }
 0x657   :  { %5260 = vsyncpa [#allocation13], 1 }
 0x658   :  { %5261 = vsyncpa [#allocation16], 1 }
 0x659   :  { %5262 = vsyncpa [#allocation5], 1 }
 0x65a   :  { %5264 = vsyncpa [#allocation5 + $0x1], 1 }

</bundles_post_ra>
